<compile_context>
chip_gen: v7x
topology: tpu7x:2x2x1
jax: 0.10.0
libtpu: 0.0.40
codegen_flags: <defaults>
</compile_context>

<pallas_src>
import functools

import jax
import jax.numpy as jnp
from jax import lax
from jax.experimental import pallas as pl
from jax.experimental.pallas import tpu as pltpu

EPS = 0.0          # KernelConfig.eps
NORMALIZE = True   # KernelConfig.normalize

# Standard (M, K) x (K, N) contraction: no transposed operands into the MXU.
_CONTRACT_STD = (((1,), (0,)), ((), ()))


def _pick_tile(n, candidates):
    """Largest candidate <= n. If n is smaller than every candidate, use the
    full extent (block dim == array dim is always a legal block shape)."""
    for t in candidates:
        if t <= n:
            return t
    return n


# ----------------------------------------------------------------------------
# Pallas kernel 1: synthetic base kernel (euclidean RBF) -> (N, N) symmetric PSD
#   K[i, j] = exp(-||x_i - x_j||^2 / D), tiled (tm, tn) over a 2-D grid.
# ----------------------------------------------------------------------------
def _rbf_tile_body(xi_ref, xjt_ref, sqi_ref, sqj_ref, o_ref, *, inv_d):
    # xi: (tm, D), xjt: (D, tn), sqi: (tm, 1), sqj: (1, tn)
    gram = lax.dot_general(xi_ref[...], xjt_ref[...], _CONTRACT_STD,
                           preferred_element_type=jnp.float32)       # (tm, tn) MXU
    d2 = jnp.maximum(sqi_ref[...] + sqj_ref[...] - 2.0 * gram, 0.0)  # VPU
    o_ref[...] = jnp.exp(-d2 * inv_d)                                 # EUP


def rbf_base_kernel(x, *, tm=None, tn=None):
    n, d = x.shape
    x = x.astype(jnp.float32)
    # Large lane-dense output tiles: (512, 2048) f32 is ~4 MiB (8 MiB double-
    # buffered) -> well under the scoped VMEM default on all generations while
    # amortizing per-step overhead (kernel is HBM/EUP bound at D=32).
    tm = tm or _pick_tile(n, (512, 256, 128))
    tn = tn or _pick_tile(n, (2048, 1024, 512, 256, 128))

    # One cheap XLA transpose of the small (N, D) feature matrix so the RHS
    # tile is already in (K, N) orientation (no transposed-operand MXU path).
    xt = x.T                                   # (D, N)
    # Squared norms precomputed once; fed in both orientations so the kernel
    # never does a sublane<->lane relayout.
    sq = jnp.sum(x * x, axis=1)
    sq_col = sq[:, None]                       # (N, 1)
    sq_row = sq[None, :]                       # (1, N)

    grid = (pl.cdiv(n, tm), pl.cdiv(n, tn))    # ragged edges masked by Pallas
    cost = pl.CostEstimate(flops=2 * n * n * d + 5 * n * n,
                           transcendentals=n * n,
                           bytes_accessed=(2 * n * d + 2 * n + n * n) * 4)
    return pl.pallas_call(
        functools.partial(_rbf_tile_body, inv_d=1.0 / d),
        out_shape=jax.ShapeDtypeStruct((n, n), jnp.float32),
        grid=grid,
        in_specs=[
            pl.BlockSpec((tm, d), lambda i, j: (i, 0)),   # row tile of x
            pl.BlockSpec((d, tn), lambda i, j: (0, j)),   # col tile of x^T
            pl.BlockSpec((tm, 1), lambda i, j: (i, 0)),   # ||x_i||^2 column
            pl.BlockSpec((1, tn), lambda i, j: (0, j)),   # ||x_j||^2 row
        ],
        out_specs=pl.BlockSpec((tm, tn), lambda i, j: (i, j)),
        compiler_params=pltpu.CompilerParams(
            dimension_semantics=("parallel", "parallel")),
        cost_estimate=cost,
    )(x, xt, sq_col, sq_row)


# ----------------------------------------------------------------------------
# Pallas kernel 2: spectral reconstruction + row normalization (fused)
#   reconstructed = V diag(|lam|) V^T ; out = reconstructed / row_sums
#   2-D tiled: (tm, q) x (q, tn) -> (tm, tn). Row sums are precomputed
#   analytically in the wrapper ((V*|lam|) @ colsum(V)) and arrive as a
#   (tm, 1) reciprocal -> no in-kernel full-row reduction, bounded VMEM.
# ----------------------------------------------------------------------------
def _spectral_tile_body(v_ref, vt_ref, lam_ref, inv_ref, o_ref):
    vl = v_ref[...] * lam_ref[...]                                    # (tm, q) VPU
    rec = lax.dot_general(vl, vt_ref[...], _CONTRACT_STD,
                          preferred_element_type=jnp.float32)         # (tm, tn) MXU
    if NORMALIZE:
        rec = rec * inv_ref[...]          # (tm,1) broadcast: cheap VPU multiply
    o_ref[...] = rec


def spectral_reconstruct(v_q, lam_q, *, tm=None, tn=None):
    n, q = v_q.shape
    v_q = v_q.astype(jnp.float32)
    lam_row = lam_q.astype(jnp.float32).reshape(1, q)
    vt = v_q.T                                  # (q, N): sublane-pads 10->16 only

    tm = tm or _pick_tile(n, (256, 128))
    tn = tn or _pick_tile(n, (1024, 512, 256, 128))

    if NORMALIZE:
        # row_sum_i = sum_j [V diag(|lam|) V^T]_{ij} = (V*|lam|)_i . colsum(V).
        # Exact factoring of the reference row sum; O(Nq) instead of an
        # in-kernel XLU reduce over the full N-wide row.
        # NOTE: with eps=0.0 degenerate data could give a zero row sum
        # (inf/nan), faithful to the PyTorch config.
        col_sum = jnp.sum(v_q, axis=0)
        row_sums = jnp.dot(v_q * lam_row, col_sum,
                           precision=lax.Precision.HIGHEST)
        inv = (1.0 / (row_sums + EPS)).reshape(n, 1)
    else:
        inv = jnp.ones((n, 1), jnp.float32)

    grid = (pl.cdiv(n, tm), pl.cdiv(n, tn))
    cost = pl.CostEstimate(flops=2 * n * n * q + 2 * n * n,
                           transcendentals=0,
                           bytes_accessed=(2 * n * q + q + n + n * n) * 4)
    return pl.pallas_call(
        _spectral_tile_body,
        out_shape=jax.ShapeDtypeStruct((n, n), jnp.float32),
        grid=grid,
        in_specs=[
            pl.BlockSpec((tm, q), lambda i, j: (i, 0)),   # row tile of V
            pl.BlockSpec((q, tn), lambda i, j: (0, j)),   # col tile of V^T
            pl.BlockSpec((1, q), lambda i, j: (0, 0)),    # |eigenvalues|
            pl.BlockSpec((tm, 1), lambda i, j: (i, 0)),   # 1 / row_sums
        ],
        out_specs=pl.BlockSpec((tm, tn), lambda i, j: (i, j)),
        compiler_params=pltpu.CompilerParams(
            dimension_semantics=("parallel", "parallel")),
        cost_estimate=cost,
    )(v_q, vt, lam_row, inv)


# ----------------------------------------------------------------------------
# SpectralKernel.forward
# ----------------------------------------------------------------------------
def spectral_kernel_forward(x, q=10):
    k = rbf_base_kernel(x)                        # Pallas hot path #1
    n = k.shape[0]
    q = min(q, n)
    # TODO(synk): torch.linalg.eigh has no clean Pallas equivalent; use XLA eigh.
    eigenvalues, eigenvectors = jnp.linalg.eigh(k)
    idx = jnp.argsort(-eigenvalues)               # descending eigenvalue order
    eigenvalues = eigenvalues[idx]
    eigenvectors = eigenvectors[:, idx]
    top_vals = jnp.abs(eigenvalues[:q])
    top_vecs = eigenvectors[:, :q]
    return spectral_reconstruct(top_vecs, top_vals)   # Pallas hot path #2


if __name__ == "__main__":
    key = jax.random.PRNGKey(0)
    N, D, Q = 512, 32, 10
    x = jax.random.normal(key, (N, D), dtype=jnp.float32)

    out = jax.block_until_ready(spectral_kernel_forward(x, q=Q))
    assert out.shape == (N, N)

    # Check 1: Pallas base kernel vs high-precision pure-JAX reference.
    k_pallas = jax.block_until_ready(rbf_base_kernel(x))
    sq = jnp.sum(x * x, axis=1, keepdims=True)
    gram = jnp.dot(x, x.T, precision=lax.Precision.HIGHEST)
    k_ref = jnp.exp(-jnp.maximum(sq + sq.T - 2.0 * gram, 0.0) / D)
    assert jnp.allclose(k_pallas, k_ref, atol=1e-4, rtol=1e-4), "base kernel mismatch"

    # Check 2: fused reconstruction + normalization vs pure JAX, using the same
    # eigendecomposition the forward pass uses (eigh itself is XLA in both).
    w, v = jnp.linalg.eigh(k_pallas)
    idx = jnp.argsort(-w)
    w, v = w[idx], v[:, idx]
    wq, vq = jnp.abs(w[:Q]), v[:, :Q]
    rec_ref = jnp.dot(vq * wq, vq.T, precision=lax.Precision.HIGHEST)
    rec_ref = rec_ref / (jnp.sum(rec_ref, axis=1, keepdims=True) + EPS)
    assert jnp.allclose(out, rec_ref, atol=1e-4, rtol=1e-4), "reconstruction mismatch"

    print("KERNEL_OK")
</pallas_src>

<mosaic_0001>
module attributes {stable_mosaic.version = 11 : i64} {
  func.func @_rbf_tile_body(%arg0: i32, %arg1: i32, %arg2: memref<512x32xf32, #tpu.memory_space<vmem>>, %arg3: memref<32x512xf32, #tpu.memory_space<vmem>>, %arg4: memref<512x1xf32, #tpu.memory_space<vmem>>, %arg5: memref<1x512xf32, #tpu.memory_space<vmem>>, %arg6: memref<512x512xf32, #tpu.memory_space<vmem>>) attributes {dimension_semantics = [#tpu.dimension_semantics<parallel>, #tpu.dimension_semantics<parallel>], iteration_bounds = array<i64: 1, 1>, scalar_prefetch = 0 : i64, scratch_operands = 0 : i64, tpu.core_type = #tpu.core_type<tc>, window_params = [{transform_indices = @transform_0, window_bounds = array<i64: 512, 32>}, {transform_indices = @transform_1, window_bounds = array<i64: 32, 512>}, {transform_indices = @transform_2, window_bounds = array<i64: 512, 1>}, {transform_indices = @transform_3, window_bounds = array<i64: 1, 512>}, {transform_indices = @transform_4, window_bounds = array<i64: 512, 512>}]} {
    %c0 = arith.constant 0 : index
    %c0_0 = arith.constant 0 : index
    %0 = vector.load %arg2[%c0, %c0_0] : memref<512x32xf32, #tpu.memory_space<vmem>>, vector<512x32xf32>
    %c0_1 = arith.constant 0 : index
    %c0_2 = arith.constant 0 : index
    %1 = vector.load %arg3[%c0_1, %c0_2] : memref<32x512xf32, #tpu.memory_space<vmem>>, vector<32x512xf32>
    %cst = arith.constant dense<0.000000e+00> : vector<512x512xf32>
    %2 = tpu.matmul %0, %1, %cst {dimension_numbers = #tpu.dot_dimension_numbers<[1], [0], [0], [1], [0, 0, 1, 1], [], []>} : vector<512x32xf32>, vector<32x512xf32>, vector<512x512xf32> -> vector<512x512xf32>
    %c0_3 = arith.constant 0 : index
    %c0_4 = arith.constant 0 : index
    %3 = vector.load %arg4[%c0_3, %c0_4] : memref<512x1xf32, #tpu.memory_space<vmem>>, vector<512x1xf32>
    %c0_5 = arith.constant 0 : index
    %c0_6 = arith.constant 0 : index
    %4 = vector.load %arg5[%c0_5, %c0_6] : memref<1x512xf32, #tpu.memory_space<vmem>>, vector<1x512xf32>
    %5 = vector.broadcast %3 : vector<512x1xf32> to vector<512x512xf32>
    %6 = vector.broadcast %4 : vector<1x512xf32> to vector<512x512xf32>
    %7 = arith.addf %5, %6 : vector<512x512xf32>
    %cst_7 = arith.constant 2.000000e+00 : f32
    %8 = vector.broadcast %cst_7 : f32 to vector<512x512xf32>
    %9 = arith.mulf %8, %2 : vector<512x512xf32>
    %10 = arith.subf %7, %9 : vector<512x512xf32>
    %cst_8 = arith.constant 0.000000e+00 : f32
    %11 = vector.broadcast %cst_8 : f32 to vector<512x512xf32>
    %12 = arith.maximumf %10, %11 : vector<512x512xf32>
    %cst_9 = arith.constant 0.000000e+00 : f32
    %13 = vector.broadcast %cst_9 : f32 to vector<512x512xf32>
    %14 = arith.subf %13, %12 : vector<512x512xf32>
    %cst_10 = arith.constant 3.125000e-02 : f32
    %15 = vector.broadcast %cst_10 : f32 to vector<512x512xf32>
    %16 = arith.mulf %14, %15 : vector<512x512xf32>
    %17 = math.exp %16 : vector<512x512xf32>
    %c0_11 = arith.constant 0 : index
    %c0_12 = arith.constant 0 : index
    %18 = vector.load %arg6[%c0_11, %c0_12] : memref<512x512xf32, #tpu.memory_space<vmem>>, vector<512x512xf32>
    tpu.vector_store %arg6[%c0_11, %c0_12], %17 {strides = array<i32>} : memref<512x512xf32, #tpu.memory_space<vmem>>, vector<512x512xf32>,
    return
  }
  func.func @transform_0(%arg0: i32, %arg1: i32) -> (i32, i32) {
    %c0_i32 = arith.constant 0 : i32
    %c0_i32_0 = arith.constant 0 : i32
    return %arg0, %c0_i32 : i32, i32
  }
  func.func @transform_1(%arg0: i32, %arg1: i32) -> (i32, i32) {
    %c0_i32 = arith.constant 0 : i32
    %c0_i32_0 = arith.constant 0 : i32
    return %c0_i32, %arg1 : i32, i32
  }
  func.func @transform_2(%arg0: i32, %arg1: i32) -> (i32, i32) {
    %c0_i32 = arith.constant 0 : i32
    %c0_i32_0 = arith.constant 0 : i32
    return %arg0, %c0_i32 : i32, i32
  }
  func.func @transform_3(%arg0: i32, %arg1: i32) -> (i32, i32) {
    %c0_i32 = arith.constant 0 : i32
    %c0_i32_0 = arith.constant 0 : i32
    return %c0_i32, %arg1 : i32, i32
  }
  func.func @transform_4(%arg0: i32, %arg1: i32) -> (i32, i32) {
    %c0_i32 = arith.constant 0 : i32
    return %arg0, %arg1 : i32, i32
  }
}

</mosaic_0001>

<bundles_post_ra>
// kernel: tpu_custom_call.1
= control target key start
LH: loop header
LB: loop body
LE: loop exit
PB: predicated region body
PF: predicated region fallthrough
CT: control target
= control target key end

     0   :  { %v6921_v7 = vmov 0.0   ;;  %v4603_v13 = vmov 0   ;;  %vm98_vm0 = vcmask 261120   ;;  %s6916_s0 = inlined_call_operand.vmem [shape: f32[512,32], index: 0, kind: input, shape index: {}]   ;;  %s6917_s1 = inlined_call_operand.vmem [shape: f32[32,512], index: 1, kind: input, shape index: {}]   ;;  %s6918_s2 = inlined_call_operand.vmem [shape: f32[512,1], index: 2, kind: input, shape index: {}]   ;;  %s6919_s3 = inlined_call_operand.vmem [shape: f32[1,512], index: 3, kind: input, shape index: {}]   ;;  %s6920_s4 = inlined_call_operand.hbm [shape: f32[512,512], index: 4, kind: output, shape index: {}]  }
   0x1   :  { %v83_v0 = vld [vmem:[%s6917_s1 + $0x8] sm:$0xff]  ;;  %v85_v2 = vld [vmem:[%s6917_s1 + $0x18] sm:$0xff]  ;;  %v82_v5 = vld [vmem:[%s6917_s1] sm:$0xff]  ;;  %355 = vmatprep.mubr.f32.mxu0 %v6921_v7  ;;  %804 = vmatprep.mubr.f32.mxu1 %v6921_v7 }
   0x2   :  { %v87_v1 = vld [vmem:[%s6917_s1 + $0x28] sm:$0xff]  ;;  %v89_v4 = vld [vmem:[%s6917_s1 + $0x38] sm:$0xff]  ;;  %v86_v6 = vld [vmem:[%s6917_s1 + $0x20] sm:$0xff]  ;;  %4064 = vset.pattern.permute.xlu0 %v4603_v13  ;;  %4065 = vset.pattern.permute.xlu1 %v4603_v13 }
   0x3   :  { %v4043_v3 = vpack.c.bf16 %v87_v1, %v83_v0  ;;  %v4051_v8 = vpack.c.bf16 %v89_v4, %v85_v2  ;;  %v4045_v9 = vpack.c.bf16 %v86_v6, %v82_v5  ;;  %v84_v10 = vld [vmem:[%s6917_s1 + $0x10] sm:$0xff]  ;;  %v91_v12 = vld [vmem:[%s6917_s1 + $0x48] sm:$0xff]  ;;  %v93_v16 = vld [vmem:[%s6917_s1 + $0x58] sm:$0xff] }
   0x4   :  { %v88_v11 = vld [vmem:[%s6917_s1 + $0x30] sm:$0xff]  ;;  %v95_v15 = vld [vmem:[%s6917_s1 + $0x68] sm:$0xff]  ;;  %v97_v17 = vld [vmem:[%s6917_s1 + $0x78] sm:$0xff] }
   0x5   :  { %4044 = vmatprep.subr.bf16.mxu0 %v4043_v3  ;;  %v4053_v14 = vpack.c.bf16 %v88_v11, %v84_v10  ;;  %4052 = vmatprep.subr.bf16.mxu1 %v4051_v8  ;;  %v4047_v18 = vpack.c.bf16 %v95_v15, %v91_v12  ;;  %v4055_v19 = vpack.c.bf16 %v97_v17, %v93_v16  ;;  %v90_v20 = vld [vmem:[%s6917_s1 + $0x40] sm:$0xff]  ;;  %v92_v22 = vld [vmem:[%s6917_s1 + $0x50] sm:$0xff]  ;;  %v19_v27 = vld [vmem:[%s6916_s0 + $0x8] sm:$0xff] }
   0x6   :  { %4046 = vmatpush1.bf16.msra.mxu0 %v4045_v9  ;;  %v94_v21 = vld [vmem:[%s6917_s1 + $0x60] sm:$0xff]  ;;  %v96_v24 = vld [vmem:[%s6917_s1 + $0x70] sm:$0xff]  ;;  %v1190_v30 = vld [vmem:[%s6918_s2 + $0x8] sm:$0xff] }
   0x7   :  { %4054 = vmatpush1.bf16.msra.mxu1 %v4053_v14  ;;  %v4049_v23 = vpack.c.bf16 %v94_v21, %v90_v20  ;;  %4048 = vmatprep.subr.bf16.mxu0 %v4047_v18  ;;  %v4057_v25 = vpack.c.bf16 %v96_v24, %v92_v22  ;;  %v18_v26 = vld [vmem:[%s6916_s0] sm:$0xff]  ;;  %v1191_v29 = vld [vmem:[%s6918_s2 + $0x10] sm:$0xff]  ;;  %v1192_v31 = vld [vmem:[%s6918_s2 + $0x18] sm:$0xff] }
   0x8   :  { %4056 = vmatprep.subr.bf16.mxu1 %v4055_v19  ;;  %v1189_v28 = vld [vmem:[%s6918_s2] sm:$0xff]  ;;  %1266 = vperm.xlu1 %4065, %v1191_v29   ;;  %v20_v32 = vld [vmem:[%s6916_s0 + $0x10] sm:$0xff]  ;;  %v1194_v34 = vld [vmem:[%s6918_s2 + $0x28] sm:$0xff] }
   0x9   :  { %1256 = vperm.xlu0 %4064, %v1189_v28   ;;  %v1193_v33 = vld [vmem:[%s6918_s2 + $0x20] sm:$0xff]  ;;  %v21_v35 = vld [vmem:[%s6916_s0 + $0x18] sm:$0xff]  ;;  %v1195_v36 = vld [vmem:[%s6918_s2 + $0x30] sm:$0xff] }
   0xa   :  { %4050 = vmatpush1.bf16.msra.mxu0 %v4049_v23  ;;  %v1196_v37 = vld [vmem:[%s6918_s2 + $0x38] sm:$0xff]  ;;  %v22_v38 = vld [vmem:[%s6916_s0 + $0x20] sm:$0xff]  ;;  %v1198_v40 = vld [vmem:[%s6918_s2 + $0x48] sm:$0xff] }
   0xb   :  { %4058 = vmatpush1.bf16.msra.mxu1 %v4057_v25  ;;  %v1197_v39 = vld [vmem:[%s6918_s2 + $0x40] sm:$0xff] }
   0xc   :  { %1271 = vperm.xlu1 %4065, %v1192_v31  }
   0xd   :  { %3915 = vmatmul.mubr.msk.f32.vlgmr.msra.gmra.mrb[0].mxu0 %vm98_vm0, %v18_v26  ;;  %1261 = vperm.xlu0 %4064, %v1190_v30  }
   0xe   :  { %3979 = vmatmul.mubr.msk.f32.vlgmr.msra.gmra.mrb[0].mxu1 %vm98_vm0, %v18_v26  ;;  %361 = vmatprep.mubr.f32.mxu0 %v6921_v7 }
   0xf   :  { %810 = vmatprep.mubr.f32.mxu1 %v6921_v7 }
  0x10   :  { %1281 = vperm.xlu1 %4065, %v1194_v34  }
  0x11   :  { %3916 = vmatmul.mubr.msk.f32.gmra.mrb[2].mxu0 %vm98_vm0, %v19_v27  ;;  %1276 = vperm.xlu0 %4064, %v1193_v33  }
  0x12   :  { %3980 = vmatmul.mubr.msk.f32.gmra.mrb[2].mxu1 %vm98_vm0, %v19_v27  ;;  %367 = vmatprep.mubr.f32.mxu0 %v6921_v7 }
  0x13   :  { %816 = vmatprep.mubr.f32.mxu1 %v6921_v7 }
  0x14   :  { %1291 = vperm.xlu1 %4065, %v1196_v37  }
  0x15   :  { %3917 = vmatmul.mubr.msk.f32.gmra.mrb[4].mxu0 %vm98_vm0, %v20_v32  ;;  %1286 = vperm.xlu0 %4064, %v1195_v36  }
  0x16   :  { %3981 = vmatmul.mubr.msk.f32.gmra.mrb[4].mxu1 %vm98_vm0, %v20_v32  ;;  %373 = vmatprep.mubr.f32.mxu0 %v6921_v7 }
  0x17   :  { %822 = vmatprep.mubr.f32.mxu1 %v6921_v7 }
  0x19   :  { %3918 = vmatmul.mubr.msk.f32.gmra.mrb[6].mxu0 %vm98_vm0, %v21_v35 }
  0x1a   :  { %3982 = vmatmul.mubr.msk.f32.gmra.mrb[6].mxu1 %vm98_vm0, %v21_v35  ;;  %379 = vmatprep.mubr.f32.mxu0 %v6921_v7 }
  0x1b   :  { %828 = vmatprep.mubr.f32.mxu1 %v6921_v7 }
  0x1d   :  { %3919 = vmatmul.mubr.msk.f32.gmra.mrb[8].mxu0 %vm98_vm0, %v22_v38 }
  0x1e   :  { %9 = vsyncpa [#allocation3], 0  ;;  %3983 = vmatmul.mubr.msk.f32.gmra.mrb[8].mxu1 %vm98_vm0, %v22_v38  ;;  %385 = vmatprep.mubr.f32.mxu0 %v6921_v7  ;;  %v23_v41 = vld [vmem:[%s6916_s0 + $0x28] sm:$0xff]  ;;  %v1199_v42 = vld [vmem:[%s6918_s2 + $0x50] sm:$0xff] }
  0x1f   :  { %834 = vmatprep.mubr.f32.mxu1 %v6921_v7  ;;  %1296 = vperm.xlu0 %4064, %v1197_v39   ;;  %v1200_v43 = vld [vmem:[%s6918_s2 + $0x58] sm:$0xff]  ;;  %v24_v44 = vld [vmem:[%s6916_s0 + $0x30] sm:$0xff]  ;;  %v1201_v45 = vld [vmem:[%s6918_s2 + $0x60] sm:$0xff] }
  0x20   :  { %1301 = vperm.xlu1 %4065, %v1198_v40   ;;  %v1202_v46 = vld [vmem:[%s6918_s2 + $0x68] sm:$0xff]  ;;  %v25_v47 = vld [vmem:[%s6916_s0 + $0x38] sm:$0xff]  ;;  %v1203_v48 = vld [vmem:[%s6918_s2 + $0x70] sm:$0xff] }
  0x21   :  { %3920 = vmatmul.mubr.msk.f32.gmra.mrb[10].mxu0 %vm98_vm0, %v23_v41  ;;  %v1204_v49 = vld [vmem:[%s6918_s2 + $0x78] sm:$0xff]  ;;  %v26_v50 = vld [vmem:[%s6916_s0 + $0x40] sm:$0xff]  ;;  %v1206_v52 = vld [vmem:[%s6918_s2 + $0x88] sm:$0xff] }
  0x22   :  { %3984 = vmatmul.mubr.msk.f32.gmra.mrb[10].mxu1 %vm98_vm0, %v23_v41  ;;  %391 = vmatprep.mubr.f32.mxu0 %v6921_v7  ;;  %v1205_v51 = vld [vmem:[%s6918_s2 + $0x80] sm:$0xff]  ;;  %v27_v53 = vld [vmem:[%s6916_s0 + $0x48] sm:$0xff]  ;;  %v1207_v54 = vld [vmem:[%s6918_s2 + $0x90] sm:$0xff] }
  0x23   :  { %840 = vmatprep.mubr.f32.mxu1 %v6921_v7  ;;  %1306 = vperm.xlu0 %4064, %v1199_v42   ;;  %v1208_v55 = vld [vmem:[%s6918_s2 + $0x98] sm:$0xff]  ;;  %v28_v56 = vld [vmem:[%s6916_s0 + $0x50] sm:$0xff]  ;;  %v1209_v57 = vld [vmem:[%s6918_s2 + $0xa0] sm:$0xff] }
  0x24   :  { %1311 = vperm.xlu1 %4065, %v1200_v43   ;;  %v1210_v58 = vld [vmem:[%s6918_s2 + $0xa8] sm:$0xff]  ;;  %v29_v59 = vld [vmem:[%s6916_s0 + $0x58] sm:$0xff]  ;;  %v1211_v60 = vld [vmem:[%s6918_s2 + $0xb0] sm:$0xff] }
  0x25   :  { %3921 = vmatmul.mubr.msk.f32.gmra.mrb[12].mxu0 %vm98_vm0, %v24_v44  ;;  %v1212_v61 = vld [vmem:[%s6918_s2 + $0xb8] sm:$0xff]  ;;  %v30_v62 = vld [vmem:[%s6916_s0 + $0x60] sm:$0xff]  ;;  %v1214_v0 = vld [vmem:[%s6918_s2 + $0xc8] sm:$0xff] }
  0x26   :  { %3985 = vmatmul.mubr.msk.f32.gmra.mrb[12].mxu1 %vm98_vm0, %v24_v44  ;;  %397 = vmatprep.mubr.f32.mxu0 %v6921_v7  ;;  %v1213_v63 = vld [vmem:[%s6918_s2 + $0xc0] sm:$0xff]  ;;  %v31_v1 = vld [vmem:[%s6916_s0 + $0x68] sm:$0xff]  ;;  %v1215_v2 = vld [vmem:[%s6918_s2 + $0xd0] sm:$0xff] }
  0x27   :  { %846 = vmatprep.mubr.f32.mxu1 %v6921_v7  ;;  %1316 = vperm.xlu0 %4064, %v1201_v45   ;;  %v1216_v3 = vld [vmem:[%s6918_s2 + $0xd8] sm:$0xff]  ;;  %v32_v4 = vld [vmem:[%s6916_s0 + $0x70] sm:$0xff]  ;;  %v1217_v5 = vld [vmem:[%s6918_s2 + $0xe0] sm:$0xff] }
  0x28   :  { %1321 = vperm.xlu1 %4065, %v1202_v46   ;;  %v1218_v6 = vld [vmem:[%s6918_s2 + $0xe8] sm:$0xff]  ;;  %v33_v8 = vld [vmem:[%s6916_s0 + $0x78] sm:$0xff]  ;;  %v1219_v9 = vld [vmem:[%s6918_s2 + $0xf0] sm:$0xff] }
  0x29   :  { %3922 = vmatmul.mubr.msk.f32.gmra.mrb[14].mxu0 %vm98_vm0, %v25_v47  ;;  %v1220_v10 = vld [vmem:[%s6918_s2 + $0xf8] sm:$0xff]  ;;  %v34_v11 = vld [vmem:[%s6916_s0 + $0x80] sm:$0xff]  ;;  %v1222_v13 = vld [vmem:[%s6918_s2 + $0x108] sm:$0xff] }
  0x2a   :  { %3986 = vmatmul.mubr.msk.f32.gmra.mrb[14].mxu1 %vm98_vm0, %v25_v47  ;;  %403 = vmatprep.mubr.f32.mxu0 %v6921_v7  ;;  %v1221_v12 = vld [vmem:[%s6918_s2 + $0x100] sm:$0xff]  ;;  %v35_v14 = vld [vmem:[%s6916_s0 + $0x88] sm:$0xff]  ;;  %v1223_v15 = vld [vmem:[%s6918_s2 + $0x110] sm:$0xff] }
  0x2b   :  { %852 = vmatprep.mubr.f32.mxu1 %v6921_v7  ;;  %1326 = vperm.xlu0 %4064, %v1203_v48   ;;  %v1224_v16 = vld [vmem:[%s6918_s2 + $0x118] sm:$0xff]  ;;  %v36_v17 = vld [vmem:[%s6916_s0 + $0x90] sm:$0xff]  ;;  %v1225_v18 = vld [vmem:[%s6918_s2 + $0x120] sm:$0xff] }
  0x2c   :  { %1331 = vperm.xlu1 %4065, %v1204_v49   ;;  %v1226_v19 = vld [vmem:[%s6918_s2 + $0x128] sm:$0xff]  ;;  %v37_v20 = vld [vmem:[%s6916_s0 + $0x98] sm:$0xff]  ;;  %v1227_v21 = vld [vmem:[%s6918_s2 + $0x130] sm:$0xff] }
  0x2d   :  { %3923 = vmatmul.mubr.msk.f32.gmra.mrb[16].mxu0 %vm98_vm0, %v26_v50  ;;  %v1228_v22 = vld [vmem:[%s6918_s2 + $0x138] sm:$0xff]  ;;  %v38_v23 = vld [vmem:[%s6916_s0 + $0xa0] sm:$0xff]  ;;  %v1230_v25 = vld [vmem:[%s6918_s2 + $0x148] sm:$0xff] }
  0x2e   :  { %3987 = vmatmul.mubr.msk.f32.gmra.mrb[16].mxu1 %vm98_vm0, %v26_v50  ;;  %409 = vmatprep.mubr.f32.mxu0 %v6921_v7  ;;  %v1229_v24 = vld [vmem:[%s6918_s2 + $0x140] sm:$0xff]  ;;  %v39_v26 = vld [vmem:[%s6916_s0 + $0xa8] sm:$0xff]  ;;  %v1231_v27 = vld [vmem:[%s6918_s2 + $0x150] sm:$0xff] }
  0x2f   :  { %858 = vmatprep.mubr.f32.mxu1 %v6921_v7  ;;  %1336 = vperm.xlu0 %4064, %v1205_v51   ;;  %v1232_v28 = vld [vmem:[%s6918_s2 + $0x158] sm:$0xff]  ;;  %v40_v29 = vld [vmem:[%s6916_s0 + $0xb0] sm:$0xff]  ;;  %v1233_v30 = vld [vmem:[%s6918_s2 + $0x160] sm:$0xff] }
  0x30   :  { %1341 = vperm.xlu1 %4065, %v1206_v52   ;;  %v1234_v31 = vld [vmem:[%s6918_s2 + $0x168] sm:$0xff]  ;;  %v41_v32 = vld [vmem:[%s6916_s0 + $0xb8] sm:$0xff]  ;;  %v1235_v33 = vld [vmem:[%s6918_s2 + $0x170] sm:$0xff] }
  0x31   :  { %3924 = vmatmul.mubr.msk.f32.gmra.mrb[18].mxu0 %vm98_vm0, %v27_v53  ;;  %v1236_v34 = vld [vmem:[%s6918_s2 + $0x178] sm:$0xff]  ;;  %v42_v35 = vld [vmem:[%s6916_s0 + $0xc0] sm:$0xff]  ;;  %v1238_v37 = vld [vmem:[%s6918_s2 + $0x188] sm:$0xff] }
  0x32   :  { %3988 = vmatmul.mubr.msk.f32.gmra.mrb[18].mxu1 %vm98_vm0, %v27_v53  ;;  %415 = vmatprep.mubr.f32.mxu0 %v6921_v7  ;;  %v1237_v36 = vld [vmem:[%s6918_s2 + $0x180] sm:$0xff]  ;;  %v43_v38 = vld [vmem:[%s6916_s0 + $0xc8] sm:$0xff]  ;;  %v1239_v39 = vld [vmem:[%s6918_s2 + $0x190] sm:$0xff] }
  0x33   :  { %864 = vmatprep.mubr.f32.mxu1 %v6921_v7  ;;  %1346 = vperm.xlu0 %4064, %v1207_v54   ;;  %v1240_v40 = vld [vmem:[%s6918_s2 + $0x198] sm:$0xff]  ;;  %v44_v41 = vld [vmem:[%s6916_s0 + $0xd0] sm:$0xff]  ;;  %v1241_v42 = vld [vmem:[%s6918_s2 + $0x1a0] sm:$0xff] }
  0x34   :  { %1351 = vperm.xlu1 %4065, %v1208_v55   ;;  %v1242_v43 = vld [vmem:[%s6918_s2 + $0x1a8] sm:$0xff]  ;;  %v45_v44 = vld [vmem:[%s6916_s0 + $0xd8] sm:$0xff]  ;;  %v1243_v45 = vld [vmem:[%s6918_s2 + $0x1b0] sm:$0xff] }
  0x35   :  { %3925 = vmatmul.mubr.msk.f32.gmra.mrb[20].mxu0 %vm98_vm0, %v28_v56  ;;  %v1244_v46 = vld [vmem:[%s6918_s2 + $0x1b8] sm:$0xff]  ;;  %v46_v47 = vld [vmem:[%s6916_s0 + $0xe0] sm:$0xff]  ;;  %v1246_v49 = vld [vmem:[%s6918_s2 + $0x1c8] sm:$0xff] }
  0x36   :  { %3989 = vmatmul.mubr.msk.f32.gmra.mrb[20].mxu1 %vm98_vm0, %v28_v56  ;;  %421 = vmatprep.mubr.f32.mxu0 %v6921_v7  ;;  %v1245_v48 = vld [vmem:[%s6918_s2 + $0x1c0] sm:$0xff]  ;;  %v47_v50 = vld [vmem:[%s6916_s0 + $0xe8] sm:$0xff]  ;;  %v1247_v51 = vld [vmem:[%s6918_s2 + $0x1d0] sm:$0xff] }
  0x37   :  { %870 = vmatprep.mubr.f32.mxu1 %v6921_v7  ;;  %1356 = vperm.xlu0 %4064, %v1209_v57   ;;  %v1248_v52 = vld [vmem:[%s6918_s2 + $0x1d8] sm:$0xff]  ;;  %v48_v53 = vld [vmem:[%s6916_s0 + $0xf0] sm:$0xff]  ;;  %v1249_v54 = vld [vmem:[%s6918_s2 + $0x1e0] sm:$0xff] }
  0x38   :  { %1361 = vperm.xlu1 %4065, %v1210_v58   ;;  %v1250_v55 = vld [vmem:[%s6918_s2 + $0x1e8] sm:$0xff]  ;;  %v49_v56 = vld [vmem:[%s6916_s0 + $0xf8] sm:$0xff]  ;;  %v1251_v57 = vld [vmem:[%s6918_s2 + $0x1f0] sm:$0xff] }
  0x39   :  { %3926 = vmatmul.mubr.msk.f32.gmra.mrb[22].mxu0 %vm98_vm0, %v29_v59  ;;  %v1252_v58 = vld [vmem:[%s6918_s2 + $0x1f8] sm:$0xff] }
  0x3a   :  { %3990 = vmatmul.mubr.msk.f32.gmra.mrb[22].mxu1 %vm98_vm0, %v29_v59  ;;  %427 = vmatprep.mubr.f32.mxu0 %v6921_v7  ;;  %v50_v59 = vld [vmem:[%s6916_s0 + $0x100] sm:$0xff] }
  0x3b   :  { %876 = vmatprep.mubr.f32.mxu1 %v6921_v7  ;;  %1366 = vperm.xlu0 %4064, %v1211_v60   ;;  %v51_v60 = vld [vmem:[%s6916_s0 + $0x108] sm:$0xff] }
  0x3c   :  { %1371 = vperm.xlu1 %4065, %v1212_v61   ;;  %v52_v61 = vld [vmem:[%s6916_s0 + $0x110] sm:$0xff] }
  0x3d   :  { %3927 = vmatmul.mubr.msk.f32.gmra.mrb[24].mxu0 %vm98_vm0, %v30_v62 }
  0x3e   :  { %3991 = vmatmul.mubr.msk.f32.gmra.mrb[24].mxu1 %vm98_vm0, %v30_v62  ;;  %433 = vmatprep.mubr.f32.mxu0 %v6921_v7  ;;  %v53_v62 = vld [vmem:[%s6916_s0 + $0x118] sm:$0xff] }
  0x3f   :  { %882 = vmatprep.mubr.f32.mxu1 %v6921_v7  ;;  %1376 = vperm.xlu0 %4064, %v1213_v63   ;;  %v54_v63 = vld [vmem:[%s6916_s0 + $0x120] sm:$0xff] }
  0x40   :  { %1381 = vperm.xlu1 %4065, %v1214_v0   ;;  %v55_v0 = vld [vmem:[%s6916_s0 + $0x128] sm:$0xff] }
  0x41   :  { %3928 = vmatmul.mubr.msk.f32.gmra.mrb[26].mxu0 %vm98_vm0, %v31_v1 }
  0x42   :  { %3992 = vmatmul.mubr.msk.f32.gmra.mrb[26].mxu1 %vm98_vm0, %v31_v1  ;;  %439 = vmatprep.mubr.f32.mxu0 %v6921_v7  ;;  %v56_v1 = vld [vmem:[%s6916_s0 + $0x130] sm:$0xff] }
  0x43   :  { %888 = vmatprep.mubr.f32.mxu1 %v6921_v7  ;;  %1386 = vperm.xlu0 %4064, %v1215_v2   ;;  %v57_v2 = vld [vmem:[%s6916_s0 + $0x138] sm:$0xff] }
  0x44   :  { %1391 = vperm.xlu1 %4065, %v1216_v3   ;;  %v58_v3 = vld [vmem:[%s6916_s0 + $0x140] sm:$0xff] }
  0x45   :  { %3929 = vmatmul.mubr.msk.f32.gmra.mrb[28].mxu0 %vm98_vm0, %v32_v4 }
  0x46   :  { %3993 = vmatmul.mubr.msk.f32.gmra.mrb[28].mxu1 %vm98_vm0, %v32_v4  ;;  %445 = vmatprep.mubr.f32.mxu0 %v6921_v7 }
  0x47   :  { %894 = vmatprep.mubr.f32.mxu1 %v6921_v7  ;;  %1396 = vperm.xlu0 %4064, %v1217_v5  }
  0x48   :  { %1401 = vperm.xlu1 %4065, %v1218_v6   ;;  %v59_v6 = vld [vmem:[%s6916_s0 + $0x148] sm:$0xff] }
  0x49   :  { %3930 = vmatmul.mubr.msk.f32.gmra.mrb[30].mxu0 %vm98_vm0, %v33_v8 }
  0x4a   :  { %3994 = vmatmul.mubr.msk.f32.gmra.mrb[30].mxu1 %vm98_vm0, %v33_v8  ;;  %451 = vmatprep.mubr.f32.mxu0 %v6921_v7  ;;  %v60_v8 = vld [vmem:[%s6916_s0 + $0x150] sm:$0xff] }
  0x4b   :  { %900 = vmatprep.mubr.f32.mxu1 %v6921_v7  ;;  %1406 = vperm.xlu0 %4064, %v1219_v9  }
  0x4c   :  { %1411 = vperm.xlu1 %4065, %v1220_v10  }
  0x4d   :  { %3931 = vmatmul.mubr.msk.f32.gmra.mrb[32].mxu0 %vm98_vm0, %v34_v11 }
  0x4e   :  { %3995 = vmatmul.mubr.msk.f32.gmra.mrb[32].mxu1 %vm98_vm0, %v34_v11  ;;  %457 = vmatprep.mubr.f32.mxu0 %v6921_v7  ;;  %v61_v11 = vld [vmem:[%s6916_s0 + $0x158] sm:$0xff] }
  0x4f   :  { %906 = vmatprep.mubr.f32.mxu1 %v6921_v7  ;;  %1416 = vperm.xlu0 %4064, %v1221_v12  }
  0x50   :  { %1421 = vperm.xlu1 %4065, %v1222_v13  }
  0x51   :  { %3932 = vmatmul.mubr.msk.f32.gmra.mrb[34].mxu0 %vm98_vm0, %v35_v14 }
  0x52   :  { %3996 = vmatmul.mubr.msk.f32.gmra.mrb[34].mxu1 %vm98_vm0, %v35_v14  ;;  %463 = vmatprep.mubr.f32.mxu0 %v6921_v7  ;;  %v62_v14 = vld [vmem:[%s6916_s0 + $0x160] sm:$0xff] }
  0x53   :  { %912 = vmatprep.mubr.f32.mxu1 %v6921_v7  ;;  %1426 = vperm.xlu0 %4064, %v1223_v15  }
  0x54   :  { %1431 = vperm.xlu1 %4065, %v1224_v16   ;;  %v63_v16 = vld [vmem:[%s6916_s0 + $0x168] sm:$0xff] }
  0x55   :  { %3933 = vmatmul.mubr.msk.f32.gmra.mrb[36].mxu0 %vm98_vm0, %v36_v17 }
  0x56   :  { %3997 = vmatmul.mubr.msk.f32.gmra.mrb[36].mxu1 %vm98_vm0, %v36_v17  ;;  %469 = vmatprep.mubr.f32.mxu0 %v6921_v7  ;;  %v1575_v17 = vlaneseq }
  0x57   :  { %918 = vmatprep.mubr.f32.mxu1 %v6921_v7  ;;  %1436 = vperm.xlu0 %4064, %v1225_v18  }
  0x58   :  { %1441 = vperm.xlu1 %4065, %v1226_v19   ;;  %v64_v19 = vld [vmem:[%s6916_s0 + $0x170] sm:$0xff] }
  0x59   :  { %3934 = vmatmul.mubr.msk.f32.gmra.mrb[38].mxu0 %vm98_vm0, %v37_v20 }
  0x5a   :  { %3998 = vmatmul.mubr.msk.f32.gmra.mrb[38].mxu1 %vm98_vm0, %v37_v20  ;;  %475 = vmatprep.mubr.f32.mxu0 %v6921_v7  ;;  %v1576_v20 = vshrl.u32 %v1575_v17, 7 }
  0x5b   :  { %924 = vmatprep.mubr.f32.mxu1 %v6921_v7  ;;  %1446 = vperm.xlu0 %4064, %v1227_v21  }
  0x5c   :  { %1451 = vperm.xlu1 %4065, %v1228_v22  }
  0x5d   :  { %3935 = vmatmul.mubr.msk.f32.gmra.mrb[40].mxu0 %vm98_vm0, %v38_v23 }
  0x5e   :  { %3999 = vmatmul.mubr.msk.f32.gmra.mrb[40].mxu1 %vm98_vm0, %v38_v23  ;;  %481 = vmatprep.mubr.f32.mxu0 %v6921_v7  ;;  %v65_v23 = vld [vmem:[%s6916_s0 + $0x178] sm:$0xff] }
  0x5f   :  { %930 = vmatprep.mubr.f32.mxu1 %v6921_v7  ;;  %1456 = vperm.xlu0 %4064, %v1229_v24   ;;  %v1577_v24 = vsub.s32 0, %v1576_v20 }
  0x60   :  { %1461 = vperm.xlu1 %4065, %v1230_v25   ;;  %v1253_v25 = vld [vmem:[%s6919_s3] sm:$0xf] }
  0x61   :  { %3936 = vmatmul.mubr.msk.f32.gmra.mrb[42].mxu0 %vm98_vm0, %v39_v26 }
  0x62   :  { %4000 = vmatmul.mubr.msk.f32.gmra.mrb[42].mxu1 %vm98_vm0, %v39_v26  ;;  %487 = vmatprep.mubr.f32.mxu0 %v6921_v7  ;;  %v1585_v26 = vsub.s32 2, %v1576_v20 }
  0x63   :  { %936 = vmatprep.mubr.f32.mxu1 %v6921_v7  ;;  %1466 = vperm.xlu0 %4064, %v1231_v27   ;;  %v1581_v27 = vsub.s32 1, %v1576_v20 }
  0x64   :  { %1471 = vperm.xlu1 %4065, %v1232_v28   ;;  %v1589_v28 = vsub.s32 3, %v1576_v20 }
  0x65   :  { %3937 = vmatmul.mubr.msk.f32.gmra.mrb[44].mxu0 %vm98_vm0, %v40_v29 }
  0x66   :  { %4001 = vmatmul.mubr.msk.f32.gmra.mrb[44].mxu1 %vm98_vm0, %v40_v29  ;;  %493 = vmatprep.mubr.f32.mxu0 %v6921_v7 }
  0x67   :  { %942 = vmatprep.mubr.f32.mxu1 %v6921_v7  ;;  %1476 = vperm.xlu0 %4064, %v1233_v30   ;;  %v66_v30 = vld [vmem:[%s6916_s0 + $0x180] sm:$0xff] }
  0x68   :  { %1481 = vperm.xlu1 %4065, %v1234_v31   ;;  %v5237_v31 = vrot.slane %v1253_v25, %v1577_v24 }
  0x69   :  { %3938 = vmatmul.mubr.msk.f32.gmra.mrb[46].mxu0 %vm98_vm0, %v41_v32 }
  0x6a   :  { %4002 = vmatmul.mubr.msk.f32.gmra.mrb[46].mxu1 %vm98_vm0, %v41_v32  ;;  %499 = vmatprep.mubr.f32.mxu0 %v6921_v7  ;;  %6953 = vst [vmem:[#allocation5_spill] sm:$0xff] %v5237_v31  ;;  %v5240_v32 = vrot.slane %v1253_v25, %v1585_v26 }
  0x6b   :  { %948 = vmatprep.mubr.f32.mxu1 %v6921_v7  ;;  %1486 = vperm.xlu0 %4064, %v1235_v33   ;;  %v5242_v33 = vrot.slane %v1253_v25, %v1581_v27 }
  0x6c   :  { %1491 = vperm.xlu1 %4065, %v1236_v34   ;;  %6954 = vst [vmem:[#allocation6_spill] sm:$0xff] %v5240_v32  ;;  %v5244_v34 = vrot.slane %v1253_v25, %v1589_v28 }
  0x6d   :  { %3939 = vmatmul.mubr.msk.f32.gmra.mrb[48].mxu0 %vm98_vm0, %v42_v35  ;;  %6955 = vst [vmem:[#allocation7_spill] sm:$0xff] %v5242_v33 }
  0x6e   :  { %4003 = vmatmul.mubr.msk.f32.gmra.mrb[48].mxu1 %vm98_vm0, %v42_v35  ;;  %505 = vmatprep.mubr.f32.mxu0 %v6921_v7  ;;  %6956 = vst [vmem:[#allocation8_spill] sm:$0xff] %v5244_v34 }
  0x6f   :  { %954 = vmatprep.mubr.f32.mxu1 %v6921_v7  ;;  %1496 = vperm.xlu0 %4064, %v1237_v36   ;;  %v67_v36 = vld [vmem:[%s6916_s0 + $0x188] sm:$0xff] }
  0x70   :  { %1501 = vperm.xlu1 %4065, %v1238_v37  }
  0x71   :  { %3940 = vmatmul.mubr.msk.f32.gmra.mrb[50].mxu0 %vm98_vm0, %v43_v38 }
  0x72   :  { %4004 = vmatmul.mubr.msk.f32.gmra.mrb[50].mxu1 %vm98_vm0, %v43_v38  ;;  %511 = vmatprep.mubr.f32.mxu0 %v6921_v7 }
  0x73   :  { %960 = vmatprep.mubr.f32.mxu1 %v6921_v7  ;;  %1506 = vperm.xlu0 %4064, %v1239_v39  }
  0x74   :  { %1511 = vperm.xlu1 %4065, %v1240_v40  }
  0x75   :  { %3941 = vmatmul.mubr.msk.f32.gmra.mrb[52].mxu0 %vm98_vm0, %v44_v41 }
  0x76   :  { %4005 = vmatmul.mubr.msk.f32.gmra.mrb[52].mxu1 %vm98_vm0, %v44_v41  ;;  %517 = vmatprep.mubr.f32.mxu0 %v6921_v7 }
  0x77   :  { %966 = vmatprep.mubr.f32.mxu1 %v6921_v7  ;;  %1516 = vperm.xlu0 %4064, %v1241_v42  }
  0x78   :  { %1521 = vperm.xlu1 %4065, %v1242_v43  }
  0x79   :  { %3942 = vmatmul.mubr.msk.f32.gmra.mrb[54].mxu0 %vm98_vm0, %v45_v44 }
  0x7a   :  { %4006 = vmatmul.mubr.msk.f32.gmra.mrb[54].mxu1 %vm98_vm0, %v45_v44  ;;  %523 = vmatprep.mubr.f32.mxu0 %v6921_v7 }
  0x7b   :  { %972 = vmatprep.mubr.f32.mxu1 %v6921_v7  ;;  %1526 = vperm.xlu0 %4064, %v1243_v45  }
  0x7c   :  { %1531 = vperm.xlu1 %4065, %v1244_v46  }
  0x7d   :  { %3943 = vmatmul.mubr.msk.f32.gmra.mrb[56].mxu0 %vm98_vm0, %v46_v47 }
  0x7e   :  { %4007 = vmatmul.mubr.msk.f32.gmra.mrb[56].mxu1 %vm98_vm0, %v46_v47  ;;  %529 = vmatprep.mubr.f32.mxu0 %v6921_v7 }
  0x7f   :  { %978 = vmatprep.mubr.f32.mxu1 %v6921_v7  ;;  %1536 = vperm.xlu0 %4064, %v1245_v48  }
  0x80   :  { %1541 = vperm.xlu1 %4065, %v1246_v49  }
  0x81   :  { %3944 = vmatmul.mubr.msk.f32.gmra.mrb[58].mxu0 %vm98_vm0, %v47_v50 }
  0x82   :  { %4008 = vmatmul.mubr.msk.f32.gmra.mrb[58].mxu1 %vm98_vm0, %v47_v50  ;;  %535 = vmatprep.mubr.f32.mxu0 %v6921_v7 }
  0x83   :  { %984 = vmatprep.mubr.f32.mxu1 %v6921_v7  ;;  %1546 = vperm.xlu0 %4064, %v1247_v51  }
  0x84   :  { %1551 = vperm.xlu1 %4065, %v1248_v52   ;;  %v68_v52 = vld [vmem:[%s6916_s0 + $0x190] sm:$0xff] }
  0x85   :  { %3945 = vmatmul.mubr.msk.f32.gmra.mrb[60].mxu0 %vm98_vm0, %v48_v53 }
  0x86   :  { %4009 = vmatmul.mubr.msk.f32.gmra.mrb[60].mxu1 %vm98_vm0, %v48_v53  ;;  %541 = vmatprep.mubr.f32.mxu0 %v6921_v7 }
  0x87   :  { %990 = vmatprep.mubr.f32.mxu1 %v6921_v7  ;;  %1556 = vperm.xlu0 %4064, %v1249_v54   ;;  %v5160_v5 = vpop.permute.xlu1 %1266 }
  0x88   :  { %1561 = vperm.xlu1 %4065, %v1250_v55   ;;  %v5157_v4 = vpop.permute.xlu0 %1256  ;;  %v5275_v42 = vadd.f32 %v5237_v31, %v5160_v5  ;;  %v5283_v44 = vadd.f32 %v5240_v32, %v5160_v5  ;;  %v5287_v45 = vadd.f32 %v5242_v33, %v5160_v5  ;;  %v5291_v46 = vadd.f32 %v5244_v34, %v5160_v5  ;;  %v69_v5 = vld [vmem:[%s6916_s0 + $0x198] sm:$0xff] }
  0x89   :  { %3946 = vmatmul.mubr.msk.f32.gmra.mrb[62].mxu0 %vm98_vm0, %v49_v56  ;;  %v5256_v37 = vadd.f32 %v5237_v31, %v5157_v4  ;;  %v5263_v39 = vadd.f32 %v5240_v32, %v5157_v4  ;;  %v5267_v40 = vadd.f32 %v5242_v33, %v5157_v4  ;;  %v5271_v41 = vadd.f32 %v5244_v34, %v5157_v4 }
  0x8a   :  { %4010 = vmatmul.mubr.msk.f32.gmra.mrb[62].mxu1 %vm98_vm0, %v49_v56  ;;  %547 = vmatprep.mubr.f32.mxu0 %v6921_v7 }
  0x8b   :  { %996 = vmatprep.mubr.f32.mxu1 %v6921_v7  ;;  %1566 = vperm.xlu0 %4064, %v1251_v57   ;;  %v5177_v10 = vpop.permute.xlu1 %1271 }
  0x8c   :  { %1571 = vperm.xlu1 %4065, %v1252_v58   ;;  %v5174_v9 = vpop.permute.xlu0 %1261  ;;  %v5308_v50 = vadd.f32 %v5237_v31, %v5177_v10  ;;  %v5317_v53 = vadd.f32 %v5240_v32, %v5177_v10  ;;  %v5321_v54 = vadd.f32 %v5242_v33, %v5177_v10  ;;  %v5325_v55 = vadd.f32 %v5244_v34, %v5177_v10 }
  0x8d   :  { %3947 = vmatmul.mubr.msk.f32.gmra.mrb[64].mxu0 %vm98_vm0, %v50_v59  ;;  %v5279_v43 = vadd.f32 %v5237_v31, %v5174_v9  ;;  %v5296_v47 = vadd.f32 %v5240_v32, %v5174_v9  ;;  %v5300_v48 = vadd.f32 %v5242_v33, %v5174_v9  ;;  %v5304_v49 = vadd.f32 %v5244_v34, %v5174_v9 }
  0x8e   :  { %4011 = vmatmul.mubr.msk.f32.gmra.mrb[64].mxu1 %vm98_vm0, %v50_v59  ;;  %553 = vmatprep.mubr.f32.mxu0 %v6921_v7 }
  0x8f   :  { %1002 = vmatprep.mubr.f32.mxu1 %v6921_v7  ;;  %v5189_v13 = vpop.permute.xlu1 %1281 }
  0x90   :  { %v5185_v12 = vpop.permute.xlu0 %1276 }
  0x91   :  { %3948 = vmatmul.mubr.msk.f32.gmra.mrb[66].mxu0 %vm98_vm0, %v51_v60  ;;  %v5330_v56 = vadd.f32 %v5237_v31, %v5185_v12  ;;  %v5334_v57 = vadd.f32 %v5240_v32, %v5185_v12  ;;  %v5338_v58 = vadd.f32 %v5242_v33, %v5185_v12  ;;  %v5342_v59 = vadd.f32 %v5244_v34, %v5185_v12 }
  0x92   :  { %4012 = vmatmul.mubr.msk.f32.gmra.mrb[66].mxu1 %vm98_vm0, %v51_v60  ;;  %559 = vmatprep.mubr.f32.mxu0 %v6921_v7  ;;  %v5346_v60 = vadd.f32 %v5237_v31, %v5189_v13 }
  0x93   :  { %1008 = vmatprep.mubr.f32.mxu1 %v6921_v7  ;;  %v5206_v18 = vpop.permute.xlu1 %1291 }
  0x94   :  { %v5197_v15 = vpop.permute.xlu0 %1286  ;;  %v5392_v9 = vadd.f32 %v5242_v33, %v5206_v18  ;;  %v5397_v10 = vadd.f32 %v5244_v34, %v5206_v18 }
  0x95   :  { %3949 = vmatmul.mubr.msk.f32.gmra.mrb[68].mxu0 %vm98_vm0, %v52_v61  ;;  %v5375_v4 = vadd.f32 %v5244_v34, %v5197_v15 }
  0x96   :  { %4013 = vmatmul.mubr.msk.f32.gmra.mrb[68].mxu1 %vm98_vm0, %v52_v61  ;;  %565 = vmatprep.mubr.f32.mxu0 %v6921_v7  ;;  %v5350_v61 = vadd.f32 %v5240_v32, %v5189_v13 }
  0x97   :  { %1014 = vmatprep.mubr.f32.mxu1 %v6921_v7 }
  0x99   :  { %3950 = vmatmul.mubr.msk.f32.gmra.mrb[70].mxu0 %vm98_vm0, %v53_v62 }
  0x9a   :  { %4014 = vmatmul.mubr.msk.f32.gmra.mrb[70].mxu1 %vm98_vm0, %v53_v62  ;;  %571 = vmatprep.mubr.f32.mxu0 %v6921_v7  ;;  %v5354_v62 = vadd.f32 %v5242_v33, %v5189_v13 }
  0x9b   :  { %1020 = vmatprep.mubr.f32.mxu1 %v6921_v7 }
  0x9d   :  { %3951 = vmatmul.mubr.msk.f32.gmra.mrb[72].mxu0 %vm98_vm0, %v54_v63 }
  0x9e   :  { %4015 = vmatmul.mubr.msk.f32.gmra.mrb[72].mxu1 %vm98_vm0, %v54_v63  ;;  %577 = vmatprep.mubr.f32.mxu0 %v6921_v7  ;;  %v5214_v21 = vpop.permute.xlu0 %1296  ;;  %v5358_v63 = vadd.f32 %v5244_v34, %v5189_v13 }
  0x9f   :  { %1026 = vmatprep.mubr.f32.mxu1 %v6921_v7  ;;  %v5218_v22 = vpop.permute.xlu1 %1301  ;;  %v5405_v12 = vadd.f32 %v5240_v32, %v5214_v21 }
  0xa0   :  { %v5421_v17 = vadd.f32 %v5240_v32, %v5218_v22 }
  0xa1   :  { %3952 = vmatmul.mubr.msk.f32.gmra.mrb[74].mxu0 %vm98_vm0, %v55_v0 }
  0xa2   :  { %4016 = vmatmul.mubr.msk.f32.gmra.mrb[74].mxu1 %vm98_vm0, %v55_v0  ;;  %583 = vmatprep.mubr.f32.mxu0 %v6921_v7  ;;  %v5229_v29 = vpop.permute.xlu0 %1306 }
  0xa3   :  { %1032 = vmatprep.mubr.f32.mxu1 %v6921_v7  ;;  %v5246_v35 = vpop.permute.xlu1 %1311  ;;  %v5434_v20 = vadd.f32 %v5237_v31, %v5229_v29  ;;  %v5451_v25 = vadd.f32 %v5244_v34, %v5229_v29 }
  0xa4   :  { %v5455_v26 = vadd.f32 %v5237_v31, %v5246_v35  ;;  %v5459_v27 = vadd.f32 %v5240_v32, %v5246_v35  ;;  %v5464_v28 = vadd.f32 %v5242_v33, %v5246_v35 }
  0xa5   :  { %3953 = vmatmul.mubr.msk.f32.gmra.mrb[76].mxu0 %vm98_vm0, %v56_v1  ;;  %6957 = vst [vmem:[#allocation9_spill] sm:$0xff] %v5451_v25 }
  0xa6   :  { %4017 = vmatmul.mubr.msk.f32.gmra.mrb[76].mxu1 %vm98_vm0, %v56_v1  ;;  %589 = vmatprep.mubr.f32.mxu0 %v6921_v7  ;;  %v5258_v38 = vpop.permute.xlu0 %1316  ;;  %v5363_v1 = vadd.f32 %v5237_v31, %v5197_v15  ;;  %6958 = vst [vmem:[#allocation10_spill] sm:$0xff] %v5455_v26  ;;  %6959 = vst [vmem:[#allocation11_spill] sm:$0xff] %v5459_v27 }
  0xa7   :  { %1038 = vmatprep.mubr.f32.mxu1 %v6921_v7  ;;  %v1322_v51 = vpop.permute.xlu1 %1321  ;;  %6960 = vst [vmem:[#allocation12_spill] sm:$0xff] %v5464_v28 }
  0xa9   :  { %3954 = vmatmul.mubr.msk.f32.gmra.mrb[78].mxu0 %vm98_vm0, %v57_v2 }
  0xaa   :  { %4018 = vmatmul.mubr.msk.f32.gmra.mrb[78].mxu1 %vm98_vm0, %v57_v2  ;;  %595 = vmatprep.mubr.f32.mxu0 %v6921_v7  ;;  %v1327_v0 = vpop.permute.xlu0 %1326  ;;  %v5367_v2 = vadd.f32 %v5240_v32, %v5197_v15 }
  0xab   :  { %1044 = vmatprep.mubr.f32.mxu1 %v6921_v7  ;;  %v1332_v13 = vpop.permute.xlu1 %1331 }
  0xad   :  { %3955 = vmatmul.mubr.msk.f32.gmra.mrb[80].mxu0 %vm98_vm0, %v58_v3 }
  0xae   :  { %4019 = vmatmul.mubr.msk.f32.gmra.mrb[80].mxu1 %vm98_vm0, %v58_v3  ;;  %601 = vmatprep.mubr.f32.mxu0 %v6921_v7  ;;  %v5371_v3 = vadd.f32 %v5242_v33, %v5197_v15  ;;  %v5413_v15 = vadd.f32 %v5244_v34, %v5214_v21  ;;  %v1337_v24 = vpop.permute.xlu0 %1336 }
  0xaf   :  { %1050 = vmatprep.mubr.f32.mxu1 %v6921_v7  ;;  %v5539_v28 = vadd.f32 %v5244_v34, %v1337_v24 }
  0xb1   :  { %3956 = vmatmul.mubr.msk.f32.gmra.mrb[82].mxu0 %vm98_vm0, %v59_v6  ;;  %6982 = vst [vmem:[#allocation33_spill] sm:$0xff] %v5539_v28 }
  0xb2   :  { %4020 = vmatmul.mubr.msk.f32.gmra.mrb[82].mxu1 %vm98_vm0, %v59_v6  ;;  %607 = vmatprep.mubr.f32.mxu0 %v6921_v7  ;;  %v5384_v6 = vadd.f32 %v5237_v31, %v5206_v18 }
  0xb3   :  { %1056 = vmatprep.mubr.f32.mxu1 %v6921_v7 }
  0xb5   :  { %3957 = vmatmul.mubr.msk.f32.gmra.mrb[84].mxu0 %vm98_vm0, %v60_v8 }
  0xb6   :  { %4021 = vmatmul.mubr.msk.f32.gmra.mrb[84].mxu1 %vm98_vm0, %v60_v8  ;;  %613 = vmatprep.mubr.f32.mxu0 %v6921_v7  ;;  %v5388_v8 = vadd.f32 %v5240_v32, %v5206_v18  ;;  %v5425_v18 = vadd.f32 %v5242_v33, %v5218_v22 }
  0xb7   :  { %1062 = vmatprep.mubr.f32.mxu1 %v6921_v7 }
  0xb9   :  { %3958 = vmatmul.mubr.msk.f32.gmra.mrb[86].mxu0 %vm98_vm0, %v61_v11 }
  0xba   :  { %4022 = vmatmul.mubr.msk.f32.gmra.mrb[86].mxu1 %vm98_vm0, %v61_v11  ;;  %619 = vmatprep.mubr.f32.mxu0 %v6921_v7  ;;  %v5401_v11 = vadd.f32 %v5237_v31, %v5214_v21 }
  0xbb   :  { %1068 = vmatprep.mubr.f32.mxu1 %v6921_v7 }
  0xbd   :  { %3959 = vmatmul.mubr.msk.f32.gmra.mrb[88].mxu0 %vm98_vm0, %v62_v14 }
  0xbe   :  { %4023 = vmatmul.mubr.msk.f32.gmra.mrb[88].mxu1 %vm98_vm0, %v62_v14  ;;  %625 = vmatprep.mubr.f32.mxu0 %v6921_v7  ;;  %v5409_v14 = vadd.f32 %v5242_v33, %v5214_v21  ;;  %v5438_v21 = vadd.f32 %v5240_v32, %v5229_v29 }
  0xbf   :  { %1074 = vmatprep.mubr.f32.mxu1 %v6921_v7 }
  0xc1   :  { %3960 = vmatmul.mubr.msk.f32.gmra.mrb[90].mxu0 %vm98_vm0, %v63_v16 }
  0xc2   :  { %4024 = vmatmul.mubr.msk.f32.gmra.mrb[90].mxu1 %vm98_vm0, %v63_v16  ;;  %631 = vmatprep.mubr.f32.mxu0 %v6921_v7  ;;  %v5417_v16 = vadd.f32 %v5237_v31, %v5218_v22 }
  0xc3   :  { %1080 = vmatprep.mubr.f32.mxu1 %v6921_v7 }
  0xc5   :  { %3961 = vmatmul.mubr.msk.f32.gmra.mrb[92].mxu0 %vm98_vm0, %v64_v19 }
  0xc6   :  { %4025 = vmatmul.mubr.msk.f32.gmra.mrb[92].mxu1 %vm98_vm0, %v64_v19  ;;  %637 = vmatprep.mubr.f32.mxu0 %v6921_v7  ;;  %v5430_v19 = vadd.f32 %v5244_v34, %v5218_v22  ;;  %v70_v22 = vld [vmem:[%s6916_s0 + $0x1a0] sm:$0xff] }
  0xc7   :  { %1086 = vmatprep.mubr.f32.mxu1 %v6921_v7 }
  0xc9   :  { %3962 = vmatmul.mubr.msk.f32.gmra.mrb[94].mxu0 %vm98_vm0, %v65_v23 }
  0xca   :  { %4026 = vmatmul.mubr.msk.f32.gmra.mrb[94].mxu1 %vm98_vm0, %v65_v23  ;;  %643 = vmatprep.mubr.f32.mxu0 %v6921_v7  ;;  %v5442_v23 = vadd.f32 %v5242_v33, %v5229_v29  ;;  %v5472_v29 = vadd.f32 %v5237_v31, %v5258_v38 }
  0xcb   :  { %1092 = vmatprep.mubr.f32.mxu1 %v6921_v7 }
  0xcc   :  { %6962 = vst [vmem:[#allocation14_spill] sm:$0xff] %v5472_v29  ;;  %v1342_v29 = vpop.permute.xlu1 %1341 }
  0xcd   :  { %3963 = vmatmul.mubr.msk.f32.gmra.mrb[96].mxu0 %vm98_vm0, %v66_v30  ;;  %v5549_v27 = vadd.f32 %v5242_v33, %v1342_v29 }
  0xce   :  { %4027 = vmatmul.mubr.msk.f32.gmra.mrb[96].mxu1 %vm98_vm0, %v66_v30  ;;  %649 = vmatprep.mubr.f32.mxu0 %v6921_v7  ;;  %v5468_v30 = vadd.f32 %v5244_v34, %v5246_v35  ;;  %v5490_v35 = vadd.f32 %v5240_v32, %v1322_v51 }
  0xcf   :  { %1098 = vmatprep.mubr.f32.mxu1 %v6921_v7  ;;  %6985 = vst [vmem:[#allocation36_spill] sm:$0xff] %v5549_v27 }
  0xd0   :  { %6961 = vst [vmem:[#allocation13_spill] sm:$0xff] %v5468_v30  ;;  %6967 = vst [vmem:[#allocation19_spill] sm:$0xff] %v5490_v35  ;;  %v5494_v30 = vadd.f32 %v5242_v33, %v1322_v51  ;;  %v71_v35 = vld [vmem:[%s6916_s0 + $0x1a8] sm:$0xff] }
  0xd1   :  { %3964 = vmatmul.mubr.msk.f32.gmra.mrb[98].mxu0 %vm98_vm0, %v67_v36 }
  0xd2   :  { %4028 = vmatmul.mubr.msk.f32.gmra.mrb[98].mxu1 %vm98_vm0, %v67_v36  ;;  %655 = vmatprep.mubr.f32.mxu0 %v6921_v7  ;;  %v5476_v36 = vadd.f32 %v5240_v32, %v5258_v38  ;;  %6968 = vst [vmem:[#allocation20_spill] sm:$0xff] %v5494_v30  ;;  %v5530_v30 = vadd.f32 %v5237_v31, %v1337_v24 }
  0xd3   :  { %1104 = vmatprep.mubr.f32.mxu1 %v6921_v7 }
  0xd4   :  { %6963 = vst [vmem:[#allocation15_spill] sm:$0xff] %v5476_v36  ;;  %v5497_v36 = vadd.f32 %v5244_v34, %v1322_v51  ;;  %6979 = vst [vmem:[#allocation30_spill] sm:$0xff] %v5530_v30  ;;  %v5546_v30 = vadd.f32 %v5240_v32, %v1342_v29 }
  0xd5   :  { %3965 = vmatmul.mubr.msk.f32.gmra.mrb[100].mxu0 %vm98_vm0, %v68_v52 }
  0xd6   :  { %4029 = vmatmul.mubr.msk.f32.gmra.mrb[100].mxu1 %vm98_vm0, %v68_v52  ;;  %661 = vmatprep.mubr.f32.mxu0 %v6921_v7  ;;  %v5480_v52 = vadd.f32 %v5242_v33, %v5258_v38  ;;  %6969 = vst [vmem:[#allocation21_spill] sm:$0xff] %v5497_v36  ;;  %v5517_v36 = vadd.f32 %v5237_v31, %v1332_v13  ;;  %6984 = vst [vmem:[#allocation35_spill] sm:$0xff] %v5546_v30 }
  0xd7   :  { %1110 = vmatprep.mubr.f32.mxu1 %v6921_v7 }
  0xd8   :  { %6964 = vst [vmem:[#allocation16_spill] sm:$0xff] %v5480_v52  ;;  %v5500_v52 = vadd.f32 %v5237_v31, %v1327_v0  ;;  %6975 = vst [vmem:[#allocation26_spill] sm:$0xff] %v5517_v36  ;;  %v5536_v36 = vadd.f32 %v5242_v33, %v1337_v24 }
  0xd9   :  { %3966 = vmatmul.mubr.msk.f32.gmra.mrb[102].mxu0 %vm98_vm0, %v69_v5 }
  0xda   :  { %4030 = vmatmul.mubr.msk.f32.gmra.mrb[102].mxu1 %vm98_vm0, %v69_v5  ;;  %667 = vmatprep.mubr.f32.mxu0 %v6921_v7  ;;  %v5484_v5 = vadd.f32 %v5244_v34, %v5258_v38  ;;  %6970 = vst [vmem:[#allocation22_spill] sm:$0xff] %v5500_v52  ;;  %v5503_v38 = vadd.f32 %v5240_v32, %v1327_v0  ;;  %6981 = vst [vmem:[#allocation32_spill] sm:$0xff] %v5536_v36 }
  0xdb   :  { %1116 = vmatprep.mubr.f32.mxu1 %v6921_v7  ;;  %v5487_v7 = vadd.f32 %v5237_v31, %v1322_v51  ;;  %v5514_v51 = vadd.f32 %v5244_v34, %v1327_v0  ;;  %v5527_v52 = vadd.f32 %v5244_v34, %v1332_v13 }
  0xdc   :  { %6965 = vst [vmem:[#allocation17_spill] sm:$0xff] %v5484_v5  ;;  %6971 = vst [vmem:[#allocation23_spill] sm:$0xff] %v5503_v38  ;;  %v5511_v5 = vadd.f32 %v5242_v33, %v1327_v0  ;;  %v5521_v38 = vadd.f32 %v5240_v32, %v1332_v13  ;;  %v1347_v0 = vpop.permute.xlu0 %1346 }
  0xdd   :  { %6966 = vst [vmem:[#allocation18_spill] sm:$0xff] %v5487_v7  ;;  %3967 = vmatmul.mubr.msk.f32.gmra.mrb[104].mxu0 %vm98_vm0, %v70_v22  ;;  %v6972_v7 = vmov 0.0   ;;  %6974 = vst [vmem:[#allocation25_spill] sm:$0xff] %v5514_v51  ;;  %v5533_v51 = vadd.f32 %v5240_v32, %v1337_v24  ;;  %v5563_v30 = vadd.f32 %v5240_v32, %v1347_v0 }
  0xde   :  { %4031 = vmatmul.mubr.msk.f32.gmra.mrb[104].mxu1 %vm98_vm0, %v70_v22  ;;  %673 = vmatprep.mubr.f32.mxu0 %v6972_v7  ;;  %6973 = vst [vmem:[#allocation24_spill] sm:$0xff] %v5511_v5  ;;  %6976 = vst [vmem:[#allocation27_spill] sm:$0xff] %v5521_v38  ;;  %v5524_v22 = vadd.f32 %v5242_v33, %v1332_v13  ;;  %v5542_v38 = vadd.f32 %v5237_v31, %v1342_v29 }
  0xdf   :  { %1122 = vmatprep.mubr.f32.mxu1 %v6972_v7  ;;  %6978 = vst [vmem:[#allocation29_spill] sm:$0xff] %v5527_v52  ;;  %6980 = vst [vmem:[#allocation31_spill] sm:$0xff] %v5533_v51  ;;  %v5552_v51 = vadd.f32 %v5244_v34, %v1342_v29 }
  0xe0   :  { %6977 = vst [vmem:[#allocation28_spill] sm:$0xff] %v5524_v22  ;;  %v357_v5 = vpop.f32.mrb[0].mxu0  ;;  %6983 = vst [vmem:[#allocation34_spill] sm:$0xff] %v5542_v38  ;;  %v5560_v38 = vadd.f32 %v5237_v31, %v1347_v0 }
  0xe1   :  { %v1851_v22 = vmul.f32 2.0, %v357_v5  ;;  %v806_v13 = vpop.f32.mrb[0].mxu1  ;;  %v359_v52 = vpop.f32.mrb[1].mxu0  ;;  %3968 = vmatmul.mubr.msk.f32.gmra.mrb[106].mxu0 %vm98_vm0, %v71_v35  ;;  %6986 = vst [vmem:[#allocation37_spill] sm:$0xff] %v5552_v51  ;;  %v72_v5 = vld [vmem:[%s6916_s0 + $0x1b0] sm:$0xff]  ;;  %6988 = vst [vmem:[#allocation39_spill] sm:$0xff] %v5563_v30 }
  0xe2   :  { %v1853_v36 = vmul.f32 2.0, %v806_v13  ;;  %v1852_v24 = vmul.f32 2.0, %v359_v52  ;;  %v808_v28 = vpop.f32.mrb[1].mxu1  ;;  %4032 = vmatmul.mubr.msk.f32.gmra.mrb[106].mxu1 %vm98_vm0, %v71_v35  ;;  %679 = vmatprep.mubr.f32.mxu0 %v6972_v7  ;;  %6987 = vst [vmem:[#allocation38_spill] sm:$0xff] %v5560_v38  ;;  %v5567_v52 = vpop.permute.xlu1 %1351  ;;  %v5570_v35 = vadd.f32 %v5242_v33, %v1347_v0  ;;  %v5573_v13 = vadd.f32 %v5244_v34, %v1347_v0 }
  0xe3   :  { %v2107_v29 = vsub.f32 %v5256_v37, %v1851_v22  ;;  %v1854_v51 = vmul.f32 2.0, %v808_v28  ;;  %1128 = vmatprep.mubr.f32.mxu1 %v6972_v7  ;;  %6989 = vst [vmem:[#allocation40_spill] sm:$0xff] %v5567_v52  ;;  %v5579_v30 = vadd.f32 %v5237_v31, %v5567_v52  ;;  %v5583_v37 = vadd.f32 %v5240_v32, %v5567_v52 }
  0xe4   :  { %6990 = vst [vmem:[#allocation41_spill] sm:$0xff] %v5570_v35  ;;  %v2109_v27 = vsub.f32 %v5263_v39, %v1853_v36  ;;  %v2108_v38 = vsub.f32 %v5267_v40, %v1852_v24  ;;  %v363_v26 = vpop.f32.mrb[2].mxu0  ;;  %v5589_v39 = vadd.f32 %v5242_v33, %v5567_v52 }
  0xe5   :  { %6991 = vst [vmem:[#allocation42_spill] sm:$0xff] %v5579_v30  ;;  %6992 = vst [vmem:[#allocation43_spill] sm:$0xff] %v5583_v37  ;;  %v2363_v28 = vmax.f32 %v2107_v29, 0.0  ;;  %v2110_v22 = vsub.f32 %v5271_v41, %v1854_v51  ;;  %v1855_v35 = vmul.f32 2.0, %v363_v26  ;;  %v812_v25 = vpop.f32.mrb[2].mxu1  ;;  %v365_v0 = vpop.f32.mrb[3].mxu0  ;;  %3969 = vmatmul.mubr.msk.f32.gmra.mrb[108].mxu0 %vm98_vm0, %v72_v5 }
  0xe6   :  { %6993 = vst [vmem:[#allocation44_spill] sm:$0xff] %v5589_v39  ;;  %v2365_v40 = vmax.f32 %v2109_v27, 0.0  ;;  %v2364_v36 = vmax.f32 %v2108_v38, 0.0  ;;  %v1857_v24 = vmul.f32 2.0, %v812_v25  ;;  %v1856_v31 = vmul.f32 2.0, %v365_v0  ;;  %v814_v34 = vpop.f32.mrb[3].mxu1  ;;  %4033 = vmatmul.mubr.msk.f32.gmra.mrb[108].mxu1 %vm98_vm0, %v72_v5  ;;  %685 = vmatprep.mubr.f32.mxu0 %v6972_v7 }
  0xe7   :  { %v73_v41 = vld [vmem:[%s6916_s0 + $0x1b8] sm:$0xff]  ;;  %v2619_v26 = vsub.f32 0.0, %v2363_v28  ;;  %v2366_v51 = vmax.f32 %v2110_v22, 0.0  ;;  %v2111_v29 = vsub.f32 %v5279_v43, %v1855_v35  ;;  %v1858_v32 = vmul.f32 2.0, %v814_v34  ;;  %1134 = vmatprep.mubr.f32.mxu1 %v6972_v7 }
  0xe8   :  { %v2621_v27 = vsub.f32 0.0, %v2365_v40  ;;  %v2620_v38 = vsub.f32 0.0, %v2364_v36  ;;  %v2113_v25 = vsub.f32 %v5296_v47, %v1857_v24  ;;  %v2112_v0 = vsub.f32 %v5300_v48, %v1856_v31  ;;  %v369_v5 = vpop.f32.mrb[4].mxu0  ;;  %v74_v31 = vld [vmem:[%s6916_s0 + $0x1c0] sm:$0xff] }
  0xe9   :  { %v2875_v33 = vmul.f32 0.03125, %v2619_v26  ;;  %v2622_v39 = vsub.f32 0.0, %v2366_v51  ;;  %v2367_v52 = vmax.f32 %v2111_v29, 0.0  ;;  %v2114_v37 = vsub.f32 %v5304_v49, %v1858_v32  ;;  %v818_v30 = vpop.f32.mrb[4].mxu1  ;;  %v371_v28 = vpop.f32.mrb[5].mxu0  ;;  %3970 = vmatmul.mubr.msk.f32.gmra.mrb[110].mxu0 %vm98_vm0, %v73_v41 }
  0xea   :  { %v2877_v43 = vmul.f32 0.03125, %v2621_v27  ;;  %v2876_v34 = vmul.f32 0.03125, %v2620_v38  ;;  %v2369_v35 = vmax.f32 %v2113_v25, 0.0  ;;  %v2368_v22 = vmax.f32 %v2112_v0, 0.0  ;;  %v820_v40 = vpop.f32.mrb[5].mxu1  ;;  %4034 = vmatmul.mubr.msk.f32.gmra.mrb[110].mxu1 %vm98_vm0, %v73_v41  ;;  %691 = vmatprep.mubr.f32.mxu0 %v6972_v7 }
  0xeb   :  { %v3131_v47 = vmul.f32 1.442695, %v2875_v33  ;;  %v2878_v48 = vmul.f32 0.03125, %v2622_v39  ;;  %v2623_v32 = vsub.f32 0.0, %v2367_v52  ;;  %v2370_v49 = vmax.f32 %v2114_v37, 0.0  ;;  %1140 = vmatprep.mubr.f32.mxu1 %v6972_v7 }
  0xec   :  { %v3135_v36 = vmul.f32 1.442695, %v2877_v43  ;;  %v3133_v24 = vmul.f32 1.442695, %v2876_v34  ;;  %v2625_v26 = vsub.f32 0.0, %v2369_v35  ;;  %v2624_v51 = vsub.f32 0.0, %v2368_v22 }
  0xed   :  { %4066 = vpow2.f32 %v3131_v47  ;;  %v3137_v29 = vmul.f32 1.442695, %v2878_v48  ;;  %v2879_v27 = vmul.f32 0.03125, %v2623_v32  ;;  %v2626_v41 = vsub.f32 0.0, %v2370_v49  ;;  %v375_v38 = vpop.f32.mrb[6].mxu0  ;;  %v824_v25 = vpop.f32.mrb[6].mxu1  ;;  %3971 = vmatmul.mubr.msk.f32.gmra.mrb[112].mxu0 %vm98_vm0, %v74_v31 }
  0xee   :  { %4068 = vpow2.f32 %v3135_v36  ;;  %v2881_v0 = vmul.f32 0.03125, %v2625_v26  ;;  %v2880_v33 = vmul.f32 0.03125, %v2624_v51  ;;  %v1859_v39 = vmul.f32 2.0, %v369_v5  ;;  %v377_v52 = vpop.f32.mrb[7].mxu0  ;;  %v826_v37 = vpop.f32.mrb[7].mxu1  ;;  %4035 = vmatmul.mubr.msk.f32.gmra.mrb[112].mxu1 %vm98_vm0, %v74_v31  ;;  %697 = vmatprep.mubr.f32.mxu0 %v6972_v7  ;;  %v75_v43 = vld [vmem:[%s6916_s0 + $0x1c8] sm:$0xff] }
  0xef   :  { %4070 = vpow2.f32 %v3133_v24  ;;  %v3139_v34 = vmul.f32 1.442695, %v2879_v27  ;;  %v2882_v35 = vmul.f32 0.03125, %v2626_v41  ;;  %v1861_v22 = vmul.f32 2.0, %v818_v30  ;;  %1146 = vmatprep.mubr.f32.mxu1 %v6972_v7 }
  0xf0   :  { %4072 = vpow2.f32 %v3137_v29  ;;  %v3143_v47 = vmul.f32 1.442695, %v2881_v0  ;;  %v3141_v48 = vmul.f32 1.442695, %v2880_v33  ;;  %v2115_v5 = vsub.f32 %v5275_v42, %v1859_v39  ;;  %v5616_v32 = vpop.f32.mrb[8].mxu0  ;;  %v76_v42 = vld [vmem:[%s6916_s0 + $0x1d0] sm:$0xff] }
  0xf1   :  { %4074 = vpow2.f32 %v3139_v34  ;;  %v3145_v31 = vmul.f32 1.442695, %v2882_v35  ;;  %v2117_v49 = vsub.f32 %v5283_v44, %v1861_v22  ;;  %v1860_v36 = vmul.f32 2.0, %v371_v28  ;;  %v5619_v26 = vpop.f32.mrb[8].mxu1  ;;  %v5621_v24 = vpop.f32.mrb[9].mxu0  ;;  %3972 = vmatmul.mubr.msk.f32.gmra.mrb[114].mxu0 %vm98_vm0, %v75_v43 }
  0xf2   :  { %4076 = vpow2.f32 %v3143_v47  ;;  %v2371_v30 = vmax.f32 %v2115_v5, 0.0  ;;  %v1862_v51 = vmul.f32 2.0, %v820_v40  ;;  %v1863_v29 = vmul.f32 2.0, %v375_v38  ;;  %v5624_v27 = vpop.f32.mrb[9].mxu1  ;;  %4036 = vmatmul.mubr.msk.f32.gmra.mrb[114].mxu1 %vm98_vm0, %v75_v43  ;;  %703 = vmatprep.mubr.f32.mxu0 %v6972_v7 }
  0xf3   :  { %4078 = vpow2.f32 %v3141_v48  ;;  %v2373_v44 = vmax.f32 %v2117_v49, 0.0  ;;  %v2116_v28 = vsub.f32 %v5287_v45, %v1860_v36  ;;  %v1865_v41 = vmul.f32 2.0, %v824_v25  ;;  %1152 = vmatprep.mubr.f32.mxu1 %v6972_v7 }
  0xf4   :  { %4080 = vpow2.f32 %v3145_v31  ;;  %v2627_v40 = vsub.f32 0.0, %v2371_v30  ;;  %v2118_v38 = vsub.f32 %v5291_v46, %v1862_v51  ;;  %v2119_v0 = vsub.f32 %v5308_v50, %v1863_v29  ;;  %v5635_v33 = vpop.f32.mrb[10].mxu0  ;;  %v77_v50 = vld [vmem:[%s6916_s0 + $0x1d8] sm:$0xff] }
  0xf5   :  { %v2629_v39 = vsub.f32 0.0, %v2373_v44  ;;  %v2372_v43 = vmax.f32 %v2116_v28, 0.0  ;;  %v2121_v34 = vsub.f32 %v5317_v53, %v1865_v41  ;;  %v1864_v35 = vmul.f32 2.0, %v377_v52  ;;  %v5638_v22 = vpop.f32.mrb[10].mxu1  ;;  %v5640_v47 = vpop.f32.mrb[11].mxu0  ;;  %3973 = vmatmul.mubr.msk.f32.gmra.mrb[116].mxu0 %vm98_vm0, %v76_v42 }
  0xf6   :  { %v2883_v45 = vmul.f32 0.03125, %v2627_v40  ;;  %v2374_v25 = vmax.f32 %v2118_v38, 0.0  ;;  %v2375_v48 = vmax.f32 %v2119_v0, 0.0  ;;  %v1866_v5 = vmul.f32 2.0, %v826_v37  ;;  %v5643_v46 = vpop.f32.mrb[11].mxu1  ;;  %4037 = vmatmul.mubr.msk.f32.gmra.mrb[116].mxu1 %vm98_vm0, %v76_v42  ;;  %709 = vmatprep.mubr.f32.mxu0 %v6972_v7 }
  0xf7   :  { %v4067_v53 = vpop.eup %4066  ;;  %v2885_v52 = vmul.f32 0.03125, %v2629_v39  ;;  %v2628_v31 = vsub.f32 0.0, %v2372_v43  ;;  %v2377_v49 = vmax.f32 %v2121_v34, 0.0  ;;  %v2120_v36 = vsub.f32 %v5321_v54, %v1864_v35  ;;  %1158 = vmatprep.mubr.f32.mxu1 %v6972_v7 }
  0xf8   :  { %v4069_v30 = vpop.eup %4068  ;;  %3643 = vst [vmem:[#allocation2] sm:$0xff] %v4067_v53  ;;  %v3147_v37 = vmul.f32 1.442695, %v2883_v45  ;;  %v2630_v51 = vsub.f32 0.0, %v2374_v25  ;;  %v2631_v29 = vsub.f32 0.0, %v2375_v48  ;;  %v2122_v42 = vsub.f32 %v5325_v55, %v1866_v5  ;;  %v5653_v44 = vpop.f32.mrb[12].mxu0 }
  0xf9   :  { %v4071_v28 = vpop.eup %4070  ;;  %3645 = vst [vmem:[#allocation2 + $0x10] sm:$0xff] %v4069_v30  ;;  %v3151_v41 = vmul.f32 1.442695, %v2885_v52  ;;  %v2884_v40 = vmul.f32 0.03125, %v2628_v31  ;;  %v2633_v38 = vsub.f32 0.0, %v2377_v49  ;;  %v2376_v0 = vmax.f32 %v2120_v36, 0.0  ;;  %3974 = vmatmul.mubr.msk.f32.gmra.mrb[118].mxu0 %vm98_vm0, %v77_v50 }
  0xfa   :  { %v5655_v39 = vpop.f32.mrb[12].mxu1  ;;  %v4073_v54 = vpop.eup %4072  ;;  %3644 = vst [vmem:[#allocation2 + $0x8] sm:$0xff] %v4071_v28  ;;  %4082 = vpow2.f32 %v3147_v37  ;;  %v2886_v43 = vmul.f32 0.03125, %v2630_v51  ;;  %v2887_v34 = vmul.f32 0.03125, %v2631_v29  ;;  %v2378_v35 = vmax.f32 %v2122_v42, 0.0  ;;  %4038 = vmatmul.mubr.msk.f32.gmra.mrb[118].mxu1 %vm98_vm0, %v77_v50  ;;  %715 = vmatprep.mubr.f32.mxu0 %v6972_v7  ;;  %v78_v25 = vld [vmem:[%s6916_s0 + $0x1e0] sm:$0xff] }
  0xfb   :  { %v5658_v45 = vpop.f32.mrb[13].mxu0  ;;  %v5660_v55 = vpop.f32.mrb[13].mxu1  ;;  %3646 = vst [vmem:[#allocation2 + $0x18] sm:$0xff] %v4073_v54  ;;  %4084 = vpow2.f32 %v3151_v41  ;;  %v3149_v5 = vmul.f32 1.442695, %v2884_v40  ;;  %v2889_v53 = vmul.f32 0.03125, %v2633_v38  ;;  %1164 = vmatprep.mubr.f32.mxu1 %v6972_v7 }
  0xfc   :  { %v4075_v48 = vpop.eup %4074  ;;  %v2632_v52 = vsub.f32 0.0, %v2376_v0  ;;  %v3153_v49 = vmul.f32 1.442695, %v2886_v43  ;;  %v3155_v36 = vmul.f32 1.442695, %v2887_v34  ;;  %v2634_v30 = vsub.f32 0.0, %v2378_v35 }
  0xfd   :  { %v4077_v31 = vpop.eup %4076  ;;  %3647 = vst [vmem:[#allocation2 + $0x20] sm:$0xff] %v4075_v48  ;;  %v1867_v50 = vmul.f32 2.0, %v5616_v32  ;;  %4086 = vpow2.f32 %v3149_v5  ;;  %v3159_v51 = vmul.f32 1.442695, %v2889_v53  ;;  %v1869_v42 = vmul.f32 2.0, %v5619_v26  ;;  %v5670_v28 = vpop.f32.mrb[14].mxu0  ;;  %3975 = vmatmul.mubr.msk.f32.gmra.mrb[120].mxu0 %vm98_vm0, %v78_v25 }
  0xfe   :  { %v4079_v37 = vpop.eup %4078  ;;  %3649 = vst [vmem:[#allocation2 + $0x30] sm:$0xff] %v4077_v31  ;;  %v2888_v29 = vmul.f32 0.03125, %v2632_v52  ;;  %v5672_v41 = vpop.f32.mrb[14].mxu1  ;;  %4088 = vpow2.f32 %v3153_v49  ;;  %v2890_v38 = vmul.f32 0.03125, %v2634_v30  ;;  %v1868_v32 = vmul.f32 2.0, %v5621_v24  ;;  %4039 = vmatmul.mubr.msk.f32.gmra.mrb[120].mxu1 %vm98_vm0, %v78_v25  ;;  %721 = vmatprep.mubr.f32.mxu0 %v6972_v7  ;;  %v79_v26 = vld [vmem:[%s6916_s0 + $0x1e8] sm:$0xff] }
  0xff   :  { %v4081_v40 = vpop.eup %4080  ;;  %3648 = vst [vmem:[#allocation2 + $0x28] sm:$0xff] %v4079_v37  ;;  %v2123_v0 = vsub.f32 %v5330_v56, %v1867_v50  ;;  %v5677_v54 = vpop.f32.mrb[15].mxu0  ;;  %4090 = vpow2.f32 %v3155_v36  ;;  %v2125_v35 = vsub.f32 %v5334_v57, %v1869_v42  ;;  %v1870_v56 = vmul.f32 2.0, %v5624_v27  ;;  %1170 = vmatprep.mubr.f32.mxu1 %v6972_v7 }
 0x100   :  { %v5679_v43 = vpop.f32.mrb[15].mxu1  ;;  %3650 = vst [vmem:[#allocation2 + $0x38] sm:$0xff] %v4081_v40  ;;  %v3157_v34 = vmul.f32 1.442695, %v2888_v29  ;;  %4092 = vpow2.f32 %v3159_v51  ;;  %v3161_v24 = vmul.f32 1.442695, %v2890_v38  ;;  %v2124_v25 = vsub.f32 %v5338_v58, %v1868_v32 }
 0x101   :  { %v2379_v48 = vmax.f32 %v2123_v0, 0.0  ;;  %v5690_v5 = vpop.f32.mrb[16].mxu0  ;;  %v2381_v53 = vmax.f32 %v2125_v35, 0.0  ;;  %v2126_v52 = vsub.f32 %v5342_v59, %v1870_v56  ;;  %v1871_v31 = vmul.f32 2.0, %v5635_v33  ;;  %v5694_v49 = vpop.f32.mrb[16].mxu1  ;;  %3976 = vmatmul.mubr.msk.f32.gmra.mrb[122].mxu0 %vm98_vm0, %v79_v26  ;;  %v80_v59 = vld [vmem:[%s6916_s0 + $0x1f0] sm:$0xff] }
 0x102   :  { %4094 = vpow2.f32 %v3157_v34  ;;  %v5696_v57 = vpop.f32.mrb[17].mxu0  ;;  %v2380_v36 = vmax.f32 %v2124_v25, 0.0  ;;  %v1873_v30 = vmul.f32 2.0, %v5638_v22  ;;  %v5700_v58 = vpop.f32.mrb[17].mxu1  ;;  %4040 = vmatmul.mubr.msk.f32.gmra.mrb[122].mxu1 %vm98_vm0, %v79_v26  ;;  %727 = vmatprep.mubr.f32.mxu0 %v6972_v7  ;;  %v1872_v51 = vmul.f32 2.0, %v5640_v47 }
 0x103   :  { %4096 = vpow2.f32 %v3161_v24  ;;  %v2635_v27 = vsub.f32 0.0, %v2379_v48  ;;  %v2637_v33 = vsub.f32 0.0, %v2381_v53  ;;  %v2382_v50 = vmax.f32 %v2126_v52, 0.0  ;;  %1176 = vmatprep.mubr.f32.mxu1 %v6972_v7 }
 0x104   :  { %v2127_v37 = vsub.f32 %v5346_v60, %v1871_v31  ;;  %v4083_v29 = vpop.eup %4082  ;;  %v2636_v42 = vsub.f32 0.0, %v2380_v36  ;;  %v2129_v40 = vsub.f32 %v5350_v61, %v1873_v30  ;;  %v1874_v38 = vmul.f32 2.0, %v5643_v46  ;;  %v5712_v0 = vpop.f32.mrb[18].mxu0 }
 0x105   :  { %v2891_v22 = vmul.f32 0.03125, %v2635_v27  ;;  %v4085_v32 = vpop.eup %4084  ;;  %3651 = vst [vmem:[#allocation2 + $0x40] sm:$0xff] %v4083_v29  ;;  %v2893_v26 = vmul.f32 0.03125, %v2637_v33  ;;  %v2638_v34 = vsub.f32 0.0, %v2382_v50  ;;  %v2128_v60 = vsub.f32 %v5354_v62, %v1872_v51  ;;  %v5715_v56 = vpop.f32.mrb[18].mxu1  ;;  %3977 = vmatmul.mubr.msk.f32.gmra.mrb[124].mxu0 %vm98_vm0, %v80_v59  ;;  %v81_v62 = vld [vmem:[%s6916_s0 + $0x1f8] sm:$0xff] }
 0x106   :  { %v2383_v35 = vmax.f32 %v2127_v37, 0.0  ;;  %v5717_v47 = vpop.f32.mrb[19].mxu0  ;;  %3653 = vst [vmem:[#allocation2 + $0x50] sm:$0xff] %v4085_v32  ;;  %v2892_v61 = vmul.f32 0.03125, %v2636_v42  ;;  %v2385_v48 = vmax.f32 %v2129_v40, 0.0  ;;  %v2130_v46 = vsub.f32 %v5358_v63, %v1874_v38  ;;  %v5721_v25 = vpop.f32.mrb[19].mxu1  ;;  %4041 = vmatmul.mubr.msk.f32.gmra.mrb[124].mxu1 %vm98_vm0, %v80_v59  ;;  %733 = vmatprep.mubr.f32.mxu0 %v6972_v7 }
 0x107   :  { %v3163_v24 = vmul.f32 1.442695, %v2891_v22  ;;  %v4087_v53 = vpop.eup %4086  ;;  %v3167_v52 = vmul.f32 1.442695, %v2893_v26  ;;  %v2894_v31 = vmul.f32 0.03125, %v2638_v34  ;;  %v2384_v36 = vmax.f32 %v2128_v60, 0.0  ;;  %1182 = vmatprep.mubr.f32.mxu1 %v6972_v7 }
 0x108   :  { %v2639_v27 = vsub.f32 0.0, %v2383_v35  ;;  %v4089_v30 = vpop.eup %4088  ;;  %3652 = vst [vmem:[#allocation2 + $0x48] sm:$0xff] %v4087_v53  ;;  %v3165_v63 = vmul.f32 1.442695, %v2892_v61  ;;  %v2641_v33 = vsub.f32 0.0, %v2385_v48  ;;  %v2386_v50 = vmax.f32 %v2130_v46, 0.0 }
 0x109   :  { %4098 = vpow2.f32 %v3163_v24  ;;  %v5729_v59 = vpop.f32.mrb[20].mxu0  ;;  %v4091_v37 = vpop.eup %4090  ;;  %3654 = vst [vmem:[#allocation2 + $0x58] sm:$0xff] %v4089_v30  ;;  %v3169_v51 = vmul.f32 1.442695, %v2894_v31  ;;  %v2640_v22 = vsub.f32 0.0, %v2384_v36  ;;  %3978 = vmatmul.mubr.msk.f32.gmra.mrb[126].mxu0 %vm98_vm0, %v81_v62  ;;  %v1875_v26 = vmul.f32 2.0, %v5653_v44 }
 0x10a   :  { %4100 = vpow2.f32 %v3167_v52  ;;  %v2895_v29 = vmul.f32 0.03125, %v2639_v27  ;;  %v5731_v42 = vpop.f32.mrb[20].mxu1  ;;  %v5733_v40 = vpop.f32.mrb[21].mxu0  ;;  %3655 = vst [vmem:[#allocation2 + $0x60] sm:$0xff] %v4091_v37  ;;  %v2897_v38 = vmul.f32 0.03125, %v2641_v33  ;;  %v2642_v32 = vsub.f32 0.0, %v2386_v50  ;;  %4042 = vmatmul.mubr.msk.f32.gmra.mrb[126].mxu1 %vm98_vm0, %v81_v62 }
 0x10b   :  { %v4093_v7 = vpop.eup %4092  ;;  %4102 = vpow2.f32 %v3165_v63  ;;  %v5737_v34 = vpop.f32.mrb[21].mxu1  ;;  %v2896_v24 = vmul.f32 0.03125, %v2640_v22  ;;  %v1877_v61 = vmul.f32 2.0, %v5655_v39  ;;  %v2131_v52 = vsub.f32 %v5363_v1, %v1875_v26  ;;  %s4604_s0 = smov [#allocation2]  }
 0x10c   :  { %v4095_v35 = vpop.eup %4094  ;;  %3657 = vst [vmem:[#allocation2 + $0x70] sm:$0xff] %v4093_v7  ;;  %4104 = vpow2.f32 %v3169_v51  ;;  %v3171_v60 = vmul.f32 1.442695, %v2895_v29  ;;  %v3175_v46 = vmul.f32 1.442695, %v2897_v38  ;;  %v2898_v53 = vmul.f32 0.03125, %v2642_v32 }
 0x10d   :  { %v4097_v48 = vpop.eup %4096  ;;  %3656 = vst [vmem:[#allocation2 + $0x68] sm:$0xff] %v4095_v35  ;;  %v1876_v31 = vmul.f32 2.0, %v5658_v45  ;;  %v5743_v44 = vpop.f32.mrb[22].mxu0  ;;  %v3173_v62 = vmul.f32 1.442695, %v2896_v24  ;;  %v2133_v27 = vsub.f32 %v5367_v2, %v1877_v61  ;;  %v1878_v36 = vmul.f32 2.0, %v5660_v55 }
 0x10e   :  { %3658 = vst [vmem:[#allocation2 + $0x78] sm:$0xff] %v4097_v48  ;;  %4106 = vpow2.f32 %v3171_v60  ;;  %v5747_v30 = vpop.f32.mrb[22].mxu1  ;;  %v5749_v39 = vpop.f32.mrb[23].mxu0  ;;  %v3177_v63 = vmul.f32 1.442695, %v2898_v53  ;;  %v2387_v33 = vmax.f32 %v2131_v52, 0.0 }
 0x10f   :  { %4108 = vpow2.f32 %v3175_v46  ;;  %v2132_v1 = vsub.f32 %v5371_v3, %v1876_v31  ;;  %v5752_v50 = vpop.f32.mrb[23].mxu1  ;;  %v2389_v45 = vmax.f32 %v2133_v27, 0.0  ;;  %v2134_v37 = vsub.f32 %v5375_v4, %v1878_v36  ;;  %s3904_s30 = sshll.u32 %s4604_s0, 4  ;;  %s3905_s30 = int_to_ptr.vmem [resolvable:$true] %s3904_s30 }
 0x110   :  { %4110 = vpow2.f32 %v3173_v62  ;;  %v1879_v51 = vmul.f32 2.0, %v5670_v28  ;;  %v2643_v2 = vsub.f32 0.0, %v2387_v33  ;;  %v1881_v29 = vmul.f32 2.0, %v5672_v41  ;;  %v5757_v22 = vpop.f32.mrb[24].mxu0  ;;  %s4578_s5 = scalar_lea.vmem %s3905_s30, 32768  ;;  %p4583_p1 = scmp.lt.s32.totalorder %s3905_s30, %s3905_s30 }
 0x111   :  { %4112 = vpow2.f32 %v3177_v63  ;;  %v2388_v55 = vmax.f32 %v2132_v1, 0.0  ;;  %v2645_v7 = vsub.f32 0.0, %v2389_v45  ;;  %v2390_v38 = vmax.f32 %v2134_v37, 0.0  ;;  %v5761_v26 = vpop.f32.mrb[24].mxu1  ;;  %v5763_v35 = vpop.f32.mrb[25].mxu0  ;;  %p4579_p0 = scmp.ne.s32.totalorder %s3905_s30, %s4578_s5  ;;  %p4584_p2 = scmp.lt.s32.totalorder %s4578_s5, %s4578_s5 }
 0x112   :  { %v2135_v32 = vsub.f32 %v5384_v6, %v1879_v51  ;;  %v1880_v3 = vmul.f32 2.0, %v5677_v54  ;;  %v2899_v60 = vmul.f32 0.03125, %v2643_v2  ;;  %v2137_v24 = vsub.f32 %v5388_v8, %v1881_v29  ;;  %v5767_v41 = vpop.f32.mrb[25].mxu1 }
 0x113   :  { %v4099_v4 = vpop.eup %4098  ;;  %v2644_v28 = vsub.f32 0.0, %v2388_v55  ;;  %v1882_v61 = vmul.f32 2.0, %v5679_v43  ;;  %v2901_v46 = vmul.f32 0.03125, %v2645_v7  ;;  %v2646_v53 = vsub.f32 0.0, %v2390_v38  ;;  %p4585_p3 = por %p4584_p2, %p4583_p1 }
 0x114   :  { %v4101_v48 = vpop.eup %4100  ;;  %3659 = vst [vmem:[#allocation2 + $0x80] sm:$0xff] %v4099_v4  ;;  %v2391_v6 = vmax.f32 %v2135_v32, 0.0  ;;  %v2136_v54 = vsub.f32 %v5392_v9, %v1880_v3  ;;  %v3179_v31 = vmul.f32 1.442695, %v2899_v60  ;;  %v2393_v27 = vmax.f32 %v2137_v24, 0.0  ;;  %v5771_v63 = vpop.f32.mrb[26].mxu0 }
 0x115   :  { %v4103_v52 = vpop.eup %4102  ;;  %3661 = vst [vmem:[#allocation2 + $0x90] sm:$0xff] %v4101_v48  ;;  %v2900_v62 = vmul.f32 0.03125, %v2644_v28  ;;  %v2138_v36 = vsub.f32 %v5397_v10, %v1882_v61  ;;  %v3183_v43 = vmul.f32 1.442695, %v2901_v46  ;;  %v2902_v33 = vmul.f32 0.03125, %v2646_v53  ;;  %v5773_v37 = vpop.f32.mrb[26].mxu1  ;;  %p4586_p4 = pnand %p4585_p3, %p4579_p0 }
 0x116   :  { %v4105_v8 = vpop.eup %4104  ;;  %3660 = vst [vmem:[#allocation2 + $0x88] sm:$0xff] %v4103_v52  ;;  %v2647_v1 = vsub.f32 0.0, %v2391_v6  ;;  %v2392_v45 = vmax.f32 %v2136_v54, 0.0  ;;  %4114 = vpow2.f32 %v3179_v31  ;;  %v2649_v51 = vsub.f32 0.0, %v2393_v27  ;;  %v5775_v55 = vpop.f32.mrb[27].mxu0 }
 0x117   :  { %3662 = vst [vmem:[#allocation2 + $0x98] sm:$0xff] %v4105_v8  ;;  %v3181_v9 = vmul.f32 1.442695, %v2900_v62  ;;  %v2394_v2 = vmax.f32 %v2138_v36, 0.0  ;;  %v5777_v29 = vpop.f32.mrb[27].mxu1  ;;  %4116 = vpow2.f32 %v3183_v43  ;;  %v1883_v28 = vmul.f32 2.0, %v5690_v5 }
 0x118   :  { %v4107_v10 = vpop.eup %4106  ;;  %v3185_v7 = vmul.f32 1.442695, %v2902_v33  ;;  %v2903_v38 = vmul.f32 0.03125, %v2647_v1  ;;  %v2648_v32 = vsub.f32 0.0, %v2392_v45  ;;  %v2905_v4 = vmul.f32 0.03125, %v2649_v51  ;;  %v5780_v24 = vpop.f32.mrb[28].mxu0 }
 0x119   :  { %v4109_v3 = vpop.eup %4108  ;;  %3663 = vst [vmem:[#allocation2 + $0xa0] sm:$0xff] %v4107_v10  ;;  %4118 = vpow2.f32 %v3181_v9  ;;  %v2650_v60 = vsub.f32 0.0, %v2394_v2  ;;  %v1885_v53 = vmul.f32 2.0, %v5694_v49  ;;  %v5783_v6 = vpop.f32.mrb[28].mxu1  ;;  %v2139_v27 = vsub.f32 %v5401_v11, %v1883_v28 }
 0x11a   :  { %v4111_v61 = vpop.eup %4110  ;;  %3665 = vst [vmem:[#allocation2 + $0xb0] sm:$0xff] %v4109_v3  ;;  %4120 = vpow2.f32 %v3185_v7  ;;  %v3187_v48 = vmul.f32 1.442695, %v2903_v38  ;;  %v2904_v46 = vmul.f32 0.03125, %v2648_v32  ;;  %v5785_v54 = vpop.f32.mrb[29].mxu0  ;;  %v1884_v5 = vmul.f32 2.0, %v5696_v57 }
 0x11b   :  { %v4113_v52 = vpop.eup %4112  ;;  %3664 = vst [vmem:[#allocation2 + $0xa8] sm:$0xff] %v4111_v61  ;;  %v3191_v31 = vmul.f32 1.442695, %v2905_v4  ;;  %v2906_v62 = vmul.f32 0.03125, %v2650_v60  ;;  %v5789_v36 = vpop.f32.mrb[29].mxu1  ;;  %v2141_v43 = vsub.f32 %v5405_v12, %v1885_v53  ;;  %v1886_v49 = vmul.f32 2.0, %v5700_v58 }
 0x11c   :  { %3666 = vst [vmem:[#allocation2 + $0xb8] sm:$0xff] %v4113_v52  ;;  %4122 = vpow2.f32 %v3187_v48  ;;  %v3189_v8 = vmul.f32 1.442695, %v2904_v46  ;;  %v2395_v1 = vmax.f32 %v2139_v27, 0.0  ;;  %v2140_v45 = vsub.f32 %v5409_v14, %v1884_v5  ;;  %v5794_v9 = vpop.f32.mrb[30].mxu0 }
 0x11d   :  { %4124 = vpow2.f32 %v3191_v31  ;;  %v3193_v33 = vmul.f32 1.442695, %v2906_v62  ;;  %v2397_v11 = vmax.f32 %v2141_v43, 0.0  ;;  %v2142_v57 = vsub.f32 %v5413_v15, %v1886_v49  ;;  %v5798_v2 = vpop.f32.mrb[30].mxu1  ;;  %v5800_v10 = vpop.f32.mrb[31].mxu0 }
 0x11e   :  { %4126 = vpow2.f32 %v3189_v8  ;;  %v1887_v51 = vmul.f32 2.0, %v5712_v0  ;;  %v2651_v12 = vsub.f32 0.0, %v2395_v1  ;;  %v2396_v58 = vmax.f32 %v2140_v45, 0.0  ;;  %v5803_v38 = vpop.f32.mrb[31].mxu1 }
 0x11f   :  { %4128 = vpow2.f32 %v3193_v33  ;;  %v1889_v7 = vmul.f32 2.0, %v5715_v56  ;;  %v2653_v14 = vsub.f32 0.0, %v2397_v11  ;;  %v2398_v32 = vmax.f32 %v2142_v57, 0.0 }
 0x120   :  { %v2143_v3 = vsub.f32 %v5417_v16, %v1887_v51  ;;  %v1888_v4 = vmul.f32 2.0, %v5717_v47  ;;  %v4115_v15 = vpop.eup %4114  ;;  %v2907_v60 = vmul.f32 0.03125, %v2651_v12  ;;  %v2652_v0 = vsub.f32 0.0, %v2396_v58  ;;  %v5809_v48 = vpop.f32.mrb[32].mxu0 }
 0x121   :  { %v2145_v28 = vsub.f32 %v5421_v17, %v1889_v7  ;;  %v1890_v61 = vmul.f32 2.0, %v5721_v25  ;;  %v4117_v46 = vpop.eup %4116  ;;  %3667 = vst [vmem:[#allocation2 + $0xc0] sm:$0xff] %v4115_v15  ;;  %v2909_v56 = vmul.f32 0.03125, %v2653_v14  ;;  %v2654_v53 = vsub.f32 0.0, %v2398_v32  ;;  %v5812_v62 = vpop.f32.mrb[32].mxu1 }
 0x122   :  { %v2399_v52 = vmax.f32 %v2143_v3, 0.0  ;;  %v2144_v31 = vsub.f32 %v5425_v18, %v1888_v4  ;;  %v5814_v16 = vpop.f32.mrb[33].mxu0  ;;  %3669 = vst [vmem:[#allocation2 + $0xd0] sm:$0xff] %v4117_v46  ;;  %v3195_v27 = vmul.f32 1.442695, %v2907_v60  ;;  %v2908_v5 = vmul.f32 0.03125, %v2652_v0 }
 0x123   :  { %v4119_v47 = vpop.eup %4118  ;;  %v2401_v17 = vmax.f32 %v2145_v28, 0.0  ;;  %v2146_v25 = vsub.f32 %v5430_v19, %v1890_v61  ;;  %v5817_v8 = vpop.f32.mrb[33].mxu1  ;;  %v3199_v49 = vmul.f32 1.442695, %v2909_v56  ;;  %v2910_v33 = vmul.f32 0.03125, %v2654_v53 }
 0x124   :  { %v4121_v43 = vpop.eup %4120  ;;  %3668 = vst [vmem:[#allocation2 + $0xc8] sm:$0xff] %v4119_v47  ;;  %v2655_v1 = vsub.f32 0.0, %v2399_v52  ;;  %v2400_v45 = vmax.f32 %v2144_v31, 0.0  ;;  %4130 = vpow2.f32 %v3195_v27  ;;  %v3197_v18 = vmul.f32 1.442695, %v2908_v5  ;;  %v5819_v51 = vpop.f32.mrb[34].mxu0 }
 0x125   :  { %3670 = vst [vmem:[#allocation2 + $0xd8] sm:$0xff] %v4121_v43  ;;  %v2657_v11 = vsub.f32 0.0, %v2401_v17  ;;  %v2402_v57 = vmax.f32 %v2146_v25, 0.0  ;;  %4132 = vpow2.f32 %v3199_v49  ;;  %v3201_v58 = vmul.f32 1.442695, %v2910_v33  ;;  %v5821_v14 = vpop.f32.mrb[34].mxu1 }
 0x126   :  { %v4123_v12 = vpop.eup %4122  ;;  %v2911_v7 = vmul.f32 0.03125, %v2655_v1  ;;  %v2656_v19 = vsub.f32 0.0, %v2400_v45  ;;  %v5823_v32 = vpop.f32.mrb[35].mxu0  ;;  %4134 = vpow2.f32 %v3197_v18  ;;  %v1891_v60 = vmul.f32 2.0, %v5729_v59  ;;  %v6994_v45 = vld [vmem:[#allocation9_spill] sm:$0xff] }
 0x127   :  { %v4125_v3 = vpop.eup %4124  ;;  %3671 = vst [vmem:[#allocation2 + $0xe0] sm:$0xff] %v4123_v12  ;;  %v2913_v4 = vmul.f32 0.03125, %v2657_v11  ;;  %v2658_v15 = vsub.f32 0.0, %v2402_v57  ;;  %v5826_v0 = vpop.f32.mrb[35].mxu1  ;;  %4136 = vpow2.f32 %v3201_v58  ;;  %v1893_v56 = vmul.f32 2.0, %v5731_v42 }
 0x128   :  { %v4127_v28 = vpop.eup %4126  ;;  %3673 = vst [vmem:[#allocation2 + $0xf0] sm:$0xff] %v4125_v3  ;;  %v3203_v61 = vmul.f32 1.442695, %v2911_v7  ;;  %v2912_v46 = vmul.f32 0.03125, %v2656_v19  ;;  %v2147_v47 = vsub.f32 %v5434_v20, %v1891_v60  ;;  %v1892_v27 = vmul.f32 2.0, %v5733_v40  ;;  %v5831_v5 = vpop.f32.mrb[36].mxu0 }
 0x129   :  { %v4129_v53 = vpop.eup %4128  ;;  %3672 = vst [vmem:[#allocation2 + $0xe8] sm:$0xff] %v4127_v28  ;;  %v3207_v52 = vmul.f32 1.442695, %v2913_v4  ;;  %v2914_v31 = vmul.f32 0.03125, %v2658_v15  ;;  %v2149_v17 = vsub.f32 %v5438_v21, %v1893_v56  ;;  %v1894_v25 = vmul.f32 2.0, %v5737_v34  ;;  %v5835_v43 = vpop.f32.mrb[36].mxu1 }
 0x12a   :  { %3674 = vst [vmem:[#allocation2 + $0xf8] sm:$0xff] %v4129_v53  ;;  %4138 = vpow2.f32 %v3203_v61  ;;  %v3205_v59 = vmul.f32 1.442695, %v2912_v46  ;;  %v5837_v42 = vpop.f32.mrb[37].mxu0  ;;  %v2403_v33 = vmax.f32 %v2147_v47, 0.0  ;;  %v2148_v20 = vsub.f32 %v5442_v23, %v1892_v27  ;;  %v5840_v1 = vpop.f32.mrb[37].mxu1 }
 0x12b   :  { %4140 = vpow2.f32 %v3207_v52  ;;  %v3209_v49 = vmul.f32 1.442695, %v2914_v31  ;;  %v2405_v40 = vmax.f32 %v2149_v17, 0.0  ;;  %v2150_v18 = vsub.f32 %v6994_v45, %v1894_v25  ;;  %v6995_v19 = vld [vmem:[#allocation10_spill] sm:$0xff]  ;;  %v6996_v61 = vld [vmem:[#allocation11_spill] sm:$0xff]  ;;  %v6997_v27 = vld [vmem:[#allocation12_spill] sm:$0xff] }
 0x12c   :  { %4142 = vpow2.f32 %v3205_v59  ;;  %v1895_v11 = vmul.f32 2.0, %v5743_v44  ;;  %v2659_v21 = vsub.f32 0.0, %v2403_v33  ;;  %v2404_v34 = vmax.f32 %v2148_v20, 0.0  ;;  %v5845_v12 = vpop.f32.mrb[38].mxu0  ;;  %v6998_v33 = vld [vmem:[#allocation13_spill] sm:$0xff] }
 0x12d   :  { %4144 = vpow2.f32 %v3209_v49  ;;  %v1897_v57 = vmul.f32 2.0, %v5747_v30  ;;  %v2661_v58 = vsub.f32 0.0, %v2405_v40  ;;  %v2406_v7 = vmax.f32 %v2150_v18, 0.0  ;;  %v5849_v4 = vpop.f32.mrb[38].mxu1  ;;  %v5851_v15 = vpop.f32.mrb[39].mxu0 }
 0x12e   :  { %v2151_v3 = vsub.f32 %v6995_v19, %v1895_v11  ;;  %v1896_v23 = vmul.f32 2.0, %v5749_v39  ;;  %v4131_v60 = vpop.eup %4130  ;;  %v2915_v28 = vmul.f32 0.03125, %v2659_v21  ;;  %v2660_v44 = vsub.f32 0.0, %v2404_v34  ;;  %v5855_v30 = vpop.f32.mrb[39].mxu1 }
 0x12f   :  { %v2153_v46 = vsub.f32 %v6996_v61, %v1897_v57  ;;  %v1898_v56 = vmul.f32 2.0, %v5752_v50  ;;  %v4133_v53 = vpop.eup %4132  ;;  %3675 = vst [vmem:[#allocation2 + $0x100] sm:$0xff] %v4131_v60  ;;  %v2917_v52 = vmul.f32 0.03125, %v2661_v58  ;;  %v2662_v31 = vsub.f32 0.0, %v2406_v7 }
 0x130   :  { %v2407_v47 = vmax.f32 %v2151_v3, 0.0  ;;  %v2152_v39 = vsub.f32 %v6997_v27, %v1896_v23  ;;  %v4135_v59 = vpop.eup %4134  ;;  %3677 = vst [vmem:[#allocation2 + $0x110] sm:$0xff] %v4133_v53  ;;  %v3211_v17 = vmul.f32 1.442695, %v2915_v28  ;;  %v2916_v25 = vmul.f32 0.03125, %v2660_v44  ;;  %v5859_v40 = vpop.f32.mrb[40].mxu0 }
 0x131   :  { %v2409_v49 = vmax.f32 %v2153_v46, 0.0  ;;  %v2154_v20 = vsub.f32 %v6998_v33, %v1898_v56  ;;  %v4137_v45 = vpop.eup %4136  ;;  %3676 = vst [vmem:[#allocation2 + $0x108] sm:$0xff] %v4135_v59  ;;  %v3215_v50 = vmul.f32 1.442695, %v2917_v52  ;;  %v2918_v18 = vmul.f32 0.03125, %v2662_v31  ;;  %v5861_v34 = vpop.f32.mrb[40].mxu1 }
 0x132   :  { %v2663_v11 = vsub.f32 0.0, %v2407_v47  ;;  %v2408_v21 = vmax.f32 %v2152_v39, 0.0  ;;  %3678 = vst [vmem:[#allocation2 + $0x118] sm:$0xff] %v4137_v45  ;;  %4146 = vpow2.f32 %v3211_v17  ;;  %v3213_v57 = vmul.f32 1.442695, %v2916_v25  ;;  %v5863_v19 = vpop.f32.mrb[41].mxu0 }
 0x133   :  { %v2665_v58 = vsub.f32 0.0, %v2409_v49  ;;  %v2410_v7 = vmax.f32 %v2154_v20, 0.0  ;;  %v5865_v3 = vpop.f32.mrb[41].mxu1  ;;  %4148 = vpow2.f32 %v3215_v50  ;;  %v3217_v60 = vmul.f32 1.442695, %v2918_v18  ;;  %v6999_v20 = vld [vmem:[#allocation14_spill] sm:$0xff] }
 0x134   :  { %v4139_v23 = vpop.eup %4138  ;;  %v2919_v28 = vmul.f32 0.03125, %v2663_v11  ;;  %v2664_v44 = vsub.f32 0.0, %v2408_v21  ;;  %4150 = vpow2.f32 %v3213_v57  ;;  %v1899_v53 = vmul.f32 2.0, %v5757_v22  ;;  %v5868_v52 = vpop.f32.mrb[42].mxu0  ;;  %v7000_v11 = vld [vmem:[#allocation15_spill] sm:$0xff] }
 0x135   :  { %v4141_v61 = vpop.eup %4140  ;;  %3679 = vst [vmem:[#allocation2 + $0x120] sm:$0xff] %v4139_v23  ;;  %v2921_v46 = vmul.f32 0.03125, %v2665_v58  ;;  %v2666_v56 = vsub.f32 0.0, %v2410_v7  ;;  %4152 = vpow2.f32 %v3217_v60  ;;  %v1901_v39 = vmul.f32 2.0, %v5761_v26  ;;  %v5871_v59 = vpop.f32.mrb[42].mxu1  ;;  %v7001_v7 = vld [vmem:[#allocation16_spill] sm:$0xff] }
 0x136   :  { %v4143_v31 = vpop.eup %4142  ;;  %3681 = vst [vmem:[#allocation2 + $0x130] sm:$0xff] %v4141_v61  ;;  %v3219_v47 = vmul.f32 1.442695, %v2919_v28  ;;  %v2920_v27 = vmul.f32 0.03125, %v2664_v44  ;;  %v5873_v17 = vpop.f32.mrb[43].mxu0  ;;  %v2155_v45 = vsub.f32 %v6999_v20, %v1899_v53  ;;  %v1900_v22 = vmul.f32 2.0, %v5763_v35 }
 0x137   :  { %v4145_v25 = vpop.eup %4144  ;;  %3680 = vst [vmem:[#allocation2 + $0x128] sm:$0xff] %v4143_v31  ;;  %v3223_v49 = vmul.f32 1.442695, %v2921_v46  ;;  %v2922_v33 = vmul.f32 0.03125, %v2666_v56  ;;  %v5877_v50 = vpop.f32.mrb[43].mxu1  ;;  %v2157_v21 = vsub.f32 %v7000_v11, %v1901_v39  ;;  %v1902_v26 = vmul.f32 2.0, %v5767_v41 }
 0x138   :  { %3682 = vst [vmem:[#allocation2 + $0x138] sm:$0xff] %v4145_v25  ;;  %4154 = vpow2.f32 %v3219_v47  ;;  %v3221_v18 = vmul.f32 1.442695, %v2920_v27  ;;  %v2411_v58 = vmax.f32 %v2155_v45, 0.0  ;;  %v2156_v23 = vsub.f32 %v7001_v7, %v1900_v22  ;;  %v5882_v60 = vpop.f32.mrb[44].mxu0  ;;  %v7002_v44 = vld [vmem:[#allocation17_spill] sm:$0xff] }
 0x139   :  { %4156 = vpow2.f32 %v3223_v49  ;;  %v3225_v57 = vmul.f32 1.442695, %v2922_v33  ;;  %v2413_v28 = vmax.f32 %v2157_v21, 0.0  ;;  %v2158_v35 = vsub.f32 %v7002_v44, %v1902_v26  ;;  %v5886_v46 = vpop.f32.mrb[44].mxu1  ;;  %v5888_v56 = vpop.f32.mrb[45].mxu0  ;;  %v7003_v25 = vld [vmem:[#allocation18_spill] sm:$0xff] }
 0x13a   :  { %4158 = vpow2.f32 %v3221_v18  ;;  %v1903_v61 = vmul.f32 2.0, %v5771_v63  ;;  %v2667_v53 = vsub.f32 0.0, %v2411_v58  ;;  %v2412_v41 = vmax.f32 %v2156_v23, 0.0  ;;  %v5891_v47 = vpop.f32.mrb[45].mxu1  ;;  %v7004_v22 = vld [vmem:[#allocation19_spill] sm:$0xff]  ;;  %v7005_v7 = vld [vmem:[#allocation20_spill] sm:$0xff] }
 0x13b   :  { %4160 = vpow2.f32 %v3225_v57  ;;  %v1905_v31 = vmul.f32 2.0, %v5773_v37  ;;  %v2669_v27 = vsub.f32 0.0, %v2413_v28  ;;  %v2414_v39 = vmax.f32 %v2158_v35, 0.0 }
 0x13c   :  { %v2159_v49 = vsub.f32 %v7003_v25, %v1903_v61  ;;  %v1904_v33 = vmul.f32 2.0, %v5775_v55  ;;  %v4147_v20 = vpop.eup %4146  ;;  %v2923_v45 = vmul.f32 0.03125, %v2667_v53  ;;  %v2668_v63 = vsub.f32 0.0, %v2412_v41  ;;  %v5897_v21 = vpop.f32.mrb[46].mxu0  ;;  %v7007_v41 = vld [vmem:[#allocation21_spill] sm:$0xff] }
 0x13d   :  { %v2161_v18 = vsub.f32 %v7004_v22, %v1905_v31  ;;  %v1906_v11 = vmul.f32 2.0, %v5777_v29  ;;  %v4149_v26 = vpop.eup %4148  ;;  %3683 = vst [vmem:[#allocation2 + $0x140] sm:$0xff] %v4147_v20  ;;  %v2925_v37 = vmul.f32 0.03125, %v2669_v27  ;;  %v2670_v57 = vsub.f32 0.0, %v2414_v39  ;;  %v5900_v28 = vpop.f32.mrb[46].mxu1 }
 0x13e   :  { %v2415_v58 = vmax.f32 %v2159_v49, 0.0  ;;  %v2160_v23 = vsub.f32 %v7005_v7, %v1904_v33  ;;  %v5902_v44 = vpop.f32.mrb[47].mxu0  ;;  %v4151_v55 = vpop.eup %4150  ;;  %3685 = vst [vmem:[#allocation2 + $0x150] sm:$0xff] %v4149_v26  ;;  %v3227_v35 = vmul.f32 1.442695, %v2923_v45  ;;  %v2924_v61 = vmul.f32 0.03125, %v2668_v63 }
 0x13f   :  { %7006 = vst [vmem:[#allocation9_spill] sm:$0xff] %v5902_v44  ;;  %v2417_v53 = vmax.f32 %v2161_v18, 0.0  ;;  %v2162_v29 = vsub.f32 %v7007_v41, %v1906_v11  ;;  %v5905_v31 = vpop.f32.mrb[47].mxu1  ;;  %v4153_v25 = vpop.eup %4152  ;;  %3684 = vst [vmem:[#allocation2 + $0x148] sm:$0xff] %v4151_v55  ;;  %v3231_v27 = vmul.f32 1.442695, %v2925_v37 }
 0x140   :  { %v2926_v39 = vmul.f32 0.03125, %v2670_v57  ;;  %v2671_v49 = vsub.f32 0.0, %v2415_v58  ;;  %v2416_v20 = vmax.f32 %v2160_v23, 0.0  ;;  %3686 = vst [vmem:[#allocation2 + $0x158] sm:$0xff] %v4153_v25  ;;  %4162 = vpow2.f32 %v3227_v35  ;;  %v5907_v44 = vpop.f32.mrb[48].mxu0 }
 0x141   :  { %v3229_v33 = vmul.f32 1.442695, %v2924_v61  ;;  %v2673_v22 = vsub.f32 0.0, %v2417_v53  ;;  %v2418_v7 = vmax.f32 %v2162_v29, 0.0  ;;  %4164 = vpow2.f32 %v3231_v27  ;;  %v5909_v26 = vpop.f32.mrb[48].mxu1  ;;  %v5911_v41 = vpop.f32.mrb[49].mxu0 }
 0x142   :  { %v4155_v45 = vpop.eup %4154  ;;  %v3233_v63 = vmul.f32 1.442695, %v2926_v39  ;;  %v2927_v18 = vmul.f32 0.03125, %v2671_v49  ;;  %v2672_v11 = vsub.f32 0.0, %v2416_v20  ;;  %v1907_v23 = vmul.f32 2.0, %v5780_v24  ;;  %v5914_v55 = vpop.f32.mrb[49].mxu1 }
 0x143   :  { %v4157_v37 = vpop.eup %4156  ;;  %3687 = vst [vmem:[#allocation2 + $0x160] sm:$0xff] %v4155_v45  ;;  %4166 = vpow2.f32 %v3229_v33  ;;  %v2929_v57 = vmul.f32 0.03125, %v2673_v22  ;;  %v2674_v58 = vsub.f32 0.0, %v2418_v7  ;;  %v1909_v29 = vmul.f32 2.0, %v5783_v6  ;;  %v7008_v49 = vld [vmem:[#allocation22_spill] sm:$0xff]  ;;  %v7009_v7 = vld [vmem:[#allocation23_spill] sm:$0xff] }
 0x144   :  { %v4159_v35 = vpop.eup %4158  ;;  %3689 = vst [vmem:[#allocation2 + $0x170] sm:$0xff] %v4157_v37  ;;  %4168 = vpow2.f32 %v3233_v63  ;;  %v3235_v61 = vmul.f32 1.442695, %v2927_v18  ;;  %v2928_v53 = vmul.f32 0.03125, %v2672_v11  ;;  %v2163_v20 = vsub.f32 %v7008_v49, %v1907_v23  ;;  %v5919_v22 = vpop.f32.mrb[50].mxu0 }
 0x145   :  { %v4161_v25 = vpop.eup %4160  ;;  %3688 = vst [vmem:[#allocation2 + $0x168] sm:$0xff] %v4159_v35  ;;  %v3239_v27 = vmul.f32 1.442695, %v2929_v57  ;;  %v2930_v39 = vmul.f32 0.03125, %v2674_v58  ;;  %v1908_v33 = vmul.f32 2.0, %v5785_v54  ;;  %v2165_v45 = vsub.f32 %v7009_v7, %v1909_v29  ;;  %v5923_v18 = vpop.f32.mrb[50].mxu1 }
 0x146   :  { %3690 = vst [vmem:[#allocation2 + $0x178] sm:$0xff] %v4161_v25  ;;  %4170 = vpow2.f32 %v3235_v61  ;;  %v3237_v24 = vmul.f32 1.442695, %v2928_v53  ;;  %v1910_v63 = vmul.f32 2.0, %v5789_v36  ;;  %v5925_v6 = vpop.f32.mrb[51].mxu0  ;;  %v2419_v37 = vmax.f32 %v2163_v20, 0.0 }
 0x147   :  { %4172 = vpow2.f32 %v3239_v27  ;;  %v3241_v11 = vmul.f32 1.442695, %v2930_v39  ;;  %v7010_v57 = vld [vmem:[#allocation24_spill] sm:$0xff]  ;;  %v5928_v23 = vpop.f32.mrb[51].mxu1  ;;  %v2421_v54 = vmax.f32 %v2165_v45, 0.0  ;;  %v7012_v35 = vld [vmem:[#allocation25_spill] sm:$0xff] }
 0x148   :  { %v2164_v58 = vsub.f32 %v7010_v57, %v1908_v33  ;;  %7011 = vst [vmem:[#allocation10_spill] sm:$0xff] %v5928_v23  ;;  %4174 = vpow2.f32 %v3237_v24  ;;  %v2166_v61 = vsub.f32 %v7012_v35, %v1910_v63  ;;  %v1911_v53 = vmul.f32 2.0, %v5794_v9  ;;  %v5933_v49 = vpop.f32.mrb[52].mxu0  ;;  %v7014_v20 = vld [vmem:[#allocation26_spill] sm:$0xff]  ;;  %v7020_v23 = vld [vmem:[#allocation29_spill] sm:$0xff] }
 0x149   :  { %4176 = vpow2.f32 %v3241_v11  ;;  %v2675_v29 = vsub.f32 0.0, %v2419_v37  ;;  %v1913_v25 = vmul.f32 2.0, %v5798_v2  ;;  %7013 = vst [vmem:[#allocation11_spill] sm:$0xff] %v5933_v49  ;;  %v2677_v27 = vsub.f32 0.0, %v2421_v54  ;;  %v5937_v57 = vpop.f32.mrb[52].mxu1  ;;  %v5939_v24 = vpop.f32.mrb[53].mxu0 }
 0x14a   :  { %v2420_v36 = vmax.f32 %v2164_v58, 0.0  ;;  %v2422_v39 = vmax.f32 %v2166_v61, 0.0  ;;  %v2167_v7 = vsub.f32 %v7014_v20, %v1911_v53  ;;  %v1912_v33 = vmul.f32 2.0, %v5800_v10  ;;  %7015 = vst [vmem:[#allocation12_spill] sm:$0xff] %v5937_v57  ;;  %7016 = vst [vmem:[#allocation13_spill] sm:$0xff] %v5939_v24  ;;  %v4163_v45 = vpop.eup %4162  ;;  %v7017_v11 = vld [vmem:[#allocation27_spill] sm:$0xff]  ;;  %v5946_v57 = vpop.permute.xlu1 %1361 }
 0x14b   :  { %v2931_v63 = vmul.f32 0.03125, %v2675_v29  ;;  %v2169_v37 = vsub.f32 %v7017_v11, %v1913_v25  ;;  %v1914_v58 = vmul.f32 2.0, %v5803_v38  ;;  %v5943_v2 = vpop.f32.mrb[53].mxu1  ;;  %v4165_v35 = vpop.eup %4164  ;;  %3691 = vst [vmem:[#allocation2 + $0x180] sm:$0xff] %v4163_v45  ;;  %v2933_v54 = vmul.f32 0.03125, %v2677_v27  ;;  %v7019_v20 = vld [vmem:[#allocation28_spill] sm:$0xff] }
 0x14c   :  { %v2676_v9 = vsub.f32 0.0, %v2420_v36  ;;  %7018 = vst [vmem:[#allocation14_spill] sm:$0xff] %v5943_v2  ;;  %v2678_v61 = vsub.f32 0.0, %v2422_v39  ;;  %v2423_v53 = vmax.f32 %v2167_v7, 0.0  ;;  %v2168_v10 = vsub.f32 %v7019_v20, %v1912_v33  ;;  %3693 = vst [vmem:[#allocation2 + $0x190] sm:$0xff] %v4165_v35  ;;  %v5949_v11 = vpop.f32.mrb[54].mxu0 }
 0x14d   :  { %v4167_v49 = vpop.eup %4166  ;;  %v3243_v24 = vmul.f32 1.442695, %v2931_v63  ;;  %v2425_v36 = vmax.f32 %v2169_v37, 0.0  ;;  %v2170_v25 = vsub.f32 %v7020_v23, %v1914_v58  ;;  %v3247_v2 = vmul.f32 1.442695, %v2933_v54  ;;  %v5951_v7 = vpop.f32.mrb[54].mxu1 }
 0x14e   :  { %v2932_v29 = vmul.f32 0.03125, %v2676_v9  ;;  %v4169_v38 = vpop.eup %4168  ;;  %3692 = vst [vmem:[#allocation2 + $0x188] sm:$0xff] %v4167_v49  ;;  %v2934_v45 = vmul.f32 0.03125, %v2678_v61  ;;  %v2679_v27 = vsub.f32 0.0, %v2423_v53  ;;  %v2424_v39 = vmax.f32 %v2168_v10, 0.0  ;;  %v5953_v63 = vpop.f32.mrb[55].mxu0 }
 0x14f   :  { %3694 = vst [vmem:[#allocation2 + $0x198] sm:$0xff] %v4169_v38  ;;  %4178 = vpow2.f32 %v3243_v24  ;;  %v2681_v20 = vsub.f32 0.0, %v2425_v36  ;;  %v2426_v35 = vmax.f32 %v2170_v25, 0.0  ;;  %v5955_v9 = vpop.f32.mrb[55].mxu1  ;;  %v5957_v61 = vpop.permute.xlu0 %1356  ;;  %v1915_v24 = vmul.f32 2.0, %v5809_v48  ;;  %v7025_v48 = vld [vmem:[#allocation30_spill] sm:$0xff] }
 0x150   :  { %v3245_v33 = vmul.f32 1.442695, %v2932_v29  ;;  %7021 = vst [vmem:[#allocation15_spill] sm:$0xff] %v5955_v9  ;;  %v4171_v23 = vpop.eup %4170  ;;  %4180 = vpow2.f32 %v3247_v2  ;;  %v3249_v37 = vmul.f32 1.442695, %v2934_v45  ;;  %v2935_v58 = vmul.f32 0.03125, %v2679_v27 }
 0x151   :  { %v2680_v49 = vsub.f32 0.0, %v2424_v39  ;;  %v4173_v54 = vpop.eup %4172  ;;  %3695 = vst [vmem:[#allocation2 + $0x1a0] sm:$0xff] %v4171_v23  ;;  %v2937_v53 = vmul.f32 0.03125, %v2681_v20  ;;  %v2682_v10 = vsub.f32 0.0, %v2426_v35  ;;  %v5960_v29 = vpop.f32.mrb[56].mxu0  ;;  %v1917_v2 = vmul.f32 2.0, %v5812_v62 }
 0x152   :  { %4182 = vpow2.f32 %v3245_v33  ;;  %7022 = vst [vmem:[#allocation16_spill] sm:$0xff] %v5960_v29  ;;  %v4175_v36 = vpop.eup %4174  ;;  %3697 = vst [vmem:[#allocation2 + $0x1b0] sm:$0xff] %v4173_v54  ;;  %v3251_v25 = vmul.f32 1.442695, %v2935_v58  ;;  %v5963_v45 = vpop.f32.mrb[56].mxu1  ;;  %v2171_v35 = vsub.f32 %v7025_v48, %v1915_v24  ;;  %v1916_v29 = vmul.f32 2.0, %v5814_v16 }
 0x153   :  { %4184 = vpow2.f32 %v3249_v37  ;;  %v2936_v38 = vmul.f32 0.03125, %v2680_v49  ;;  %7023 = vst [vmem:[#allocation17_spill] sm:$0xff] %v5963_v45  ;;  %v5965_v27 = vpop.f32.mrb[57].mxu0  ;;  %v4177_v39 = vpop.eup %4176  ;;  %3696 = vst [vmem:[#allocation2 + $0x1a8] sm:$0xff] %v4175_v36  ;;  %v3255_v33 = vmul.f32 1.442695, %v2937_v53 }
 0x154   :  { %7024 = vst [vmem:[#allocation18_spill] sm:$0xff] %v5965_v27  ;;  %v5967_v23 = vpop.permute.xlu1 %1371  ;;  %v2938_v20 = vmul.f32 0.03125, %v2682_v10  ;;  %v5971_v54 = vpop.f32.mrb[57].mxu1  ;;  %3698 = vst [vmem:[#allocation2 + $0x1b8] sm:$0xff] %v4177_v39  ;;  %4186 = vpow2.f32 %v3251_v25  ;;  %v7027_v62 = vld [vmem:[#allocation31_spill] sm:$0xff]  ;;  %v1918_v49 = vmul.f32 2.0, %v5817_v8 }
 0x155   :  { %7026 = vst [vmem:[#allocation19_spill] sm:$0xff] %v5971_v54  ;;  %v3253_v37 = vmul.f32 1.442695, %v2936_v38  ;;  %v2173_v58 = vsub.f32 %v7027_v62, %v1917_v2  ;;  %4188 = vpow2.f32 %v3255_v33  ;;  %v2427_v45 = vmax.f32 %v2171_v35, 0.0  ;;  %v7028_v9 = vld [vmem:[#allocation32_spill] sm:$0xff]  ;;  %v5976_v53 = vpop.f32.mrb[58].mxu0  ;;  %v5984_v38 = vpop.permute.xlu0 %1366 }
 0x156   :  { %v3257_v27 = vmul.f32 1.442695, %v2938_v20  ;;  %v2172_v36 = vsub.f32 %v7028_v9, %v1916_v29  ;;  %7029 = vst [vmem:[#allocation20_spill] sm:$0xff] %v5976_v53  ;;  %v7030_v24 = vld [vmem:[#allocation33_spill] sm:$0xff]  ;;  %v1919_v48 = vmul.f32 2.0, %v5819_v51  ;;  %v5980_v39 = vpop.f32.mrb[58].mxu1 }
 0x157   :  { %4190 = vpow2.f32 %v3253_v37  ;;  %v2429_v10 = vmax.f32 %v2173_v58, 0.0  ;;  %v2174_v16 = vsub.f32 %v7030_v24, %v1918_v49  ;;  %7031 = vst [vmem:[#allocation21_spill] sm:$0xff] %v5980_v39  ;;  %v5982_v25 = vpop.f32.mrb[59].mxu0  ;;  %v2683_v8 = vsub.f32 0.0, %v2427_v45  ;;  %v5987_v9 = vpop.f32.mrb[59].mxu1  ;;  %v7034_v35 = vld [vmem:[#allocation34_spill] sm:$0xff] }
 0x158   :  { %7032 = vst [vmem:[#allocation22_spill] sm:$0xff] %v5982_v25  ;;  %4192 = vpow2.f32 %v3257_v27  ;;  %v2428_v2 = vmax.f32 %v2172_v36, 0.0  ;;  %v1921_v33 = vmul.f32 2.0, %v5821_v14  ;;  %7033 = vst [vmem:[#allocation23_spill] sm:$0xff] %v5987_v9  ;;  %v2175_v37 = vsub.f32 %v7034_v35, %v1919_v48  ;;  %v5991_v58 = vpop.permute.xlu1 %1381  ;;  %v7035_v25 = vld [vmem:[#allocation35_spill] sm:$0xff]  ;;  %v5995_v27 = vpop.f32.mrb[60].mxu0 }
 0x159   :  { %v2685_v29 = vsub.f32 0.0, %v2429_v10  ;;  %v2430_v20 = vmax.f32 %v2174_v16, 0.0  ;;  %v1920_v62 = vmul.f32 2.0, %v5823_v32  ;;  %v4179_v51 = vpop.eup %4178  ;;  %v2939_v49 = vmul.f32 0.03125, %v2683_v8  ;;  %7036 = vst [vmem:[#allocation24_spill] sm:$0xff] %v5995_v27  ;;  %v7037_v9 = vld [vmem:[#allocation36_spill] sm:$0xff] }
 0x15a   :  { %v2684_v24 = vsub.f32 0.0, %v2428_v2  ;;  %v2177_v39 = vsub.f32 %v7035_v25, %v1921_v33  ;;  %v1922_v45 = vmul.f32 2.0, %v5826_v0  ;;  %v4181_v14 = vpop.eup %4180  ;;  %3699 = vst [vmem:[#allocation2 + $0x1c0] sm:$0xff] %v4179_v51  ;;  %v2431_v16 = vmax.f32 %v2175_v37, 0.0  ;;  %v5998_v35 = vpop.f32.mrb[60].mxu1  ;;  %v7039_v33 = vld [vmem:[#allocation37_spill] sm:$0xff] }
 0x15b   :  { %v2941_v36 = vmul.f32 0.03125, %v2685_v29  ;;  %v2686_v10 = vsub.f32 0.0, %v2430_v20  ;;  %v2176_v48 = vsub.f32 %v7037_v9, %v1920_v62  ;;  %v6000_v32 = vpop.f32.mrb[61].mxu0  ;;  %3701 = vst [vmem:[#allocation2 + $0x1d0] sm:$0xff] %v4181_v14  ;;  %v3259_v8 = vmul.f32 1.442695, %v2939_v49  ;;  %v6005_v9 = vpop.permute.xlu0 %1376 }
 0x15c   :  { %7038 = vst [vmem:[#allocation25_spill] sm:$0xff] %v6000_v32  ;;  %v4183_v53 = vpop.eup %4182  ;;  %v2940_v2 = vmul.f32 0.03125, %v2684_v24  ;;  %v2433_v25 = vmax.f32 %v2177_v39, 0.0  ;;  %v2178_v0 = vsub.f32 %v7039_v33, %v1922_v45  ;;  %v6003_v54 = vpop.f32.mrb[61].mxu1  ;;  %v2687_v37 = vsub.f32 0.0, %v2431_v16 }
 0x15d   :  { %7040 = vst [vmem:[#allocation26_spill] sm:$0xff] %v6003_v54  ;;  %v4185_v27 = vpop.eup %4184  ;;  %3700 = vst [vmem:[#allocation2 + $0x1c8] sm:$0xff] %v4183_v53  ;;  %v3263_v29 = vmul.f32 1.442695, %v2941_v36  ;;  %v2942_v20 = vmul.f32 0.03125, %v2686_v10  ;;  %v2432_v51 = vmax.f32 %v2176_v48, 0.0  ;;  %4194 = vpow2.f32 %v3259_v8  ;;  %v6013_v10 = vpop.permute.xlu1 %1391 }
 0x15e   :  { %3702 = vst [vmem:[#allocation2 + $0x1d8] sm:$0xff] %v4185_v27  ;;  %v3261_v62 = vmul.f32 1.442695, %v2940_v2  ;;  %v2689_v32 = vsub.f32 0.0, %v2433_v25  ;;  %v2434_v14 = vmax.f32 %v2178_v0, 0.0  ;;  %v6007_v49 = vpop.f32.mrb[62].mxu0  ;;  %v4187_v39 = vpop.eup %4186 }
 0x15f   :  { %4196 = vpow2.f32 %v3263_v29  ;;  %v3265_v24 = vmul.f32 1.442695, %v2942_v20  ;;  %v2943_v45 = vmul.f32 0.03125, %v2687_v37  ;;  %v2688_v33 = vsub.f32 0.0, %v2432_v51  ;;  %v6009_v54 = vpop.f32.mrb[62].mxu1  ;;  %v6011_v53 = vpop.f32.mrb[63].mxu0 }
 0x160   :  { %7041 = vst [vmem:[#allocation27_spill] sm:$0xff] %v6011_v53  ;;  %v4189_v36 = vpop.eup %4188  ;;  %3703 = vst [vmem:[#allocation2 + $0x1e0] sm:$0xff] %v4187_v39  ;;  %4198 = vpow2.f32 %v3261_v62  ;;  %v2945_v27 = vmul.f32 0.03125, %v2689_v32  ;;  %v2690_v16 = vsub.f32 0.0, %v2434_v14  ;;  %v1923_v48 = vmul.f32 2.0, %v5831_v5  ;;  %v6016_v8 = vpop.f32.mrb[63].mxu1 }
 0x161   :  { %v4191_v2 = vpop.eup %4190  ;;  %3705 = vst [vmem:[#allocation2 + $0x1f0] sm:$0xff] %v4189_v36  ;;  %4200 = vpow2.f32 %v3265_v24  ;;  %v3267_v25 = vmul.f32 1.442695, %v2943_v45  ;;  %v2944_v0 = vmul.f32 0.03125, %v2688_v33  ;;  %v1925_v29 = vmul.f32 2.0, %v5835_v43  ;;  %v7042_v53 = vld [vmem:[#allocation38_spill] sm:$0xff] }
 0x162   :  { %v4193_v20 = vpop.eup %4192  ;;  %3704 = vst [vmem:[#allocation2 + $0x1e8] sm:$0xff] %v4191_v2  ;;  %v3271_v37 = vmul.f32 1.442695, %v2945_v27  ;;  %v2946_v51 = vmul.f32 0.03125, %v2690_v16  ;;  %v2179_v39 = vsub.f32 %v7042_v53, %v1923_v48  ;;  %v1924_v32 = vmul.f32 2.0, %v5837_v42  ;;  %v6021_v62 = vpop.f32.mrb[64].mxu0 }
 0x163   :  { %7043 = vst [vmem:[#allocation28_spill] sm:$0xff] %v6021_v62  ;;  %3706 = vst [vmem:[#allocation2 + $0x1f8] sm:$0xff] %v4193_v20  ;;  %4202 = vpow2.f32 %v3267_v25  ;;  %v3269_v5 = vmul.f32 1.442695, %v2944_v0  ;;  %v7044_v14 = vld [vmem:[#allocation39_spill] sm:$0xff]  ;;  %v1926_v24 = vmul.f32 2.0, %v5840_v1  ;;  %v6032_v42 = vpop.permute.xlu0 %1386  ;;  %v6036_v1 = vpop.permute.xlu1 %1401 }
 0x164   :  { %v2181_v36 = vsub.f32 %v7044_v14, %v1925_v29  ;;  %v6025_v45 = vpop.f32.mrb[64].mxu1  ;;  %v6027_v43 = vpop.f32.mrb[65].mxu0  ;;  %4204 = vpow2.f32 %v3271_v37  ;;  %v3273_v33 = vmul.f32 1.442695, %v2946_v51  ;;  %v2435_v27 = vmax.f32 %v2179_v39, 0.0  ;;  %v7047_v16 = vld [vmem:[#allocation41_spill] sm:$0xff] }
 0x165   :  { %7045 = vst [vmem:[#allocation29_spill] sm:$0xff] %v6025_v45  ;;  %7046 = vst [vmem:[#allocation30_spill] sm:$0xff] %v6027_v43  ;;  %v2180_v53 = vsub.f32 %v7047_v16, %v1924_v32  ;;  %v6030_v48 = vpop.f32.mrb[65].mxu1  ;;  %4206 = vpow2.f32 %v3269_v5  ;;  %v2182_v25 = vsub.f32 %v5573_v13, %v1926_v24  ;;  %v1927_v0 = vmul.f32 2.0, %v5845_v12  ;;  %v6039_v51 = vpop.f32.mrb[66].mxu0  ;;  %v7050_v14 = vld [vmem:[#allocation42_spill] sm:$0xff] }
 0x166   :  { %7048 = vst [vmem:[#allocation31_spill] sm:$0xff] %v6030_v48  ;;  %v2437_v2 = vmax.f32 %v2181_v36, 0.0  ;;  %4208 = vpow2.f32 %v3273_v33  ;;  %v2691_v29 = vsub.f32 0.0, %v2435_v27  ;;  %v1929_v37 = vmul.f32 2.0, %v5849_v4  ;;  %7049 = vst [vmem:[#allocation32_spill] sm:$0xff] %v6039_v51  ;;  %v6043_v36 = vpop.f32.mrb[66].mxu1 }
 0x167   :  { %v2436_v20 = vmax.f32 %v2180_v53, 0.0  ;;  %v2438_v32 = vmax.f32 %v2182_v25, 0.0  ;;  %v2183_v16 = vsub.f32 %v7050_v14, %v1927_v0  ;;  %v1928_v5 = vmul.f32 2.0, %v5851_v15  ;;  %7051 = vst [vmem:[#allocation33_spill] sm:$0xff] %v6043_v36  ;;  %v6045_v13 = vpop.f32.mrb[67].mxu0  ;;  %v4195_v12 = vpop.eup %4194  ;;  %v7053_v33 = vld [vmem:[#allocation43_spill] sm:$0xff] }
 0x168   :  { %v2693_v39 = vsub.f32 0.0, %v2437_v2  ;;  %7052 = vst [vmem:[#allocation34_spill] sm:$0xff] %v6045_v13  ;;  %v2947_v24 = vmul.f32 0.03125, %v2691_v29  ;;  %v2185_v27 = vsub.f32 %v7053_v33, %v1929_v37  ;;  %v7054_v53 = vld [vmem:[#allocation40_spill] sm:$0xff]  ;;  %v6050_v45 = vpop.f32.mrb[67].mxu1  ;;  %3707 = vst [vmem:[#allocation2 + $0x200] sm:$0xff] %v4195_v12 }
 0x169   :  { %v2692_v48 = vsub.f32 0.0, %v2436_v20  ;;  %v7055_v43 = vld [vmem:[#allocation8_spill] sm:$0xff]  ;;  %7056 = vst [vmem:[#allocation35_spill] sm:$0xff] %v6050_v45  ;;  %v4197_v2 = vpop.eup %4196  ;;  %v2694_v0 = vsub.f32 0.0, %v2438_v32  ;;  %v2439_v14 = vmax.f32 %v2183_v16, 0.0  ;;  %v1930_v20 = vmul.f32 2.0, %v5855_v30 }
 0x16a   :  { %v1674_v4 = vadd.f32 %v7055_v43, %v7054_v53  ;;  %v2949_v25 = vmul.f32 0.03125, %v2693_v39  ;;  %v7057_v15 = vld [vmem:[#allocation44_spill] sm:$0xff]  ;;  %v4199_v36 = vpop.eup %4198  ;;  %3709 = vst [vmem:[#allocation2 + $0x210] sm:$0xff] %v4197_v2  ;;  %v3275_v13 = vmul.f32 1.442695, %v2947_v24  ;;  %v2441_v29 = vmax.f32 %v2185_v27, 0.0  ;;  %v6056_v53 = vpop.permute.xlu0 %1396 }
 0x16b   :  { %v2184_v51 = vsub.f32 %v7057_v15, %v1928_v5  ;;  %v2948_v62 = vmul.f32 0.03125, %v2692_v48  ;;  %v6054_v37 = vpop.f32.mrb[68].mxu0  ;;  %v4201_v33 = vpop.eup %4200  ;;  %3708 = vst [vmem:[#allocation2 + $0x208] sm:$0xff] %v4199_v36  ;;  %v2950_v12 = vmul.f32 0.03125, %v2694_v0  ;;  %v2695_v39 = vsub.f32 0.0, %v2439_v14 }
 0x16c   :  { %v3279_v45 = vmul.f32 1.442695, %v2949_v25  ;;  %v6058_v16 = vpop.f32.mrb[68].mxu1  ;;  %3710 = vst [vmem:[#allocation2 + $0x218] sm:$0xff] %v4201_v33  ;;  %4210 = vpow2.f32 %v3275_v13  ;;  %v2697_v24 = vsub.f32 0.0, %v2441_v29  ;;  %v2186_v48 = vsub.f32 %v1674_v4, %v1930_v20  ;;  %v6060_v27 = vpop.f32.mrb[69].mxu0 }
 0x16d   :  { %v2440_v32 = vmax.f32 %v2184_v51, 0.0  ;;  %7058 = vst [vmem:[#allocation36_spill] sm:$0xff] %v6058_v16  ;;  %v3277_v5 = vmul.f32 1.442695, %v2948_v62  ;;  %7059 = vst [vmem:[#allocation37_spill] sm:$0xff] %v6060_v27  ;;  %v6062_v30 = vpop.f32.mrb[69].mxu1  ;;  %v4203_v2 = vpop.eup %4202 }
 0x16e   :  { %7060 = vst [vmem:[#allocation38_spill] sm:$0xff] %v6062_v30  ;;  %v6064_v15 = vpop.permute.xlu1 %1411  ;;  %4212 = vpow2.f32 %v3279_v45  ;;  %v3281_v36 = vmul.f32 1.442695, %v2950_v12  ;;  %v2951_v25 = vmul.f32 0.03125, %v2695_v39  ;;  %v4205_v14 = vpop.eup %4204  ;;  %3711 = vst [vmem:[#allocation2 + $0x220] sm:$0xff] %v4203_v2  ;;  %v2953_v51 = vmul.f32 0.03125, %v2697_v24 }
 0x16f   :  { %v2696_v0 = vsub.f32 0.0, %v2440_v32  ;;  %4214 = vpow2.f32 %v3277_v5  ;;  %v2442_v33 = vmax.f32 %v2186_v48, 0.0  ;;  %v7061_v62 = vld [vmem:[#allocation5_spill] sm:$0xff]  ;;  %v4207_v4 = vpop.eup %4206  ;;  %3713 = vst [vmem:[#allocation2 + $0x230] sm:$0xff] %v4205_v14  ;;  %v1931_v30 = vmul.f32 2.0, %v5859_v40  ;;  %v7062_v39 = vld [vmem:[#allocation6_spill] sm:$0xff]  ;;  %v6074_v48 = vpop.permute.xlu0 %1406 }
 0x170   :  { %v1675_v13 = vadd.f32 %v7061_v62, %v5957_v61  ;;  %4216 = vpow2.f32 %v3281_v36  ;;  %v3283_v29 = vmul.f32 1.442695, %v2951_v25  ;;  %v4209_v27 = vpop.eup %4208  ;;  %3712 = vst [vmem:[#allocation2 + $0x228] sm:$0xff] %v4207_v4  ;;  %v3287_v45 = vmul.f32 1.442695, %v2953_v51  ;;  %v6072_v24 = vpop.f32.mrb[70].mxu0 }
 0x171   :  { %v2952_v20 = vmul.f32 0.03125, %v2696_v0  ;;  %v2698_v12 = vsub.f32 0.0, %v2442_v33  ;;  %v1677_v32 = vadd.f32 %v7062_v39, %v5957_v61  ;;  %v1933_v5 = vmul.f32 2.0, %v5861_v34  ;;  %7063 = vst [vmem:[#allocation39_spill] sm:$0xff] %v6072_v24  ;;  %3714 = vst [vmem:[#allocation2 + $0x238] sm:$0xff] %v4209_v27  ;;  %v7064_v25 = vld [vmem:[#allocation7_spill] sm:$0xff] }
 0x172   :  { %4218 = vpow2.f32 %v3283_v29  ;;  %v2187_v36 = vsub.f32 %v1675_v13, %v1931_v30  ;;  %v1676_v40 = vadd.f32 %v7064_v25, %v5957_v61  ;;  %v6078_v0 = vpop.f32.mrb[70].mxu1  ;;  %v1932_v33 = vmul.f32 2.0, %v5863_v19  ;;  %v6081_v4 = vpop.permute.xlu1 %1421 }
 0x173   :  { %v3285_v2 = vmul.f32 1.442695, %v2952_v20  ;;  %7065 = vst [vmem:[#allocation41_spill] sm:$0xff] %v6078_v0  ;;  %4220 = vpow2.f32 %v3287_v45  ;;  %v2954_v14 = vmul.f32 0.03125, %v2698_v12  ;;  %v2189_v51 = vsub.f32 %v1677_v32, %v1933_v5  ;;  %v6086_v30 = vpop.f32.mrb[71].mxu0 }
 0x174   :  { %v2443_v34 = vmax.f32 %v2187_v36, 0.0  ;;  %v1678_v27 = vadd.f32 %v7055_v43, %v5957_v61  ;;  %v1934_v29 = vmul.f32 2.0, %v5865_v3  ;;  %7066 = vst [vmem:[#allocation42_spill] sm:$0xff] %v6086_v30  ;;  %v2188_v24 = vsub.f32 %v1676_v40, %v1932_v33  ;;  %v6096_v40 = vpop.permute.xlu0 %1416 }
 0x175   :  { %4222 = vpow2.f32 %v3285_v2  ;;  %v3289_v13 = vmul.f32 1.442695, %v2954_v14  ;;  %v2445_v20 = vmax.f32 %v2189_v51, 0.0  ;;  %v1679_v45 = vadd.f32 %v7061_v62, %v5946_v57  ;;  %v6093_v2 = vpop.f32.mrb[71].mxu1 }
 0x176   :  { %v2699_v12 = vsub.f32 0.0, %v2443_v34  ;;  %v2190_v32 = vsub.f32 %v1678_v27, %v1934_v29  ;;  %v1935_v19 = vmul.f32 2.0, %v5868_v52  ;;  %v1681_v5 = vadd.f32 %v7062_v39, %v5946_v57  ;;  %7067 = vst [vmem:[#allocation43_spill] sm:$0xff] %v6093_v2  ;;  %v4211_v61 = vpop.eup %4210 }
 0x177   :  { %4224 = vpow2.f32 %v3289_v13  ;;  %v2701_v3 = vsub.f32 0.0, %v2445_v20  ;;  %v2444_v36 = vmax.f32 %v2188_v24, 0.0  ;;  %v1937_v14 = vmul.f32 2.0, %v5871_v59  ;;  %3715 = vst [vmem:[#allocation2 + $0x240] sm:$0xff] %v4211_v61  ;;  %v6101_v20 = vpop.permute.xlu1 %1431 }
 0x178   :  { %v4213_v51 = vpop.eup %4212  ;;  %v2955_v33 = vmul.f32 0.03125, %v2699_v12  ;;  %v2446_v34 = vmax.f32 %v2190_v32, 0.0  ;;  %v2191_v27 = vsub.f32 %v1679_v45, %v1935_v19  ;;  %v1680_v52 = vadd.f32 %v7064_v25, %v5946_v57  ;;  %v6105_v12 = vpop.f32.mrb[72].mxu0 }
 0x179   :  { %v4215_v29 = vpop.eup %4214  ;;  %3717 = vst [vmem:[#allocation2 + $0x250] sm:$0xff] %v4213_v51  ;;  %v2957_v30 = vmul.f32 0.03125, %v2701_v3  ;;  %v2700_v2 = vsub.f32 0.0, %v2444_v36  ;;  %v2193_v0 = vsub.f32 %v1681_v5, %v1937_v14  ;;  %v1936_v13 = vmul.f32 2.0, %v5873_v17  ;;  %7068 = vst [vmem:[#allocation40_spill] sm:$0xff] %v6105_v12 }
 0x17a   :  { %v4217_v24 = vpop.eup %4216  ;;  %3716 = vst [vmem:[#allocation2 + $0x248] sm:$0xff] %v4215_v29  ;;  %v3291_v59 = vmul.f32 1.442695, %v2955_v33  ;;  %v2702_v16 = vsub.f32 0.0, %v2446_v34  ;;  %v2447_v61 = vmax.f32 %v2191_v27, 0.0  ;;  %v1682_v45 = vadd.f32 %v7055_v43, %v5946_v57  ;;  %v6108_v29 = vpop.f32.mrb[72].mxu1 }
 0x17b   :  { %3718 = vst [vmem:[#allocation2 + $0x258] sm:$0xff] %v4217_v24  ;;  %v3295_v32 = vmul.f32 1.442695, %v2957_v30  ;;  %v2956_v19 = vmul.f32 0.03125, %v2700_v2  ;;  %v2449_v3 = vmax.f32 %v2193_v0, 0.0  ;;  %v2192_v36 = vsub.f32 %v1680_v52, %v1936_v13  ;;  %v6110_v24 = vpop.permute.xlu0 %1426 }
 0x17c   :  { %v4219_v5 = vpop.eup %4218  ;;  %4226 = vpow2.f32 %v3291_v59  ;;  %v2958_v17 = vmul.f32 0.03125, %v2702_v16  ;;  %v2703_v14 = vsub.f32 0.0, %v2447_v61  ;;  %v1938_v51 = vmul.f32 2.0, %v5877_v50  ;;  %v6115_v59 = vpop.f32.mrb[73].mxu0 }
 0x17d   :  { %v4221_v33 = vpop.eup %4220  ;;  %3719 = vst [vmem:[#allocation2 + $0x260] sm:$0xff] %v4219_v5  ;;  %4228 = vpow2.f32 %v3295_v32  ;;  %v3293_v34 = vmul.f32 1.442695, %v2956_v19  ;;  %v2705_v57 = vsub.f32 0.0, %v2449_v3  ;;  %v2448_v27 = vmax.f32 %v2192_v36, 0.0  ;;  %v6117_v61 = vpop.permute.xlu1 %1441 }
 0x17e   :  { %3721 = vst [vmem:[#allocation2 + $0x270] sm:$0xff] %v4221_v33  ;;  %v3297_v0 = vmul.f32 1.442695, %v2958_v17  ;;  %v2959_v30 = vmul.f32 0.03125, %v2703_v14  ;;  %v2194_v2 = vsub.f32 %v1682_v45, %v1938_v51  ;;  %v1683_v16 = vadd.f32 %v7061_v62, %v5984_v38 }
 0x17f   :  { %v4223_v12 = vpop.eup %4222  ;;  %4230 = vpow2.f32 %v3293_v34  ;;  %v2961_v50 = vmul.f32 0.03125, %v2705_v57  ;;  %v2704_v52 = vsub.f32 0.0, %v2448_v27  ;;  %v1939_v13 = vmul.f32 2.0, %v5882_v60  ;;  %v6125_v27 = vpop.f32.mrb[73].mxu1 }
 0x180   :  { %3720 = vst [vmem:[#allocation2 + $0x268] sm:$0xff] %v4223_v12  ;;  %4232 = vpow2.f32 %v3297_v0  ;;  %v3299_v32 = vmul.f32 1.442695, %v2959_v30  ;;  %v2450_v19 = vmax.f32 %v2194_v2, 0.0  ;;  %v1685_v3 = vadd.f32 %v7062_v39, %v5984_v38  ;;  %v6127_v0 = vpop.permute.xlu0 %1436 }
 0x181   :  { %v4225_v45 = vpop.eup %4224  ;;  %v3303_v36 = vmul.f32 1.442695, %v2961_v50  ;;  %v2960_v5 = vmul.f32 0.03125, %v2704_v52  ;;  %v2195_v17 = vsub.f32 %v1683_v16, %v1939_v13  ;;  %v1941_v12 = vmul.f32 2.0, %v5886_v46 }
 0x182   :  { %3722 = vst [vmem:[#allocation2 + $0x278] sm:$0xff] %v4225_v45  ;;  %4234 = vpow2.f32 %v3299_v32  ;;  %v2706_v14 = vsub.f32 0.0, %v2450_v19  ;;  %v1684_v60 = vadd.f32 %v7064_v25, %v5984_v38  ;;  %v1940_v51 = vmul.f32 2.0, %v5888_v56  ;;  %v6134_v32 = vpop.permute.xlu1 %1451 }
 0x183   :  { %4236 = vpow2.f32 %v3303_v36  ;;  %v3301_v33 = vmul.f32 1.442695, %v2960_v5  ;;  %v2451_v34 = vmax.f32 %v2195_v17, 0.0  ;;  %v2197_v57 = vsub.f32 %v1685_v3, %v1941_v12 }
 0x184   :  { %v2962_v30 = vmul.f32 0.03125, %v2706_v14  ;;  %v2196_v2 = vsub.f32 %v1684_v60, %v1940_v51  ;;  %v1686_v46 = vadd.f32 %v7055_v43, %v5984_v38  ;;  %v1942_v16 = vmul.f32 2.0, %v5891_v47 }
 0x185   :  { %4238 = vpow2.f32 %v3301_v33  ;;  %v2707_v50 = vsub.f32 0.0, %v2451_v34  ;;  %v2453_v52 = vmax.f32 %v2197_v57, 0.0  ;;  %v1687_v56 = vadd.f32 %v7061_v62, %v5967_v23  ;;  %v6140_v33 = vpop.f32.mrb[74].mxu0 }
 0x186   :  { %v4227_v13 = vpop.eup %4226  ;;  %v3305_v19 = vmul.f32 1.442695, %v2962_v30  ;;  %v2452_v3 = vmax.f32 %v2196_v2, 0.0  ;;  %v2198_v45 = vsub.f32 %v1686_v46, %v1942_v16  ;;  %v1943_v36 = vmul.f32 2.0, %v5897_v21  ;;  %v6144_v16 = vpop.permute.xlu0 %1446 }
 0x187   :  { %v4229_v5 = vpop.eup %4228  ;;  %3723 = vst [vmem:[#allocation2 + $0x280] sm:$0xff] %v4227_v13  ;;  %v2963_v17 = vmul.f32 0.03125, %v2707_v50  ;;  %v2709_v38 = vsub.f32 0.0, %v2453_v52  ;;  %v1689_v47 = vadd.f32 %v7062_v39, %v5967_v23  ;;  %v1945_v12 = vmul.f32 2.0, %v5900_v28  ;;  %v7069_v13 = vld [vmem:[#allocation9_spill] sm:$0xff] }
 0x188   :  { %3725 = vst [vmem:[#allocation2 + $0x290] sm:$0xff] %v4229_v5  ;;  %4240 = vpow2.f32 %v3305_v19  ;;  %v2708_v14 = vsub.f32 0.0, %v2452_v3  ;;  %v2454_v60 = vmax.f32 %v2198_v45, 0.0  ;;  %v2199_v51 = vsub.f32 %v1687_v56, %v1943_v36  ;;  %v6147_v3 = vpop.f32.mrb[74].mxu1 }
 0x189   :  { %v4231_v34 = vpop.eup %4230  ;;  %v3307_v57 = vmul.f32 1.442695, %v2963_v17  ;;  %v2965_v30 = vmul.f32 0.03125, %v2709_v38  ;;  %v2201_v21 = vsub.f32 %v1689_v47, %v1945_v12  ;;  %v1688_v2 = vadd.f32 %v7064_v25, %v5967_v23  ;;  %v6151_v17 = vpop.permute.xlu1 %1461 }
 0x18a   :  { %v4233_v46 = vpop.eup %4232  ;;  %3724 = vst [vmem:[#allocation2 + $0x288] sm:$0xff] %v4231_v34  ;;  %v2964_v50 = vmul.f32 0.03125, %v2708_v14  ;;  %v2710_v28 = vsub.f32 0.0, %v2454_v60  ;;  %v2455_v52 = vmax.f32 %v2199_v51, 0.0  ;;  %v1944_v19 = vmul.f32 2.0, %v7069_v13  ;;  %7070 = vst [vmem:[#allocation8_spill] sm:$0xff] %v6151_v17 }
 0x18b   :  { %3726 = vst [vmem:[#allocation2 + $0x298] sm:$0xff] %v4233_v46  ;;  %4242 = vpow2.f32 %v3307_v57  ;;  %v3311_v56 = vmul.f32 1.442695, %v2965_v30  ;;  %v2457_v45 = vmax.f32 %v2201_v21, 0.0  ;;  %v1690_v36 = vadd.f32 %v7055_v43, %v5967_v23  ;;  %v6153_v60 = vpop.f32.mrb[75].mxu0 }
 0x18c   :  { %v4235_v5 = vpop.eup %4234  ;;  %v3309_v38 = vmul.f32 1.442695, %v2964_v50  ;;  %v2966_v47 = vmul.f32 0.03125, %v2710_v28  ;;  %v2711_v12 = vsub.f32 0.0, %v2455_v52  ;;  %v2200_v14 = vsub.f32 %v1688_v2, %v1944_v19  ;;  %v6158_v50 = vpop.f32.mrb[75].mxu1 }
 0x18d   :  { %v4237_v51 = vpop.eup %4236  ;;  %3727 = vst [vmem:[#allocation2 + $0x2a0] sm:$0xff] %v4235_v5  ;;  %4244 = vpow2.f32 %v3311_v56  ;;  %v2713_v34 = vsub.f32 0.0, %v2457_v45  ;;  %v1946_v57 = vmul.f32 2.0, %v5905_v31  ;;  %v1691_v30 = vadd.f32 %v7061_v62, %v6005_v9  ;;  %v6163_v56 = vpop.permute.xlu0 %1456 }
 0x18e   :  { %3729 = vst [vmem:[#allocation2 + $0x2b0] sm:$0xff] %v4237_v51  ;;  %4246 = vpow2.f32 %v3309_v38  ;;  %v3313_v23 = vmul.f32 1.442695, %v2966_v47  ;;  %v2967_v21 = vmul.f32 0.03125, %v2711_v12  ;;  %v2456_v46 = vmax.f32 %v2200_v14, 0.0  ;;  %v6168_v51 = vpop.permute.xlu1 %1471 }
 0x18f   :  { %v4239_v28 = vpop.eup %4238  ;;  %v2969_v2 = vmul.f32 0.03125, %v2713_v34  ;;  %v2202_v52 = vsub.f32 %v1690_v36, %v1946_v57  ;;  %v1947_v13 = vmul.f32 2.0, %v5907_v44  ;;  %v1693_v19 = vadd.f32 %v7062_v39, %v6005_v9  ;;  %7071 = vst [vmem:[#allocation44_spill] sm:$0xff] %v6168_v51 }
 0x190   :  { %3728 = vst [vmem:[#allocation2 + $0x2a8] sm:$0xff] %v4239_v28  ;;  %4248 = vpow2.f32 %v3313_v23  ;;  %v3315_v31 = vmul.f32 1.442695, %v2967_v21  ;;  %v2712_v45 = vsub.f32 0.0, %v2456_v46  ;;  %v1949_v5 = vmul.f32 2.0, %v5909_v26  ;;  %v6173_v46 = vpop.f32.mrb[76].mxu0 }
 0x191   :  { %v3319_v38 = vmul.f32 1.442695, %v2969_v2  ;;  %v2458_v47 = vmax.f32 %v2202_v52, 0.0  ;;  %v2203_v12 = vsub.f32 %v1691_v30, %v1947_v13  ;;  %v1692_v14 = vadd.f32 %v7064_v25, %v6005_v9 }
 0x192   :  { %v4241_v36 = vpop.eup %4240  ;;  %4250 = vpow2.f32 %v3315_v31  ;;  %v2968_v44 = vmul.f32 0.03125, %v2712_v45  ;;  %v2205_v34 = vsub.f32 %v1693_v19, %v1949_v5  ;;  %v1948_v57 = vmul.f32 2.0, %v5911_v41  ;;  %v6179_v5 = vpop.f32.mrb[76].mxu1 }
 0x193   :  { %3730 = vst [vmem:[#allocation2 + $0x2b8] sm:$0xff] %v4241_v36  ;;  %4252 = vpow2.f32 %v3319_v38  ;;  %v2714_v23 = vsub.f32 0.0, %v2458_v47  ;;  %v2459_v21 = vmax.f32 %v2203_v12, 0.0  ;;  %v1694_v26 = vadd.f32 %v7055_v43, %v6005_v9  ;;  %v6181_v38 = vpop.permute.xlu0 %1466 }
 0x194   :  { %v3317_v30 = vmul.f32 1.442695, %v2968_v44  ;;  %v2461_v28 = vmax.f32 %v2205_v34, 0.0  ;;  %v2204_v2 = vsub.f32 %v1692_v14, %v1948_v57  ;;  %v1950_v52 = vmul.f32 2.0, %v5914_v55  ;;  %7072 = vst [vmem:[#allocation5_spill] sm:$0xff] %v6181_v38 }
 0x195   :  { %v4243_v13 = vpop.eup %4242  ;;  %v2970_v31 = vmul.f32 0.03125, %v2714_v23  ;;  %v2715_v45 = vsub.f32 0.0, %v2459_v21  ;;  %v1695_v41 = vadd.f32 %v7061_v62, %v5991_v58  ;;  %v1951_v19 = vmul.f32 2.0, %v5919_v22  ;;  %v6185_v23 = vpop.permute.xlu1 %1481 }
 0x196   :  { %3731 = vst [vmem:[#allocation2 + $0x2c0] sm:$0xff] %v4243_v13  ;;  %4254 = vpow2.f32 %v3317_v30  ;;  %v2717_v9 = vsub.f32 0.0, %v2461_v28  ;;  %v2460_v47 = vmax.f32 %v2204_v2, 0.0  ;;  %v2206_v12 = vsub.f32 %v1694_v26, %v1950_v52  ;;  %7073 = vst [vmem:[#allocation6_spill] sm:$0xff] %v6185_v23  ;;  %v6188_v30 = vpop.f32.mrb[77].mxu0 }
 0x197   :  { %v4245_v14 = vpop.eup %4244  ;;  %v3321_v36 = vmul.f32 1.442695, %v2970_v31  ;;  %v2971_v55 = vmul.f32 0.03125, %v2715_v45  ;;  %v2207_v44 = vsub.f32 %v1695_v41, %v1951_v19  ;;  %v1697_v34 = vadd.f32 %v7062_v39, %v5991_v58 }
 0x198   :  { %v4247_v57 = vpop.eup %4246  ;;  %3733 = vst [vmem:[#allocation2 + $0x2d0] sm:$0xff] %v4245_v14  ;;  %v2973_v22 = vmul.f32 0.03125, %v2717_v9  ;;  %v2716_v21 = vsub.f32 0.0, %v2460_v47  ;;  %v2462_v13 = vmax.f32 %v2206_v12, 0.0  ;;  %v1953_v51 = vmul.f32 2.0, %v5923_v18  ;;  %v6192_v14 = vpop.f32.mrb[77].mxu1 }
 0x199   :  { %3732 = vst [vmem:[#allocation2 + $0x2c8] sm:$0xff] %v4247_v57  ;;  %4256 = vpow2.f32 %v3321_v36  ;;  %v3323_v26 = vmul.f32 1.442695, %v2971_v55  ;;  %v2463_v28 = vmax.f32 %v2207_v44, 0.0  ;;  %v1696_v2 = vadd.f32 %v7064_v25, %v5991_v58  ;;  %v6197_v36 = vpop.permute.xlu0 %1476 }
 0x19a   :  { %v4249_v52 = vpop.eup %4248  ;;  %v3327_v31 = vmul.f32 1.442695, %v2973_v22  ;;  %v2972_v45 = vmul.f32 0.03125, %v2716_v21  ;;  %v2718_v41 = vsub.f32 0.0, %v2462_v13  ;;  %v2209_v19 = vsub.f32 %v1697_v34, %v1953_v51  ;;  %7074 = vst [vmem:[#allocation7_spill] sm:$0xff] %v6197_v36  ;;  %v7075_v21 = vld [vmem:[#allocation10_spill] sm:$0xff] }
 0x19b   :  { %3734 = vst [vmem:[#allocation2 + $0x2d8] sm:$0xff] %v4249_v52  ;;  %4258 = vpow2.f32 %v3323_v26  ;;  %v2719_v9 = vsub.f32 0.0, %v2463_v28  ;;  %v1952_v18 = vmul.f32 2.0, %v5925_v6  ;;  %v1698_v47 = vadd.f32 %v7055_v43, %v5991_v58  ;;  %v6202_v6 = vpop.f32.mrb[78].mxu0  ;;  %v6204_v58 = vpop.permute.xlu1 %1491 }
 0x19c   :  { %v4251_v12 = vpop.eup %4250  ;;  %4260 = vpow2.f32 %v3327_v31  ;;  %v3325_v55 = vmul.f32 1.442695, %v2972_v45  ;;  %v2974_v44 = vmul.f32 0.03125, %v2718_v41  ;;  %v2465_v57 = vmax.f32 %v2209_v19, 0.0  ;;  %7076 = vst [vmem:[#allocation9_spill] sm:$0xff] %v6204_v58  ;;  %v7077_v31 = vld [vmem:[#allocation11_spill] sm:$0xff] }
 0x19d   :  { %v4253_v22 = vpop.eup %4252  ;;  %3735 = vst [vmem:[#allocation2 + $0x2e0] sm:$0xff] %v4251_v12  ;;  %v2975_v51 = vmul.f32 0.03125, %v2719_v9  ;;  %v2208_v34 = vsub.f32 %v1696_v2, %v1952_v18  ;;  %v1954_v13 = vmul.f32 2.0, %v7075_v21  ;;  %v1699_v26 = vadd.f32 %v7061_v62, %v6032_v42  ;;  %v6209_v9 = vpop.f32.mrb[78].mxu1 }
 0x19e   :  { %3737 = vst [vmem:[#allocation2 + $0x2f0] sm:$0xff] %v4253_v22  ;;  %4262 = vpow2.f32 %v3325_v55  ;;  %v3329_v28 = vmul.f32 1.442695, %v2974_v44  ;;  %v2721_v52 = vsub.f32 0.0, %v2465_v57  ;;  %v1955_v45 = vmul.f32 2.0, %v7077_v31  ;;  %v7078_v22 = vld [vmem:[#allocation12_spill] sm:$0xff]  ;;  %v6216_v57 = vpop.permute.xlu0 %1486 }
 0x19f   :  { %v3331_v41 = vmul.f32 1.442695, %v2975_v51  ;;  %v2464_v19 = vmax.f32 %v2208_v34, 0.0  ;;  %v2210_v12 = vsub.f32 %v1698_v47, %v1954_v13  ;;  %v1701_v2 = vadd.f32 %v7062_v39, %v6032_v42  ;;  %v6212_v58 = vpop.f32.mrb[79].mxu0  ;;  %7079 = vst [vmem:[#allocation10_spill] sm:$0xff] %v6216_v57  ;;  %v7080_v31 = vld [vmem:[#allocation13_spill] sm:$0xff] }
 0x1a0   :  { %v4255_v18 = vpop.eup %4254  ;;  %4264 = vpow2.f32 %v3329_v28  ;;  %v2977_v21 = vmul.f32 0.03125, %v2721_v52  ;;  %v2211_v23 = vsub.f32 %v1699_v26, %v1955_v45  ;;  %v1957_v36 = vmul.f32 2.0, %v7078_v22 }
 0x1a1   :  { %3736 = vst [vmem:[#allocation2 + $0x2e8] sm:$0xff] %v4255_v18  ;;  %4266 = vpow2.f32 %v3331_v41  ;;  %v2720_v55 = vsub.f32 0.0, %v2464_v19  ;;  %v2466_v44 = vmax.f32 %v2210_v12, 0.0  ;;  %v1700_v47 = vadd.f32 %v7064_v25, %v6032_v42  ;;  %v7081_v18 = vld [vmem:[#allocation14_spill] sm:$0xff]  ;;  %v6222_v19 = vpop.f32.mrb[79].mxu1  ;;  %v6224_v12 = vpop.permute.xlu1 %1501 }
 0x1a2   :  { %v3335_v51 = vmul.f32 1.442695, %v2977_v21  ;;  %v2467_v34 = vmax.f32 %v2211_v23, 0.0  ;;  %v2213_v13 = vsub.f32 %v1701_v2, %v1957_v36  ;;  %v1956_v28 = vmul.f32 2.0, %v7080_v31  ;;  %7082 = vst [vmem:[#allocation11_spill] sm:$0xff] %v6224_v12 }
 0x1a3   :  { %v4257_v52 = vpop.eup %4256  ;;  %v2976_v26 = vmul.f32 0.03125, %v2720_v55  ;;  %v2722_v45 = vsub.f32 0.0, %v2466_v44  ;;  %v1702_v22 = vadd.f32 %v7055_v43, %v6032_v42  ;;  %v1958_v41 = vmul.f32 2.0, %v7081_v18  ;;  %v6228_v44 = vpop.f32.mrb[80].mxu0 }
 0x1a4   :  { %3738 = vst [vmem:[#allocation2 + $0x2f8] sm:$0xff] %v4257_v52  ;;  %4268 = vpow2.f32 %v3335_v51  ;;  %v2723_v57 = vsub.f32 0.0, %v2467_v34  ;;  %v2469_v21 = vmax.f32 %v2213_v13, 0.0  ;;  %v2212_v23 = vsub.f32 %v1700_v47, %v1956_v28 }
 0x1a5   :  { %v4259_v36 = vpop.eup %4258  ;;  %v3333_v2 = vmul.f32 1.442695, %v2976_v26  ;;  %v2978_v31 = vmul.f32 0.03125, %v2722_v45  ;;  %v2214_v38 = vsub.f32 %v1702_v22, %v1958_v41  ;;  %v1703_v55 = vadd.f32 %v7061_v62, %v6013_v10  ;;  %v6233_v26 = vpop.permute.xlu0 %1496 }
 0x1a6   :  { %v4261_v42 = vpop.eup %4260  ;;  %3739 = vst [vmem:[#allocation2 + $0x300] sm:$0xff] %v4259_v36  ;;  %v2979_v18 = vmul.f32 0.03125, %v2723_v57  ;;  %v2725_v17 = vsub.f32 0.0, %v2469_v21  ;;  %v2468_v52 = vmax.f32 %v2212_v23, 0.0  ;;  %v1959_v51 = vmul.f32 2.0, %v5949_v11  ;;  %7083 = vst [vmem:[#allocation12_spill] sm:$0xff] %v6233_v26 }
 0x1a7   :  { %3741 = vst [vmem:[#allocation2 + $0x310] sm:$0xff] %v4261_v42  ;;  %4270 = vpow2.f32 %v3333_v2  ;;  %v3337_v34 = vmul.f32 1.442695, %v2978_v31  ;;  %v2470_v47 = vmax.f32 %v2214_v38, 0.0  ;;  %v1705_v13 = vadd.f32 %v7062_v39, %v6013_v10  ;;  %v6235_v36 = vpop.f32.mrb[80].mxu1  ;;  %v6240_v2 = vpop.permute.xlu1 %1511 }
 0x1a8   :  { %v4263_v28 = vpop.eup %4262  ;;  %v3339_v45 = vmul.f32 1.442695, %v2979_v18  ;;  %v2981_v22 = vmul.f32 0.03125, %v2725_v17  ;;  %v2724_v41 = vsub.f32 0.0, %v2468_v52  ;;  %v2215_v12 = vsub.f32 %v1703_v55, %v1959_v51  ;;  %7084 = vst [vmem:[#allocation13_spill] sm:$0xff] %v6240_v2  ;;  %v6242_v17 = vpop.f32.mrb[81].mxu0 }
 0x1a9   :  { %3740 = vst [vmem:[#allocation2 + $0x308] sm:$0xff] %v4263_v28  ;;  %4272 = vpow2.f32 %v3337_v34  ;;  %v2726_v57 = vsub.f32 0.0, %v2470_v47  ;;  %v1961_v11 = vmul.f32 2.0, %v5951_v7  ;;  %v1704_v38 = vadd.f32 %v7064_v25, %v6013_v10  ;;  %v6247_v34 = vpop.f32.mrb[81].mxu1 }
 0x1aa   :  { %v4265_v21 = vpop.eup %4264  ;;  %4274 = vpow2.f32 %v3339_v45  ;;  %v3343_v23 = vmul.f32 1.442695, %v2981_v22  ;;  %v2980_v31 = vmul.f32 0.03125, %v2724_v41  ;;  %v2471_v42 = vmax.f32 %v2215_v12, 0.0  ;;  %v7085_v45 = vld [vmem:[#allocation15_spill] sm:$0xff] }
 0x1ab   :  { %v4267_v55 = vpop.eup %4266  ;;  %3742 = vst [vmem:[#allocation2 + $0x318] sm:$0xff] %v4265_v21  ;;  %v2982_v18 = vmul.f32 0.03125, %v2726_v57  ;;  %v2217_v52 = vsub.f32 %v1705_v13, %v1961_v11  ;;  %v1960_v51 = vmul.f32 2.0, %v5953_v63  ;;  %v1706_v7 = vadd.f32 %v7055_v43, %v6013_v10  ;;  %v6252_v13 = vpop.f32.mrb[82].mxu0 }
 0x1ac   :  { %3743 = vst [vmem:[#allocation2 + $0x320] sm:$0xff] %v4267_v55  ;;  %4276 = vpow2.f32 %v3343_v23  ;;  %v3341_v47 = vmul.f32 1.442695, %v2980_v31  ;;  %v2727_v28 = vsub.f32 0.0, %v2471_v42  ;;  %v1962_v22 = vmul.f32 2.0, %v7085_v45  ;;  %7086 = vst [vmem:[#allocation14_spill] sm:$0xff] %v6252_v13  ;;  %v6254_v11 = vpop.permute.xlu0 %1506 }
 0x1ad   :  { %v3345_v12 = vmul.f32 1.442695, %v2982_v18  ;;  %v2473_v41 = vmax.f32 %v2217_v52, 0.0  ;;  %v2216_v2 = vsub.f32 %v1704_v38, %v1960_v51  ;;  %v1707_v57 = vadd.f32 %v7061_v62, %v6056_v53  ;;  %7087 = vst [vmem:[#allocation15_spill] sm:$0xff] %v6254_v11  ;;  %v7088_v55 = vld [vmem:[#allocation16_spill] sm:$0xff]  ;;  %v6257_v31 = vpop.f32.mrb[82].mxu1  ;;  %v6261_v51 = vpop.permute.xlu1 %1521 }
 0x1ae   :  { %v4269_v63 = vpop.eup %4268  ;;  %4278 = vpow2.f32 %v3341_v47  ;;  %v2983_v10 = vmul.f32 0.03125, %v2727_v28  ;;  %v2218_v21 = vsub.f32 %v1706_v7, %v1962_v22  ;;  %v1963_v23 = vmul.f32 2.0, %v7088_v55  ;;  %7089 = vst [vmem:[#allocation16_spill] sm:$0xff] %v6257_v31  ;;  %7090 = vst [vmem:[#allocation45_spill] sm:$0xff] %v6261_v51  ;;  %v7091_v11 = vld [vmem:[#allocation17_spill] sm:$0xff] }
 0x1af   :  { %3745 = vst [vmem:[#allocation2 + $0x330] sm:$0xff] %v4269_v63  ;;  %4280 = vpow2.f32 %v3345_v12  ;;  %v2729_v42 = vsub.f32 0.0, %v2473_v41  ;;  %v2472_v18 = vmax.f32 %v2216_v2, 0.0  ;;  %v1709_v38 = vadd.f32 %v7062_v39, %v6056_v53  ;;  %v7092_v63 = vld [vmem:[#allocation18_spill] sm:$0xff]  ;;  %v6267_v41 = vpop.f32.mrb[83].mxu0 }
 0x1b0   :  { %v3347_v52 = vmul.f32 1.442695, %v2983_v10  ;;  %v2474_v45 = vmax.f32 %v2218_v21, 0.0  ;;  %v2219_v26 = vsub.f32 %v1707_v57, %v1963_v23  ;;  %v1965_v47 = vmul.f32 2.0, %v7091_v11  ;;  %7093 = vst [vmem:[#allocation17_spill] sm:$0xff] %v6267_v41  ;;  %v6273_v13 = vpop.permute.xlu0 %1516 }
 0x1b1   :  { %v4271_v28 = vpop.eup %4270  ;;  %v2985_v7 = vmul.f32 0.03125, %v2729_v42  ;;  %v2728_v22 = vsub.f32 0.0, %v2472_v18  ;;  %v1708_v55 = vadd.f32 %v7064_v25, %v6056_v53  ;;  %v1964_v12 = vmul.f32 2.0, %v7092_v63  ;;  %v6271_v42 = vpop.f32.mrb[83].mxu1  ;;  %7094 = vst [vmem:[#allocation18_spill] sm:$0xff] %v6273_v13 }
 0x1b2   :  { %3744 = vst [vmem:[#allocation2 + $0x328] sm:$0xff] %v4271_v28  ;;  %4282 = vpow2.f32 %v3347_v52  ;;  %v2730_v2 = vsub.f32 0.0, %v2474_v45  ;;  %v2475_v10 = vmax.f32 %v2219_v26, 0.0  ;;  %v2221_v31 = vsub.f32 %v1709_v38, %v1965_v47  ;;  %v7095_v52 = vld [vmem:[#allocation19_spill] sm:$0xff]  ;;  %v6280_v13 = vpop.f32.mrb[84].mxu0 }
 0x1b3   :  { %v4273_v51 = vpop.eup %4272  ;;  %v3351_v21 = vmul.f32 1.442695, %v2985_v7  ;;  %v2984_v57 = vmul.f32 0.03125, %v2728_v22  ;;  %v2220_v23 = vsub.f32 %v1708_v55, %v1964_v12  ;;  %v1710_v11 = vadd.f32 %v7055_v43, %v6056_v53  ;;  %v6278_v12 = vpop.permute.xlu1 %1531 }
 0x1b4   :  { %v4275_v18 = vpop.eup %4274  ;;  %3746 = vst [vmem:[#allocation2 + $0x338] sm:$0xff] %v4273_v51  ;;  %v2986_v63 = vmul.f32 0.03125, %v2730_v2  ;;  %v2731_v41 = vsub.f32 0.0, %v2475_v10  ;;  %v2477_v28 = vmax.f32 %v2221_v31, 0.0  ;;  %v1966_v45 = vmul.f32 2.0, %v7095_v52  ;;  %7096 = vst [vmem:[#allocation19_spill] sm:$0xff] %v6278_v12 }
 0x1b5   :  { %3747 = vst [vmem:[#allocation2 + $0x340] sm:$0xff] %v4275_v18  ;;  %4284 = vpow2.f32 %v3351_v21  ;;  %v3349_v26 = vmul.f32 1.442695, %v2984_v57  ;;  %v2476_v38 = vmax.f32 %v2220_v23, 0.0  ;;  %v1711_v47 = vadd.f32 %v7061_v62, %v6036_v1  ;;  %v7097_v2 = vld [vmem:[#allocation20_spill] sm:$0xff] }
 0x1b6   :  { %v4277_v7 = vpop.eup %4276  ;;  %v3353_v53 = vmul.f32 1.442695, %v2986_v63  ;;  %v2987_v22 = vmul.f32 0.03125, %v2731_v41  ;;  %v2733_v55 = vsub.f32 0.0, %v2477_v28  ;;  %v2222_v51 = vsub.f32 %v1710_v11, %v1966_v45  ;;  %v6285_v41 = vpop.f32.mrb[84].mxu1  ;;  %v7099_v45 = vld [vmem:[#allocation21_spill] sm:$0xff] }
 0x1b7   :  { %3749 = vst [vmem:[#allocation2 + $0x350] sm:$0xff] %v4277_v7  ;;  %4286 = vpow2.f32 %v3349_v26  ;;  %v2732_v31 = vsub.f32 0.0, %v2476_v38  ;;  %v1967_v10 = vmul.f32 2.0, %v7097_v2  ;;  %v1713_v21 = vadd.f32 %v7062_v39, %v6036_v1  ;;  %7098 = vst [vmem:[#allocation20_spill] sm:$0xff] %v6285_v41  ;;  %v6290_v38 = vpop.f32.mrb[85].mxu0 }
 0x1b8   :  { %v4279_v57 = vpop.eup %4278  ;;  %4288 = vpow2.f32 %v3353_v53  ;;  %v3355_v23 = vmul.f32 1.442695, %v2987_v22  ;;  %v2989_v18 = vmul.f32 0.03125, %v2733_v55  ;;  %v2478_v63 = vmax.f32 %v2222_v51, 0.0  ;;  %7100 = vst [vmem:[#allocation21_spill] sm:$0xff] %v6290_v38  ;;  %v6292_v53 = vpop.permute.xlu0 %1526  ;;  %v7102_v55 = vld [vmem:[#allocation22_spill] sm:$0xff] }
 0x1b9   :  { %v4281_v28 = vpop.eup %4280  ;;  %3748 = vst [vmem:[#allocation2 + $0x348] sm:$0xff] %v4279_v57  ;;  %v2988_v11 = vmul.f32 0.03125, %v2732_v31  ;;  %v2223_v52 = vsub.f32 %v1711_v47, %v1967_v10  ;;  %v1969_v7 = vmul.f32 2.0, %v7099_v45  ;;  %v1712_v26 = vadd.f32 %v7064_v25, %v6036_v1  ;;  %7101 = vst [vmem:[#allocation46_spill] sm:$0xff] %v6292_v53  ;;  %v6297_v31 = vpop.f32.mrb[85].mxu1 }
 0x1ba   :  { %3750 = vst [vmem:[#allocation2 + $0x358] sm:$0xff] %v4281_v28  ;;  %4290 = vpow2.f32 %v3355_v23  ;;  %v3359_v2 = vmul.f32 1.442695, %v2989_v18  ;;  %v2734_v22 = vsub.f32 0.0, %v2478_v63  ;;  %v1968_v51 = vmul.f32 2.0, %v7102_v55  ;;  %7103 = vst [vmem:[#allocation22_spill] sm:$0xff] %v6297_v31  ;;  %v6299_v38 = vpop.permute.xlu1 %1541 }
 0x1bb   :  { %v3357_v12 = vmul.f32 1.442695, %v2988_v11  ;;  %v2479_v41 = vmax.f32 %v2223_v52, 0.0  ;;  %v2225_v57 = vsub.f32 %v1713_v21, %v1969_v7  ;;  %v1714_v47 = vadd.f32 %v7055_v43, %v6036_v1  ;;  %7104 = vst [vmem:[#allocation47_spill] sm:$0xff] %v6299_v38  ;;  %v7105_v18 = vld [vmem:[#allocation23_spill] sm:$0xff]  ;;  %v6302_v53 = vpop.f32.mrb[86].mxu0 }
 0x1bc   :  { %v4283_v10 = vpop.eup %4282  ;;  %4292 = vpow2.f32 %v3359_v2  ;;  %v2990_v45 = vmul.f32 0.03125, %v2734_v22  ;;  %v2224_v23 = vsub.f32 %v1712_v26, %v1968_v51  ;;  %v1970_v28 = vmul.f32 2.0, %v7105_v18  ;;  %v7106_v55 = vld [vmem:[#allocation24_spill] sm:$0xff] }
 0x1bd   :  { %3751 = vst [vmem:[#allocation2 + $0x360] sm:$0xff] %v4283_v10  ;;  %4294 = vpow2.f32 %v3357_v12  ;;  %v2735_v63 = vsub.f32 0.0, %v2479_v41  ;;  %v2481_v11 = vmax.f32 %v2225_v57, 0.0  ;;  %v1715_v21 = vadd.f32 %v7061_v62, %v6074_v48  ;;  %v6310_v10 = vpop.f32.mrb[86].mxu1  ;;  %v6312_v12 = vpop.permute.xlu0 %1536 }
 0x1be   :  { %v3361_v1 = vmul.f32 1.442695, %v2990_v45  ;;  %v2480_v52 = vmax.f32 %v2224_v23, 0.0  ;;  %v2226_v7 = vsub.f32 %v1714_v47, %v1970_v28  ;;  %v1971_v2 = vmul.f32 2.0, %v7106_v55  ;;  %7107 = vst [vmem:[#allocation23_spill] sm:$0xff] %v6310_v10  ;;  %7108 = vst [vmem:[#allocation24_spill] sm:$0xff] %v6312_v12 }
 0x1bf   :  { %v4285_v22 = vpop.eup %4284  ;;  %v2991_v31 = vmul.f32 0.03125, %v2735_v63  ;;  %v2737_v38 = vsub.f32 0.0, %v2481_v11  ;;  %v1717_v26 = vadd.f32 %v7062_v39, %v6074_v48  ;;  %v1973_v51 = vmul.f32 2.0, %v5998_v35  ;;  %v6316_v11 = vpop.f32.mrb[87].mxu0  ;;  %v7111_v12 = vld [vmem:[#allocation25_spill] sm:$0xff] }
 0x1c0   :  { %3753 = vst [vmem:[#allocation2 + $0x370] sm:$0xff] %v4285_v22  ;;  %4296 = vpow2.f32 %v3361_v1  ;;  %v2736_v41 = vsub.f32 0.0, %v2480_v52  ;;  %v2482_v57 = vmax.f32 %v2226_v7, 0.0  ;;  %v2227_v45 = vsub.f32 %v1715_v21, %v1971_v2  ;;  %7109 = vst [vmem:[#allocation48_spill] sm:$0xff] %v6316_v11  ;;  %v6318_v1 = vpop.permute.xlu1 %1551 }
 0x1c1   :  { %v4287_v47 = vpop.eup %4286  ;;  %v3363_v23 = vmul.f32 1.442695, %v2991_v31  ;;  %v2993_v18 = vmul.f32 0.03125, %v2737_v38  ;;  %v2229_v28 = vsub.f32 %v1717_v26, %v1973_v51  ;;  %v1716_v63 = vadd.f32 %v7064_v25, %v6074_v48  ;;  %7110 = vst [vmem:[#allocation49_spill] sm:$0xff] %v6318_v1 }
 0x1c2   :  { %v4289_v55 = vpop.eup %4288  ;;  %3752 = vst [vmem:[#allocation2 + $0x368] sm:$0xff] %v4287_v47  ;;  %v2992_v35 = vmul.f32 0.03125, %v2736_v41  ;;  %v2738_v10 = vsub.f32 0.0, %v2482_v57  ;;  %v2483_v22 = vmax.f32 %v2227_v45, 0.0  ;;  %v1972_v52 = vmul.f32 2.0, %v7111_v12  ;;  %v6323_v47 = vpop.f32.mrb[87].mxu1 }
 0x1c3   :  { %3754 = vst [vmem:[#allocation2 + $0x378] sm:$0xff] %v4289_v55  ;;  %4298 = vpow2.f32 %v3363_v23  ;;  %v3367_v21 = vmul.f32 1.442695, %v2993_v18  ;;  %v2485_v31 = vmax.f32 %v2229_v28, 0.0  ;;  %v1718_v38 = vadd.f32 %v7055_v43, %v6074_v48  ;;  %v7112_v57 = vld [vmem:[#allocation26_spill] sm:$0xff]  ;;  %v6328_v48 = vpop.permute.xlu0 %1546 }
 0x1c4   :  { %v4291_v7 = vpop.eup %4290  ;;  %v3365_v2 = vmul.f32 1.442695, %v2992_v35  ;;  %v2994_v26 = vmul.f32 0.03125, %v2738_v10  ;;  %v2739_v51 = vsub.f32 0.0, %v2483_v22  ;;  %v2228_v11 = vsub.f32 %v1716_v63, %v1972_v52  ;;  %7113 = vst [vmem:[#allocation25_spill] sm:$0xff] %v6328_v48  ;;  %v6330_v10 = vpop.f32.mrb[88].mxu0 }
 0x1c5   :  { %3755 = vst [vmem:[#allocation2 + $0x380] sm:$0xff] %v4291_v7  ;;  %4300 = vpow2.f32 %v3367_v21  ;;  %v2741_v41 = vsub.f32 0.0, %v2485_v31  ;;  %v1974_v45 = vmul.f32 2.0, %v7112_v57  ;;  %v1719_v12 = vadd.f32 %v7061_v62, %v6064_v15  ;;  %v6335_v31 = vpop.f32.mrb[88].mxu1 }
 0x1c6   :  { %v4293_v23 = vpop.eup %4292  ;;  %4302 = vpow2.f32 %v3365_v2  ;;  %v3369_v18 = vmul.f32 1.442695, %v2994_v26  ;;  %v2995_v28 = vmul.f32 0.03125, %v2739_v51  ;;  %v2484_v55 = vmax.f32 %v2228_v11, 0.0  ;;  %v6338_v11 = vpop.permute.xlu1 %1561 }
 0x1c7   :  { %v4295_v63 = vpop.eup %4294  ;;  %3757 = vst [vmem:[#allocation2 + $0x390] sm:$0xff] %v4293_v23  ;;  %v2997_v35 = vmul.f32 0.03125, %v2741_v41  ;;  %v2230_v22 = vsub.f32 %v1718_v38, %v1974_v45  ;;  %v1975_v52 = vmul.f32 2.0, %v6007_v49  ;;  %v1721_v21 = vadd.f32 %v7062_v39, %v6064_v15  ;;  %7114 = vst [vmem:[#allocation26_spill] sm:$0xff] %v6338_v11  ;;  %v6342_v49 = vpop.f32.mrb[89].mxu0 }
 0x1c8   :  { %3756 = vst [vmem:[#allocation2 + $0x388] sm:$0xff] %v4295_v63  ;;  %4304 = vpow2.f32 %v3369_v18  ;;  %v3371_v7 = vmul.f32 1.442695, %v2995_v28  ;;  %v2740_v2 = vsub.f32 0.0, %v2484_v55  ;;  %v1977_v26 = vmul.f32 2.0, %v6009_v54  ;;  %7115 = vst [vmem:[#allocation50_spill] sm:$0xff] %v6342_v49 }
 0x1c9   :  { %v3375_v51 = vmul.f32 1.442695, %v2997_v35  ;;  %v2486_v57 = vmax.f32 %v2230_v22, 0.0  ;;  %v2231_v23 = vsub.f32 %v1719_v12, %v1975_v52  ;;  %v1720_v38 = vadd.f32 %v7064_v25, %v6064_v15  ;;  %v7116_v63 = vld [vmem:[#allocation27_spill] sm:$0xff]  ;;  %v6345_v28 = vpop.f32.mrb[89].mxu1  ;;  %v6349_v52 = vpop.permute.xlu0 %1556 }
 0x1ca   :  { %v4297_v41 = vpop.eup %4296  ;;  %4306 = vpow2.f32 %v3371_v7  ;;  %v2996_v45 = vmul.f32 0.03125, %v2740_v2  ;;  %v2233_v1 = vsub.f32 %v1721_v21, %v1977_v26  ;;  %v1976_v18 = vmul.f32 2.0, %v7116_v63  ;;  %7117 = vst [vmem:[#allocation27_spill] sm:$0xff] %v6345_v28  ;;  %7118 = vst [vmem:[#allocation51_spill] sm:$0xff] %v6349_v52 }
 0x1cb   :  { %3758 = vst [vmem:[#allocation2 + $0x398] sm:$0xff] %v4297_v41  ;;  %4308 = vpow2.f32 %v3375_v51  ;;  %v2742_v54 = vsub.f32 0.0, %v2486_v57  ;;  %v2487_v55 = vmax.f32 %v2231_v23, 0.0  ;;  %v1722_v12 = vadd.f32 %v7055_v43, %v6064_v15  ;;  %v7119_v41 = vld [vmem:[#allocation28_spill] sm:$0xff]  ;;  %v6355_v57 = vpop.f32.mrb[90].mxu0 }
 0x1cc   :  { %v3373_v35 = vmul.f32 1.442695, %v2996_v45  ;;  %v2489_v22 = vmax.f32 %v2233_v1, 0.0  ;;  %v2232_v11 = vsub.f32 %v1720_v38, %v1976_v18  ;;  %v1978_v7 = vmul.f32 2.0, %v6016_v8  ;;  %7120 = vst [vmem:[#allocation28_spill] sm:$0xff] %v6355_v57  ;;  %v1572_v45 = vpop.permute.xlu1 %1571  ;;  %v6365_v49 = vpop.f32.mrb[91].mxu0 }
 0x1cd   :  { %v4299_v2 = vpop.eup %4298  ;;  %v2998_v21 = vmul.f32 0.03125, %v2742_v54  ;;  %v2743_v26 = vsub.f32 0.0, %v2487_v55  ;;  %v1723_v63 = vadd.f32 %v7061_v62, %v6096_v40  ;;  %v1979_v51 = vmul.f32 2.0, %v7119_v41  ;;  %v6359_v55 = vpop.f32.mrb[90].mxu1 }
 0x1ce   :  { %3759 = vst [vmem:[#allocation2 + $0x3a0] sm:$0xff] %v4299_v2  ;;  %4310 = vpow2.f32 %v3373_v35  ;;  %v2745_v15 = vsub.f32 0.0, %v2489_v22  ;;  %v2488_v23 = vmax.f32 %v2232_v11, 0.0  ;;  %v2234_v1 = vsub.f32 %v1722_v12, %v1978_v7  ;;  %7121 = vst [vmem:[#allocation52_spill] sm:$0xff] %v6359_v55  ;;  %v7122_v2 = vld [vmem:[#allocation29_spill] sm:$0xff]  ;;  %v1567_v55 = vpop.permute.xlu0 %1566 }
 0x1cf   :  { %v4301_v52 = vpop.eup %4300  ;;  %v3377_v38 = vmul.f32 1.442695, %v2998_v21  ;;  %v2999_v18 = vmul.f32 0.03125, %v2743_v26  ;;  %v2235_v8 = vsub.f32 %v1723_v63, %v1979_v51  ;;  %v1725_v54 = vadd.f32 %v7062_v39, %v6096_v40 }
 0x1d0   :  { %v4303_v48 = vpop.eup %4302  ;;  %3761 = vst [vmem:[#allocation2 + $0x3b0] sm:$0xff] %v4301_v52  ;;  %v3001_v41 = vmul.f32 0.03125, %v2745_v15  ;;  %v2744_v28 = vsub.f32 0.0, %v2488_v23  ;;  %v2490_v57 = vmax.f32 %v2234_v1, 0.0  ;;  %v1981_v35 = vmul.f32 2.0, %v7122_v2 }
 0x1d1   :  { %3760 = vst [vmem:[#allocation2 + $0x3a8] sm:$0xff] %v4303_v48  ;;  %4312 = vpow2.f32 %v3377_v38  ;;  %v3379_v11 = vmul.f32 1.442695, %v2999_v18  ;;  %v2491_v12 = vmax.f32 %v2235_v8, 0.0  ;;  %v6363_v22 = vadd.f32 %v7061_v62, %v1572_v45 }
 0x1d2   :  { %v4305_v7 = vpop.eup %4304  ;;  %v3383_v21 = vmul.f32 1.442695, %v3001_v41  ;;  %v3000_v26 = vmul.f32 0.03125, %v2744_v28  ;;  %v2746_v63 = vsub.f32 0.0, %v2490_v57  ;;  %v2237_v51 = vsub.f32 %v1725_v54, %v1981_v35  ;;  %v6373_v28 = vpop.f32.mrb[91].mxu1 }
 0x1d3   :  { %7123 = vst [vmem:[#allocation29_spill] sm:$0xff] %v6363_v22  ;;  %3762 = vst [vmem:[#allocation2 + $0x3b8] sm:$0xff] %v4305_v7  ;;  %4314 = vpow2.f32 %v3379_v11  ;;  %v2747_v52 = vsub.f32 0.0, %v2491_v12  ;;  %v6368_v15 = vadd.f32 %v7064_v25, %v1572_v45  ;;  %v6371_v48 = vadd.f32 %v7062_v39, %v1572_v45  ;;  %v6384_v35 = vpop.f32.mrb[92].mxu0 }
 0x1d4   :  { %v4307_v23 = vpop.eup %4306  ;;  %4316 = vpow2.f32 %v3383_v21  ;;  %v3381_v1 = vmul.f32 1.442695, %v3000_v26  ;;  %v3002_v38 = vmul.f32 0.03125, %v2746_v63  ;;  %v2493_v18 = vmax.f32 %v2237_v51, 0.0  ;;  %v7131_v63 = vld [vmem:[#allocation30_spill] sm:$0xff] }
 0x1d5   :  { %7124 = vst [vmem:[#allocation53_spill] sm:$0xff] %v6368_v15  ;;  %7125 = vst [vmem:[#allocation54_spill] sm:$0xff] %v6371_v48  ;;  %v4309_v57 = vpop.eup %4308  ;;  %v3003_v8 = vmul.f32 0.03125, %v2747_v52  ;;  %v6376_v54 = vadd.f32 %v7055_v43, %v1572_v45  ;;  %v6379_v41 = vadd.f32 %v7061_v62, %v1567_v55  ;;  %v6382_v2 = vadd.f32 %v7064_v25, %v1567_v55  ;;  %v6395_v52 = vpop.f32.mrb[92].mxu1  ;;  %v7135_v15 = vld [vmem:[#allocation32_spill] sm:$0xff] }
 0x1d6   :  { %3763 = vst [vmem:[#allocation2 + $0x3c0] sm:$0xff] %v4307_v23  ;;  %3765 = vst [vmem:[#allocation2 + $0x3d0] sm:$0xff] %v4309_v57  ;;  %4318 = vpow2.f32 %v3381_v1  ;;  %v3385_v11 = vmul.f32 1.442695, %v3002_v38  ;;  %v2749_v12 = vsub.f32 0.0, %v2493_v18  ;;  %v6387_v7 = vadd.f32 %v7062_v39, %v1567_v55  ;;  %v7133_v38 = vld [vmem:[#allocation31_spill] sm:$0xff] }
 0x1d7   :  { %7126 = vst [vmem:[#allocation55_spill] sm:$0xff] %v6376_v54  ;;  %7127 = vst [vmem:[#allocation56_spill] sm:$0xff] %v6379_v41  ;;  %v3387_v21 = vmul.f32 1.442695, %v3003_v8  ;;  %v6390_v26 = vadd.f32 %v7055_v43, %v1567_v55  ;;  %v1724_v45 = vadd.f32 %v7064_v25, %v6096_v40  ;;  %v1980_v51 = vmul.f32 2.0, %v7131_v63  ;;  %v6400_v54 = vpop.f32.mrb[93].mxu0 }
 0x1d8   :  { %7128 = vst [vmem:[#allocation57_spill] sm:$0xff] %v6382_v2  ;;  %7129 = vst [vmem:[#allocation58_spill] sm:$0xff] %v6387_v7  ;;  %v4311_v23 = vpop.eup %4310  ;;  %4320 = vpow2.f32 %v3385_v11  ;;  %v3005_v57 = vmul.f32 0.03125, %v2749_v12  ;;  %v1726_v1 = vadd.f32 %v7055_v43, %v6096_v40  ;;  %v1982_v18 = vmul.f32 2.0, %v7133_v38  ;;  %v7136_v12 = vld [vmem:[#allocation33_spill] sm:$0xff] }
 0x1d9   :  { %7130 = vst [vmem:[#allocation59_spill] sm:$0xff] %v6390_v26  ;;  %7132 = vst [vmem:[#allocation30_spill] sm:$0xff] %v6395_v52  ;;  %4322 = vpow2.f32 %v3387_v21  ;;  %v2236_v55 = vsub.f32 %v1724_v45, %v1980_v51  ;;  %v1727_v8 = vadd.f32 %v7061_v62, %v6081_v4  ;;  %v1983_v63 = vmul.f32 2.0, %v7135_v15  ;;  %v7137_v21 = vld [vmem:[#allocation34_spill] sm:$0xff]  ;;  %v6411_v51 = vpop.f32.mrb[93].mxu1 }
 0x1da   :  { %7134 = vst [vmem:[#allocation31_spill] sm:$0xff] %v6400_v54  ;;  %3764 = vst [vmem:[#allocation2 + $0x3c8] sm:$0xff] %v4311_v23  ;;  %v3391_v48 = vmul.f32 1.442695, %v3005_v57  ;;  %v2238_v22 = vsub.f32 %v1726_v1, %v1982_v18  ;;  %v1729_v11 = vadd.f32 %v7062_v39, %v6081_v4  ;;  %v1985_v26 = vmul.f32 2.0, %v7136_v12 }
 0x1db   :  { %v4313_v40 = vpop.eup %4312  ;;  %v2492_v2 = vmax.f32 %v2236_v55, 0.0  ;;  %v2239_v38 = vsub.f32 %v1727_v8, %v1983_v63  ;;  %v1728_v23 = vadd.f32 %v7064_v25, %v6081_v4  ;;  %v1984_v45 = vmul.f32 2.0, %v7137_v21  ;;  %7138 = vst [vmem:[#allocation32_spill] sm:$0xff] %v6411_v51  ;;  %v7139_v55 = vld [vmem:[#allocation35_spill] sm:$0xff]  ;;  %v6416_v63 = vpop.f32.mrb[94].mxu0 }
 0x1dc   :  { %3766 = vst [vmem:[#allocation2 + $0x3d8] sm:$0xff] %v4313_v40  ;;  %4324 = vpow2.f32 %v3391_v48  ;;  %v2494_v15 = vmax.f32 %v2238_v22, 0.0  ;;  %v2241_v57 = vsub.f32 %v1729_v11, %v1985_v26  ;;  %v1730_v1 = vadd.f32 %v7055_v43, %v6081_v4  ;;  %7140 = vst [vmem:[#allocation33_spill] sm:$0xff] %v6416_v63 }
 0x1dd   :  { %v4315_v18 = vpop.eup %4314  ;;  %v2748_v7 = vsub.f32 0.0, %v2492_v2  ;;  %v2495_v12 = vmax.f32 %v2239_v38, 0.0  ;;  %v2240_v41 = vsub.f32 %v1728_v23, %v1984_v45  ;;  %v1986_v8 = vmul.f32 2.0, %v7139_v55 }
 0x1de   :  { %v4317_v54 = vpop.eup %4316  ;;  %3767 = vst [vmem:[#allocation2 + $0x3e0] sm:$0xff] %v4315_v18  ;;  %v2750_v21 = vsub.f32 0.0, %v2494_v15  ;;  %v2497_v52 = vmax.f32 %v2241_v57, 0.0  ;;  %v1731_v48 = vadd.f32 %v7061_v62, %v6110_v24  ;;  %v1987_v22 = vmul.f32 2.0, %v6054_v37  ;;  %v6423_v18 = vpop.f32.mrb[94].mxu1 }
 0x1df   :  { %3769 = vst [vmem:[#allocation2 + $0x3f0] sm:$0xff] %v4317_v54  ;;  %v3004_v26 = vmul.f32 0.03125, %v2748_v7  ;;  %v2751_v4 = vsub.f32 0.0, %v2495_v12  ;;  %v2496_v11 = vmax.f32 %v2240_v41, 0.0  ;;  %v2242_v2 = vsub.f32 %v1730_v1, %v1986_v8  ;;  %7141 = vst [vmem:[#allocation34_spill] sm:$0xff] %v6423_v18  ;;  %v7142_v41 = vld [vmem:[#allocation36_spill] sm:$0xff] }
 0x1e0   :  { %v4319_v40 = vpop.eup %4318  ;;  %v3006_v38 = vmul.f32 0.03125, %v2750_v21  ;;  %v2753_v23 = vsub.f32 0.0, %v2497_v52  ;;  %v2243_v45 = vsub.f32 %v1731_v48, %v1987_v22  ;;  %v1733_v55 = vadd.f32 %v7062_v39, %v6110_v24  ;;  %v6426_v8 = vpop.f32.mrb[95].mxu0 }
 0x1e1   :  { %3768 = vst [vmem:[#allocation2 + $0x3e8] sm:$0xff] %v4319_v40  ;;  %v3389_v15 = vmul.f32 1.442695, %v3004_v26  ;;  %v3007_v57 = vmul.f32 0.03125, %v2751_v4  ;;  %v2752_v63 = vsub.f32 0.0, %v2496_v11  ;;  %v2498_v51 = vmax.f32 %v2242_v2, 0.0 }
 0x1e2   :  { %v4321_v37 = vpop.eup %4320  ;;  %v3393_v54 = vmul.f32 1.442695, %v3006_v38  ;;  %v3009_v7 = vmul.f32 0.03125, %v2753_v23  ;;  %v2499_v12 = vmax.f32 %v2243_v45, 0.0  ;;  %v1989_v1 = vmul.f32 2.0, %v7142_v41  ;;  %v6428_v18 = vpop.f32.mrb[95].mxu1 }
 0x1e3   :  { %v4323_v52 = vpop.eup %4322  ;;  %3770 = vst [vmem:[#allocation2 + $0x3f8] sm:$0xff] %v4321_v37  ;;  %4326 = vpow2.f32 %v3389_v15  ;;  %v3395_v21 = vmul.f32 1.442695, %v3007_v57  ;;  %v3008_v48 = vmul.f32 0.03125, %v2752_v63  ;;  %v2754_v22 = vsub.f32 0.0, %v2498_v51  ;;  %v6432_v23 = vpop.f32.mrb[96].mxu0 }
 0x1e4   :  { %3771 = vst [vmem:[#allocation2 + $0x400] sm:$0xff] %v4323_v52  ;;  %4328 = vpow2.f32 %v3393_v54  ;;  %v3399_v26 = vmul.f32 1.442695, %v3009_v7  ;;  %v2755_v4 = vsub.f32 0.0, %v2499_v12  ;;  %v2245_v11 = vsub.f32 %v1733_v55, %v1989_v1  ;;  %v7143_v51 = vld [vmem:[#allocation37_spill] sm:$0xff]  ;;  %v6435_v37 = vpop.f32.mrb[96].mxu1 }
 0x1e5   :  { %4330 = vpow2.f32 %v3395_v21  ;;  %v3397_v2 = vmul.f32 1.442695, %v3008_v48  ;;  %v3010_v40 = vmul.f32 0.03125, %v2754_v22  ;;  %v1732_v38 = vadd.f32 %v7064_v25, %v6110_v24  ;;  %7144 = vst [vmem:[#allocation35_spill] sm:$0xff] %v6435_v37  ;;  %v7145_v7 = vld [vmem:[#allocation38_spill] sm:$0xff]  ;;  %v7146_v22 = vld [vmem:[#allocation39_spill] sm:$0xff] }
 0x1e6   :  { %v4325_v45 = vpop.eup %4324  ;;  %4332 = vpow2.f32 %v3399_v26  ;;  %v3011_v15 = vmul.f32 0.03125, %v2755_v4  ;;  %v2501_v63 = vmax.f32 %v2245_v11, 0.0  ;;  %v1988_v57 = vmul.f32 2.0, %v7143_v51  ;;  %v6445_v11 = vpop.f32.mrb[97].mxu0  ;;  %v7149_v51 = vld [vmem:[#allocation42_spill] sm:$0xff] }
 0x1e7   :  { %3773 = vst [vmem:[#allocation2 + $0x410] sm:$0xff] %v4325_v45  ;;  %4334 = vpow2.f32 %v3397_v2  ;;  %v3401_v54 = vmul.f32 1.442695, %v3010_v40  ;;  %v1734_v55 = vadd.f32 %v7055_v43, %v6110_v24  ;;  %v1990_v12 = vmul.f32 2.0, %v7145_v7  ;;  %7147 = vst [vmem:[#allocation36_spill] sm:$0xff] %v6445_v11  ;;  %v7148_v40 = vld [vmem:[#allocation41_spill] sm:$0xff] }
 0x1e8   :  { %v3403_v41 = vmul.f32 1.442695, %v3011_v15  ;;  %v2757_v1 = vsub.f32 0.0, %v2501_v63  ;;  %v2244_v52 = vsub.f32 %v1732_v38, %v1988_v57  ;;  %v1735_v21 = vadd.f32 %v7061_v62, %v6101_v20 }
 0x1e9   :  { %4336 = vpow2.f32 %v3401_v54  ;;  %v2246_v48 = vsub.f32 %v1734_v55, %v1990_v12  ;;  %v1991_v26 = vmul.f32 2.0, %v7146_v22  ;;  %v1737_v4 = vadd.f32 %v7062_v39, %v6101_v20  ;;  %v6451_v54 = vpop.f32.mrb[97].mxu1 }
 0x1ea   :  { %4338 = vpow2.f32 %v3403_v41  ;;  %v3013_v2 = vmul.f32 0.03125, %v2757_v1  ;;  %v2500_v24 = vmax.f32 %v2244_v52, 0.0  ;;  %v1993_v45 = vmul.f32 2.0, %v7148_v40  ;;  %7150 = vst [vmem:[#allocation37_spill] sm:$0xff] %v6451_v54  ;;  %v7151_v40 = vld [vmem:[#allocation43_spill] sm:$0xff] }
 0x1eb   :  { %v2502_v15 = vmax.f32 %v2246_v48, 0.0  ;;  %v2247_v63 = vsub.f32 %v1735_v21, %v1991_v26  ;;  %v1736_v38 = vadd.f32 %v7064_v25, %v6101_v20  ;;  %v1992_v57 = vmul.f32 2.0, %v7149_v51 }
 0x1ec   :  { %v3407_v55 = vmul.f32 1.442695, %v3013_v2  ;;  %v2756_v7 = vsub.f32 0.0, %v2500_v24  ;;  %v2249_v12 = vsub.f32 %v1737_v4, %v1993_v45  ;;  %v1738_v22 = vadd.f32 %v7055_v43, %v6101_v20  ;;  %v6458_v2 = vpop.f32.mrb[98].mxu0 }
 0x1ed   :  { %v4327_v41 = vpop.eup %4326  ;;  %v2758_v1 = vsub.f32 0.0, %v2502_v15  ;;  %v2503_v52 = vmax.f32 %v2247_v63, 0.0  ;;  %v2248_v11 = vsub.f32 %v1736_v38, %v1992_v57  ;;  %v1994_v48 = vmul.f32 2.0, %v7151_v40  ;;  %7152 = vst [vmem:[#allocation38_spill] sm:$0xff] %v6458_v2  ;;  %v7153_v40 = vld [vmem:[#allocation40_spill] sm:$0xff] }
 0x1ee   :  { %v4329_v21 = vpop.eup %4328  ;;  %3772 = vst [vmem:[#allocation2 + $0x408] sm:$0xff] %v4327_v41  ;;  %4340 = vpow2.f32 %v3407_v55  ;;  %v3012_v26 = vmul.f32 0.03125, %v2756_v7  ;;  %v2505_v37 = vmax.f32 %v2249_v12, 0.0  ;;  %v1739_v51 = vadd.f32 %v7061_v62, %v6127_v0  ;;  %v6463_v7 = vpop.f32.mrb[98].mxu1 }
 0x1ef   :  { %v4331_v4 = vpop.eup %4330  ;;  %3774 = vst [vmem:[#allocation2 + $0x418] sm:$0xff] %v4329_v21  ;;  %v3014_v24 = vmul.f32 0.03125, %v2758_v1  ;;  %v2759_v20 = vsub.f32 0.0, %v2503_v52  ;;  %v2504_v45 = vmax.f32 %v2248_v11, 0.0  ;;  %v2250_v15 = vsub.f32 %v1738_v22, %v1994_v48  ;;  %7154 = vst [vmem:[#allocation39_spill] sm:$0xff] %v6463_v7  ;;  %v6465_v52 = vpop.f32.mrb[99].mxu0 }
 0x1f0   :  { %v4333_v63 = vpop.eup %4332  ;;  %3775 = vst [vmem:[#allocation2 + $0x420] sm:$0xff] %v4331_v4  ;;  %v3405_v38 = vmul.f32 1.442695, %v3012_v26  ;;  %v2761_v57 = vsub.f32 0.0, %v2505_v37  ;;  %v1995_v41 = vmul.f32 2.0, %v7153_v40  ;;  %v1741_v55 = vadd.f32 %v7062_v39, %v6127_v0  ;;  %v6468_v7 = vpop.f32.mrb[99].mxu1 }
 0x1f1   :  { %v4335_v12 = vpop.eup %4334  ;;  %3777 = vst [vmem:[#allocation2 + $0x430] sm:$0xff] %v4333_v63  ;;  %v3409_v2 = vmul.f32 1.442695, %v3014_v24  ;;  %v3015_v54 = vmul.f32 0.03125, %v2759_v20  ;;  %v2760_v21 = vsub.f32 0.0, %v2504_v45  ;;  %v2506_v1 = vmax.f32 %v2250_v15, 0.0 }
 0x1f2   :  { %3776 = vst [vmem:[#allocation2 + $0x428] sm:$0xff] %v4335_v12  ;;  %4342 = vpow2.f32 %v3405_v38  ;;  %v3017_v11 = vmul.f32 0.03125, %v2761_v57  ;;  %v2251_v22 = vsub.f32 %v1739_v51, %v1995_v41  ;;  %v1997_v37 = vmul.f32 2.0, %v6108_v29  ;;  %v6472_v38 = vpop.f32.mrb[100].mxu0 }
 0x1f3   :  { %v4337_v48 = vpop.eup %4336  ;;  %4344 = vpow2.f32 %v3409_v2  ;;  %v3411_v26 = vmul.f32 1.442695, %v3015_v54  ;;  %v3016_v4 = vmul.f32 0.03125, %v2760_v21  ;;  %v2762_v40 = vsub.f32 0.0, %v2506_v1  ;;  %v6478_v1 = vpop.f32.mrb[100].mxu1 }
 0x1f4   :  { %v4339_v63 = vpop.eup %4338  ;;  %3778 = vst [vmem:[#allocation2 + $0x438] sm:$0xff] %v4337_v48  ;;  %v3415_v24 = vmul.f32 1.442695, %v3017_v11  ;;  %v2507_v20 = vmax.f32 %v2251_v22, 0.0  ;;  %v2253_v45 = vsub.f32 %v1741_v55, %v1997_v37  ;;  %v1740_v15 = vadd.f32 %v7064_v25, %v6127_v0 }
 0x1f5   :  { %3779 = vst [vmem:[#allocation2 + $0x440] sm:$0xff] %v4339_v63  ;;  %4346 = vpow2.f32 %v3411_v26  ;;  %v3413_v29 = vmul.f32 1.442695, %v3016_v4  ;;  %v3018_v51 = vmul.f32 0.03125, %v2762_v40  ;;  %v1996_v54 = vmul.f32 2.0, %v6115_v59  ;;  %v6485_v40 = vpop.f32.mrb[101].mxu0 }
 0x1f6   :  { %4348 = vpow2.f32 %v3415_v24  ;;  %v2763_v2 = vsub.f32 0.0, %v2507_v20  ;;  %v2509_v57 = vmax.f32 %v2253_v45, 0.0  ;;  %v1742_v41 = vadd.f32 %v7055_v43, %v6127_v0 }
 0x1f7   :  { %4350 = vpow2.f32 %v3413_v29  ;;  %v3417_v12 = vmul.f32 1.442695, %v3018_v51  ;;  %v2252_v55 = vsub.f32 %v1740_v15, %v1996_v54  ;;  %v1998_v21 = vmul.f32 2.0, %v6125_v27 }
 0x1f8   :  { %v4341_v11 = vpop.eup %4340  ;;  %v3019_v22 = vmul.f32 0.03125, %v2763_v2  ;;  %v2765_v37 = vsub.f32 0.0, %v2509_v57  ;;  %v1743_v48 = vadd.f32 %v7061_v62, %v6117_v61  ;;  %v1999_v59 = vmul.f32 2.0, %v6140_v33 }
 0x1f9   :  { %3781 = vst [vmem:[#allocation2 + $0x450] sm:$0xff] %v4341_v11  ;;  %4352 = vpow2.f32 %v3417_v12  ;;  %v2508_v26 = vmax.f32 %v2252_v55, 0.0  ;;  %v2254_v4 = vsub.f32 %v1742_v41, %v1998_v21  ;;  %v1745_v0 = vadd.f32 %v7062_v39, %v6117_v61  ;;  %v6491_v41 = vpop.f32.mrb[101].mxu1 }
 0x1fa   :  { %v3419_v27 = vmul.f32 1.442695, %v3019_v22  ;;  %v3021_v63 = vmul.f32 0.03125, %v2765_v37  ;;  %v2255_v24 = vsub.f32 %v1743_v48, %v1999_v59  ;;  %v2001_v20 = vmul.f32 2.0, %v6147_v3  ;;  %v6496_v48 = vpop.f32.mrb[102].mxu0 }
 0x1fb   :  { %v2764_v45 = vsub.f32 0.0, %v2508_v26  ;;  %v2510_v15 = vmax.f32 %v2254_v4, 0.0  ;;  %v1744_v29 = vadd.f32 %v7064_v25, %v6117_v61  ;;  %v2000_v33 = vmul.f32 2.0, %v6153_v60 }
 0x1fc   :  { %v4343_v51 = vpop.eup %4342  ;;  %4354 = vpow2.f32 %v3419_v27  ;;  %v3423_v54 = vmul.f32 1.442695, %v3021_v63  ;;  %v2511_v2 = vmax.f32 %v2255_v24, 0.0  ;;  %v2257_v57 = vsub.f32 %v1745_v0, %v2001_v20  ;;  %v6500_v63 = vpop.f32.mrb[102].mxu1 }
 0x1fd   :  { %v4345_v12 = vpop.eup %4344  ;;  %3780 = vst [vmem:[#allocation2 + $0x448] sm:$0xff] %v4343_v51  ;;  %v3020_v55 = vmul.f32 0.03125, %v2764_v45  ;;  %v2766_v21 = vsub.f32 0.0, %v2510_v15  ;;  %v2256_v11 = vsub.f32 %v1744_v29, %v2000_v33  ;;  %v1746_v3 = vadd.f32 %v7055_v43, %v6117_v61 }
 0x1fe   :  { %3782 = vst [vmem:[#allocation2 + $0x458] sm:$0xff] %v4345_v12  ;;  %4356 = vpow2.f32 %v3423_v54  ;;  %v2767_v22 = vsub.f32 0.0, %v2511_v2  ;;  %v2513_v37 = vmax.f32 %v2257_v57, 0.0  ;;  %v2002_v60 = vmul.f32 2.0, %v6158_v50  ;;  %v6505_v54 = vpop.f32.mrb[103].mxu0 }
 0x1ff   :  { %v4347_v59 = vpop.eup %4346  ;;  %v3421_v26 = vmul.f32 1.442695, %v3020_v55  ;;  %v3022_v4 = vmul.f32 0.03125, %v2766_v21  ;;  %v2512_v0 = vmax.f32 %v2256_v11, 0.0  ;;  %v1747_v27 = vadd.f32 %v7061_v62, %v6144_v16  ;;  %v6507_v21 = vpop.f32.mrb[103].mxu1 }
 0x200   :  { %v4349_v24 = vpop.eup %4348  ;;  %3783 = vst [vmem:[#allocation2 + $0x460] sm:$0xff] %v4347_v59  ;;  %v3023_v61 = vmul.f32 0.03125, %v2767_v22  ;;  %v2769_v20 = vsub.f32 0.0, %v2513_v37  ;;  %v2258_v45 = vsub.f32 %v1746_v3, %v2002_v60  ;;  %v2003_v15 = vmul.f32 2.0, %v6173_v46 }
 0x201   :  { %v4351_v29 = vpop.eup %4350  ;;  %3785 = vst [vmem:[#allocation2 + $0x470] sm:$0xff] %v4349_v24  ;;  %4358 = vpow2.f32 %v3421_v26  ;;  %v3425_v50 = vmul.f32 1.442695, %v3022_v4  ;;  %v2768_v33 = vsub.f32 0.0, %v2512_v0  ;;  %v1749_v51 = vadd.f32 %v7062_v39, %v6144_v16  ;;  %v6515_v24 = vpop.f32.mrb[104].mxu0 }
 0x202   :  { %3784 = vst [vmem:[#allocation2 + $0x468] sm:$0xff] %v4351_v29  ;;  %v3427_v2 = vmul.f32 1.442695, %v3023_v61  ;;  %v3025_v57 = vmul.f32 0.03125, %v2769_v20  ;;  %v2514_v12 = vmax.f32 %v2258_v45, 0.0  ;;  %v2259_v55 = vsub.f32 %v1747_v27, %v2003_v15 }
 0x203   :  { %v4353_v11 = vpop.eup %4352  ;;  %4360 = vpow2.f32 %v3425_v50  ;;  %v3024_v46 = vmul.f32 0.03125, %v2768_v33  ;;  %v2005_v3 = vmul.f32 2.0, %v6179_v5  ;;  %v1748_v22 = vadd.f32 %v7064_v25, %v6144_v16  ;;  %v6520_v33 = vpop.f32.mrb[104].mxu1 }
 0x204   :  { %3786 = vst [vmem:[#allocation2 + $0x478] sm:$0xff] %v4353_v11  ;;  %4362 = vpow2.f32 %v3427_v2  ;;  %v3431_v37 = vmul.f32 1.442695, %v3025_v57  ;;  %v2770_v60 = vsub.f32 0.0, %v2514_v12  ;;  %v2515_v59 = vmax.f32 %v2259_v55, 0.0 }
 0x205   :  { %v3429_v26 = vmul.f32 1.442695, %v3024_v46  ;;  %v2261_v4 = vsub.f32 %v1749_v51, %v2005_v3  ;;  %v2004_v0 = vmul.f32 2.0, %v6188_v30  ;;  %v1750_v27 = vadd.f32 %v7055_v43, %v6144_v16 }
 0x206   :  { %v4355_v61 = vpop.eup %4354  ;;  %4364 = vpow2.f32 %v3431_v37  ;;  %v3026_v5 = vmul.f32 0.03125, %v2770_v60  ;;  %v2771_v20 = vsub.f32 0.0, %v2515_v59  ;;  %v2006_v45 = vmul.f32 2.0, %v6192_v14  ;;  %v6526_v37 = vpop.f32.mrb[105].mxu0 }
 0x207   :  { %3787 = vst [vmem:[#allocation2 + $0x480] sm:$0xff] %v4355_v61  ;;  %4366 = vpow2.f32 %v3429_v26  ;;  %v2517_v15 = vmax.f32 %v2261_v4, 0.0  ;;  %v2260_v29 = vsub.f32 %v1748_v22, %v2004_v0  ;;  %v1751_v50 = vadd.f32 %v7061_v62, %v6134_v32 }
 0x208   :  { %v4357_v30 = vpop.eup %4356  ;;  %v3433_v51 = vmul.f32 1.442695, %v3026_v5  ;;  %v3027_v16 = vmul.f32 0.03125, %v2771_v20  ;;  %v2262_v2 = vsub.f32 %v1750_v27, %v2006_v45  ;;  %v2007_v57 = vmul.f32 2.0, %v6202_v6 }
 0x209   :  { %3789 = vst [vmem:[#allocation2 + $0x490] sm:$0xff] %v4357_v30  ;;  %v2773_v12 = vsub.f32 0.0, %v2517_v15  ;;  %v2516_v55 = vmax.f32 %v2260_v29, 0.0  ;;  %v1753_v14 = vadd.f32 %v7062_v39, %v6134_v32  ;;  %v2009_v11 = vmul.f32 2.0, %v6209_v9  ;;  %v6531_v9 = vpop.f32.mrb[105].mxu1 }
 0x20a   :  { %4368 = vpow2.f32 %v3433_v51  ;;  %v3435_v46 = vmul.f32 1.442695, %v3027_v16  ;;  %v2518_v3 = vmax.f32 %v2262_v2, 0.0  ;;  %v2263_v22 = vsub.f32 %v1751_v50, %v2007_v57  ;;  %v6535_v50 = vpop.f32.mrb[106].mxu0 }
 0x20b   :  { %v4359_v60 = vpop.eup %4358  ;;  %v3029_v59 = vmul.f32 0.03125, %v2773_v12  ;;  %v2772_v26 = vsub.f32 0.0, %v2516_v55  ;;  %v2265_v4 = vsub.f32 %v1753_v14, %v2009_v11  ;;  %v1752_v6 = vadd.f32 %v7064_v25, %v6134_v32  ;;  %v6540_v14 = vpop.f32.mrb[106].mxu1 }
 0x20c   :  { %3788 = vst [vmem:[#allocation2 + $0x488] sm:$0xff] %v4359_v60  ;;  %4370 = vpow2.f32 %v3435_v46  ;;  %v2774_v0 = vsub.f32 0.0, %v2518_v3  ;;  %v2519_v27 = vmax.f32 %v2263_v22, 0.0  ;;  %v2008_v61 = vmul.f32 2.0, %v6212_v58  ;;  %v6542_v60 = vpop.f32.mrb[107].mxu0 }
 0x20d   :  { %v4361_v5 = vpop.eup %4360  ;;  %v3439_v20 = vmul.f32 1.442695, %v3029_v59  ;;  %v3028_v45 = vmul.f32 0.03125, %v2772_v26  ;;  %v2521_v15 = vmax.f32 %v2265_v4, 0.0  ;;  %v1754_v29 = vadd.f32 %v7055_v43, %v6134_v32 }
 0x20e   :  { %v4363_v30 = vpop.eup %4362  ;;  %3790 = vst [vmem:[#allocation2 + $0x498] sm:$0xff] %v4361_v5  ;;  %v3030_v51 = vmul.f32 0.03125, %v2774_v0  ;;  %v2775_v16 = vsub.f32 0.0, %v2519_v27  ;;  %v2264_v2 = vsub.f32 %v1752_v6, %v2008_v61  ;;  %v2010_v57 = vmul.f32 2.0, %v6222_v19 }
 0x20f   :  { %3791 = vst [vmem:[#allocation2 + $0x4a0] sm:$0xff] %v4363_v30  ;;  %4372 = vpow2.f32 %v3439_v20  ;;  %v3437_v58 = vmul.f32 1.442695, %v3028_v45  ;;  %v2777_v12 = vsub.f32 0.0, %v2521_v15  ;;  %v1755_v55 = vadd.f32 %v7061_v62, %v6163_v56  ;;  %v6550_v15 = vpop.f32.mrb[107].mxu1 }
 0x210   :  { %v4365_v11 = vpop.eup %4364  ;;  %v3441_v32 = vmul.f32 1.442695, %v3030_v51  ;;  %v3031_v46 = vmul.f32 0.03125, %v2775_v16  ;;  %v2520_v3 = vmax.f32 %v2264_v2, 0.0  ;;  %v2266_v22 = vsub.f32 %v1754_v29, %v2010_v57 }
 0x211   :  { %v4367_v59 = vpop.eup %4366  ;;  %3793 = vst [vmem:[#allocation2 + $0x4b0] sm:$0xff] %v4365_v11  ;;  %4374 = vpow2.f32 %v3437_v58  ;;  %v3033_v19 = vmul.f32 0.03125, %v2777_v12  ;;  %v2011_v26 = vmul.f32 2.0, %v6228_v44  ;;  %v1757_v4 = vadd.f32 %v7062_v39, %v6163_v56  ;;  %v6555_v58 = vpop.f32.mrb[108].mxu0 }
 0x212   :  { %3792 = vst [vmem:[#allocation2 + $0x4a8] sm:$0xff] %v4367_v59  ;;  %4376 = vpow2.f32 %v3441_v32  ;;  %v3443_v6 = vmul.f32 1.442695, %v3031_v46  ;;  %v2776_v0 = vsub.f32 0.0, %v2520_v3  ;;  %v2522_v27 = vmax.f32 %v2266_v22, 0.0  ;;  %v7155_v22 = vld [vmem:[#allocation8_spill] sm:$0xff] }
 0x213   :  { %v3447_v61 = vmul.f32 1.442695, %v3033_v19  ;;  %v2267_v5 = vsub.f32 %v1755_v55, %v2011_v26  ;;  %v2013_v20 = vmul.f32 2.0, %v6235_v36  ;;  %v1756_v45 = vadd.f32 %v7064_v25, %v6163_v56  ;;  %v7156_v59 = vld [vmem:[#allocation14_spill] sm:$0xff] }
 0x214   :  { %v4369_v29 = vpop.eup %4368  ;;  %4378 = vpow2.f32 %v3443_v6  ;;  %v3032_v44 = vmul.f32 0.03125, %v2776_v0  ;;  %v2778_v30 = vsub.f32 0.0, %v2522_v27  ;;  %v2012_v51 = vmul.f32 2.0, %v6242_v17  ;;  %v6561_v6 = vpop.f32.mrb[108].mxu1 }
 0x215   :  { %3794 = vst [vmem:[#allocation2 + $0x4b8] sm:$0xff] %v4369_v29  ;;  %4380 = vpow2.f32 %v3447_v61  ;;  %v2523_v16 = vmax.f32 %v2267_v5, 0.0  ;;  %v2269_v2 = vsub.f32 %v1757_v4, %v2013_v20  ;;  %v1758_v57 = vadd.f32 %v7055_v43, %v6163_v56  ;;  %v7157_v29 = vld [vmem:[#allocation16_spill] sm:$0xff] }
 0x216   :  { %v4371_v36 = vpop.eup %4370  ;;  %v3445_v12 = vmul.f32 1.442695, %v3032_v44  ;;  %v3034_v55 = vmul.f32 0.03125, %v2778_v30  ;;  %v2268_v11 = vsub.f32 %v1756_v45, %v2012_v51  ;;  %v2014_v32 = vmul.f32 2.0, %v6247_v34  ;;  %v6566_v30 = vpop.f32.mrb[109].mxu0 }
 0x217   :  { %3795 = vst [vmem:[#allocation2 + $0x4c0] sm:$0xff] %v4371_v36  ;;  %v2779_v46 = vsub.f32 0.0, %v2523_v16  ;;  %v2525_v3 = vmax.f32 %v2269_v2, 0.0  ;;  %v1759_v17 = vadd.f32 %v7061_v62, %v7155_v22  ;;  %v2015_v19 = vmul.f32 2.0, %v7156_v59 }
 0x218   :  { %4382 = vpow2.f32 %v3445_v12  ;;  %v3449_v26 = vmul.f32 1.442695, %v3034_v55  ;;  %v2524_v4 = vmax.f32 %v2268_v11, 0.0  ;;  %v2270_v56 = vsub.f32 %v1758_v57, %v2014_v32  ;;  %v6570_v12 = vpop.f32.mrb[109].mxu1 }
 0x219   :  { %v4373_v0 = vpop.eup %4372  ;;  %v3035_v27 = vmul.f32 0.03125, %v2779_v46  ;;  %v2781_v61 = vsub.f32 0.0, %v2525_v3  ;;  %v2271_v5 = vsub.f32 %v1759_v17, %v2015_v19  ;;  %v1761_v34 = vadd.f32 %v7062_v39, %v7155_v22  ;;  %v7158_v3 = vld [vmem:[#allocation17_spill] sm:$0xff] }
 0x21a   :  { %3797 = vst [vmem:[#allocation2 + $0x4d0] sm:$0xff] %v4373_v0  ;;  %4384 = vpow2.f32 %v3449_v26  ;;  %v2780_v20 = vsub.f32 0.0, %v2524_v4  ;;  %v2526_v45 = vmax.f32 %v2270_v56, 0.0  ;;  %v2017_v44 = vmul.f32 2.0, %v7157_v29  ;;  %v6575_v4 = vpop.f32.mrb[110].mxu0  ;;  %v6577_v29 = vpop.f32.mrb[110].mxu1 }
 0x21b   :  { %v4375_v51 = vpop.eup %4374  ;;  %v3451_v16 = vmul.f32 1.442695, %v3035_v27  ;;  %v3037_v2 = vmul.f32 0.03125, %v2781_v61  ;;  %v2527_v57 = vmax.f32 %v2271_v5, 0.0  ;;  %v1760_v36 = vadd.f32 %v7064_v25, %v7155_v22 }
 0x21c   :  { %v4377_v55 = vpop.eup %4376  ;;  %3796 = vst [vmem:[#allocation2 + $0x4c8] sm:$0xff] %v4375_v51  ;;  %v3036_v11 = vmul.f32 0.03125, %v2780_v20  ;;  %v2782_v32 = vsub.f32 0.0, %v2526_v45  ;;  %v2273_v46 = vsub.f32 %v1761_v34, %v2017_v44  ;;  %v2016_v17 = vmul.f32 2.0, %v7158_v3  ;;  %v7159_v44 = vld [vmem:[#allocation5_spill] sm:$0xff] }
 0x21d   :  { %3798 = vst [vmem:[#allocation2 + $0x4d8] sm:$0xff] %v4377_v55  ;;  %4386 = vpow2.f32 %v3451_v16  ;;  %v3455_v59 = vmul.f32 1.442695, %v3037_v2  ;;  %v2783_v19 = vsub.f32 0.0, %v2527_v57  ;;  %v1762_v26 = vadd.f32 %v7055_v43, %v7155_v22 }
 0x21e   :  { %v4379_v56 = vpop.eup %4378  ;;  %v3453_v0 = vmul.f32 1.442695, %v3036_v11  ;;  %v3038_v27 = vmul.f32 0.03125, %v2782_v32  ;;  %v2529_v61 = vmax.f32 %v2273_v46, 0.0  ;;  %v2272_v5 = vsub.f32 %v1760_v36, %v2016_v17  ;;  %v6585_v32 = vpop.f32.mrb[111].mxu0  ;;  %v7160_v17 = vld [vmem:[#allocation20_spill] sm:$0xff] }
 0x21f   :  { %v4381_v20 = vpop.eup %4380  ;;  %3799 = vst [vmem:[#allocation2 + $0x4e0] sm:$0xff] %v4379_v56  ;;  %4388 = vpow2.f32 %v3455_v59  ;;  %v3039_v34 = vmul.f32 0.03125, %v2783_v19  ;;  %v2018_v45 = vmul.f32 2.0, %v6271_v42  ;;  %v1763_v51 = vadd.f32 %v7061_v62, %v7159_v44 }
 0x220   :  { %3801 = vst [vmem:[#allocation2 + $0x4f0] sm:$0xff] %v4381_v20  ;;  %4390 = vpow2.f32 %v3453_v0  ;;  %v3457_v22 = vmul.f32 1.442695, %v3038_v27  ;;  %v2785_v16 = vsub.f32 0.0, %v2529_v61  ;;  %v2528_v2 = vmax.f32 %v2272_v5, 0.0  ;;  %v6590_v0 = vpop.f32.mrb[111].mxu1 }
 0x221   :  { %v3459_v57 = vmul.f32 1.442695, %v3039_v34  ;;  %v2274_v55 = vsub.f32 %v1762_v26, %v2018_v45  ;;  %v2019_v36 = vmul.f32 2.0, %v6280_v13  ;;  %v1765_v11 = vadd.f32 %v7062_v39, %v7159_v44  ;;  %v7161_v20 = vld [vmem:[#allocation21_spill] sm:$0xff] }
 0x222   :  { %v4383_v46 = vpop.eup %4382  ;;  %4392 = vpow2.f32 %v3457_v22  ;;  %v3041_v42 = vmul.f32 0.03125, %v2785_v16  ;;  %v2784_v3 = vsub.f32 0.0, %v2528_v2  ;;  %v2021_v59 = vmul.f32 2.0, %v7160_v17  ;;  %v7162_v2 = vld [vmem:[#allocation22_spill] sm:$0xff] }
 0x223   :  { %3800 = vst [vmem:[#allocation2 + $0x4e8] sm:$0xff] %v4383_v46  ;;  %4394 = vpow2.f32 %v3459_v57  ;;  %v2530_v19 = vmax.f32 %v2274_v55, 0.0  ;;  %v2275_v56 = vsub.f32 %v1763_v51, %v2019_v36  ;;  %v1764_v26 = vadd.f32 %v7064_v25, %v7159_v44  ;;  %v6596_v46 = vpop.f32.mrb[112].mxu0 }
 0x224   :  { %v4385_v13 = vpop.eup %4384  ;;  %v3463_v27 = vmul.f32 1.442695, %v3041_v42  ;;  %v3040_v61 = vmul.f32 0.03125, %v2784_v3  ;;  %v2277_v5 = vsub.f32 %v1765_v11, %v2021_v59  ;;  %v2020_v34 = vmul.f32 2.0, %v7161_v20  ;;  %7163 = vst [vmem:[#allocation41_spill] sm:$0xff] %v6596_v46  ;;  %v7164_v59 = vld [vmem:[#allocation44_spill] sm:$0xff] }
 0x225   :  { %3802 = vst [vmem:[#allocation2 + $0x4f8] sm:$0xff] %v4385_v13  ;;  %v2786_v45 = vsub.f32 0.0, %v2530_v19  ;;  %v2531_v22 = vmax.f32 %v2275_v56, 0.0  ;;  %v1766_v16 = vadd.f32 %v7055_v43, %v7159_v44  ;;  %v2022_v57 = vmul.f32 2.0, %v7162_v2  ;;  %v6601_v20 = vpop.f32.mrb[112].mxu1 }
 0x226   :  { %4396 = vpow2.f32 %v3463_v27  ;;  %v3461_v51 = vmul.f32 1.442695, %v3040_v61  ;;  %v2533_v55 = vmax.f32 %v2277_v5, 0.0  ;;  %v2276_v36 = vsub.f32 %v1764_v26, %v2020_v34  ;;  %7165 = vst [vmem:[#allocation42_spill] sm:$0xff] %v6601_v20 }
 0x227   :  { %v4387_v17 = vpop.eup %4386  ;;  %v3042_v42 = vmul.f32 0.03125, %v2786_v45  ;;  %v2787_v3 = vsub.f32 0.0, %v2531_v22  ;;  %v2278_v11 = vsub.f32 %v1766_v16, %v2022_v57  ;;  %v1767_v13 = vadd.f32 %v7061_v62, %v7164_v59  ;;  %v6605_v45 = vpop.f32.mrb[113].mxu0 }
 0x228   :  { %3803 = vst [vmem:[#allocation2 + $0x500] sm:$0xff] %v4387_v17  ;;  %4398 = vpow2.f32 %v3461_v51  ;;  %v2789_v19 = vsub.f32 0.0, %v2533_v55  ;;  %v2532_v56 = vmax.f32 %v2276_v36, 0.0  ;;  %v2023_v44 = vmul.f32 2.0, %v6302_v53  ;;  %7166 = vst [vmem:[#allocation43_spill] sm:$0xff] %v6605_v45  ;;  %v7167_v51 = vld [vmem:[#allocation23_spill] sm:$0xff] }
 0x229   :  { %v4389_v27 = vpop.eup %4388  ;;  %v3465_v61 = vmul.f32 1.442695, %v3042_v42  ;;  %v3043_v26 = vmul.f32 0.03125, %v2787_v3  ;;  %v2534_v5 = vmax.f32 %v2278_v11, 0.0  ;;  %v1769_v34 = vadd.f32 %v7062_v39, %v7164_v59  ;;  %v6610_v42 = vpop.f32.mrb[113].mxu1 }
 0x22a   :  { %v4391_v22 = vpop.eup %4390  ;;  %3805 = vst [vmem:[#allocation2 + $0x510] sm:$0xff] %v4389_v27  ;;  %v3045_v16 = vmul.f32 0.03125, %v2789_v19  ;;  %v2788_v2 = vsub.f32 0.0, %v2532_v56  ;;  %v2279_v57 = vsub.f32 %v1767_v13, %v2023_v44  ;;  %v2025_v55 = vmul.f32 2.0, %v7167_v51  ;;  %v6612_v27 = vpop.f32.mrb[114].mxu0  ;;  %v7168_v56 = vld [vmem:[#allocation48_spill] sm:$0xff] }
 0x22b   :  { %3804 = vst [vmem:[#allocation2 + $0x508] sm:$0xff] %v4391_v22  ;;  %4400 = vpow2.f32 %v3465_v61  ;;  %v3467_v53 = vmul.f32 1.442695, %v3043_v26  ;;  %v2790_v36 = vsub.f32 0.0, %v2534_v5  ;;  %v1768_v17 = vadd.f32 %v7064_v25, %v7164_v59 }
 0x22c   :  { %v4393_v3 = vpop.eup %4392  ;;  %v3471_v11 = vmul.f32 1.442695, %v3045_v16  ;;  %v3044_v20 = vmul.f32 0.03125, %v2788_v2  ;;  %v2535_v45 = vmax.f32 %v2279_v57, 0.0  ;;  %v2281_v46 = vsub.f32 %v1769_v34, %v2025_v55  ;;  %v7169_v57 = vld [vmem:[#allocation7_spill] sm:$0xff]  ;;  %v6620_v55 = vpop.f32.mrb[114].mxu1 }
 0x22d   :  { %v4395_v19 = vpop.eup %4394  ;;  %3806 = vst [vmem:[#allocation2 + $0x518] sm:$0xff] %v4393_v3  ;;  %4402 = vpow2.f32 %v3467_v53  ;;  %v3046_v13 = vmul.f32 0.03125, %v2790_v36  ;;  %v2024_v44 = vmul.f32 2.0, %v7168_v56  ;;  %v1770_v61 = vadd.f32 %v7055_v43, %v7164_v59 }
 0x22e   :  { %3807 = vst [vmem:[#allocation2 + $0x520] sm:$0xff] %v4395_v19  ;;  %4404 = vpow2.f32 %v3471_v11  ;;  %v3469_v26 = vmul.f32 1.442695, %v3044_v20  ;;  %v2791_v5 = vsub.f32 0.0, %v2535_v45  ;;  %v2537_v22 = vmax.f32 %v2281_v46, 0.0 }
 0x22f   :  { %v3473_v16 = vmul.f32 1.442695, %v3046_v13  ;;  %v2280_v2 = vsub.f32 %v1768_v17, %v2024_v44  ;;  %v2026_v34 = vmul.f32 2.0, %v6323_v47  ;;  %v1771_v51 = vadd.f32 %v7061_v62, %v7169_v57  ;;  %v6625_v17 = vpop.f32.mrb[115].mxu0 }
 0x230   :  { %v4397_v53 = vpop.eup %4396  ;;  %4406 = vpow2.f32 %v3469_v26  ;;  %v3047_v36 = vmul.f32 0.03125, %v2791_v5  ;;  %v2793_v3 = vsub.f32 0.0, %v2537_v22  ;;  %v2027_v59 = vmul.f32 2.0, %v6330_v10  ;;  %7170 = vst [vmem:[#allocation40_spill] sm:$0xff] %v6625_v17  ;;  %v7171_v5 = vld [vmem:[#allocation50_spill] sm:$0xff] }
 0x231   :  { %3809 = vst [vmem:[#allocation2 + $0x530] sm:$0xff] %v4397_v53  ;;  %4408 = vpow2.f32 %v3473_v16  ;;  %v2536_v20 = vmax.f32 %v2280_v2, 0.0  ;;  %v2282_v45 = vsub.f32 %v1770_v61, %v2026_v34  ;;  %v1773_v46 = vadd.f32 %v7062_v39, %v7169_v57  ;;  %v6631_v34 = vpop.f32.mrb[115].mxu1 }
 0x232   :  { %v4399_v47 = vpop.eup %4398  ;;  %v3475_v11 = vmul.f32 1.442695, %v3047_v36  ;;  %v3049_v19 = vmul.f32 0.03125, %v2793_v3  ;;  %v2283_v13 = vsub.f32 %v1771_v51, %v2027_v59  ;;  %v2029_v56 = vmul.f32 2.0, %v6335_v31  ;;  %7172 = vst [vmem:[#allocation8_spill] sm:$0xff] %v6631_v34 }
 0x233   :  { %3808 = vst [vmem:[#allocation2 + $0x528] sm:$0xff] %v4399_v47  ;;  %v2792_v44 = vsub.f32 0.0, %v2536_v20  ;;  %v2538_v26 = vmax.f32 %v2282_v45, 0.0  ;;  %v1772_v10 = vadd.f32 %v7064_v25, %v7169_v57  ;;  %v2028_v22 = vmul.f32 2.0, %v7171_v5  ;;  %v7173_v45 = vld [vmem:[#allocation27_spill] sm:$0xff]  ;;  %v6636_v5 = vpop.f32.mrb[116].mxu0 }
 0x234   :  { %4410 = vpow2.f32 %v3475_v11  ;;  %v3479_v61 = vmul.f32 1.442695, %v3049_v19  ;;  %v2539_v16 = vmax.f32 %v2283_v13, 0.0  ;;  %v2285_v2 = vsub.f32 %v1773_v46, %v2029_v56  ;;  %7174 = vst [vmem:[#allocation14_spill] sm:$0xff] %v6636_v5  ;;  %v7175_v56 = vld [vmem:[#allocation6_spill] sm:$0xff] }
 0x235   :  { %v4401_v53 = vpop.eup %4400  ;;  %v3048_v36 = vmul.f32 0.03125, %v2792_v44  ;;  %v2794_v3 = vsub.f32 0.0, %v2538_v26  ;;  %v2284_v51 = vsub.f32 %v1772_v10, %v2028_v22  ;;  %v1774_v31 = vadd.f32 %v7055_v43, %v7169_v57  ;;  %v6640_v26 = vpop.f32.mrb[116].mxu1 }
 0x236   :  { %3810 = vst [vmem:[#allocation2 + $0x538] sm:$0xff] %v4401_v53  ;;  %4412 = vpow2.f32 %v3479_v61  ;;  %v2795_v59 = vsub.f32 0.0, %v2539_v16  ;;  %v2541_v20 = vmax.f32 %v2285_v2, 0.0  ;;  %v2030_v47 = vmul.f32 2.0, %v7173_v45  ;;  %7176 = vst [vmem:[#allocation16_spill] sm:$0xff] %v6640_v26  ;;  %v7177_v16 = vld [vmem:[#allocation28_spill] sm:$0xff] }
 0x237   :  { %v4403_v11 = vpop.eup %4402  ;;  %v3477_v19 = vmul.f32 1.442695, %v3048_v36  ;;  %v3050_v46 = vmul.f32 0.03125, %v2794_v3  ;;  %v2540_v13 = vmax.f32 %v2284_v51, 0.0  ;;  %v1775_v44 = vadd.f32 %v7061_v62, %v7175_v56  ;;  %v6645_v3 = vpop.f32.mrb[117].mxu0 }
 0x238   :  { %v4405_v10 = vpop.eup %4404  ;;  %3811 = vst [vmem:[#allocation2 + $0x540] sm:$0xff] %v4403_v11  ;;  %v3051_v57 = vmul.f32 0.03125, %v2795_v59  ;;  %v2797_v22 = vsub.f32 0.0, %v2541_v20  ;;  %v2286_v61 = vsub.f32 %v1774_v31, %v2030_v47  ;;  %v2031_v2 = vmul.f32 2.0, %v7177_v16  ;;  %v6647_v11 = vpop.f32.mrb[117].mxu1  ;;  %v7178_v20 = vld [vmem:[#allocation52_spill] sm:$0xff] }
 0x239   :  { %3813 = vst [vmem:[#allocation2 + $0x550] sm:$0xff] %v4405_v10  ;;  %4414 = vpow2.f32 %v3477_v19  ;;  %v3481_v53 = vmul.f32 1.442695, %v3050_v46  ;;  %v2796_v45 = vsub.f32 0.0, %v2540_v13  ;;  %v1777_v36 = vadd.f32 %v7062_v39, %v7175_v56  ;;  %v6655_v16 = vpop.f32.mrb[118].mxu0 }
 0x23a   :  { %v4407_v51 = vpop.eup %4406  ;;  %v3483_v5 = vmul.f32 1.442695, %v3051_v57  ;;  %v3053_v34 = vmul.f32 0.03125, %v2797_v22  ;;  %v2542_v26 = vmax.f32 %v2286_v61, 0.0  ;;  %v2287_v17 = vsub.f32 %v1775_v44, %v2031_v2 }
 0x23b   :  { %v4409_v59 = vpop.eup %4408  ;;  %3812 = vst [vmem:[#allocation2 + $0x548] sm:$0xff] %v4407_v51  ;;  %4416 = vpow2.f32 %v3481_v53  ;;  %v3052_v31 = vmul.f32 0.03125, %v2796_v45  ;;  %v2033_v47 = vmul.f32 2.0, %v7178_v20  ;;  %v1776_v19 = vadd.f32 %v7064_v25, %v7175_v56 }
 0x23c   :  { %3814 = vst [vmem:[#allocation2 + $0x558] sm:$0xff] %v4409_v59  ;;  %4418 = vpow2.f32 %v3483_v5  ;;  %v3487_v46 = vmul.f32 1.442695, %v3053_v34  ;;  %v2798_v13 = vsub.f32 0.0, %v2542_v26  ;;  %v2543_v10 = vmax.f32 %v2287_v17, 0.0  ;;  %v7179_v17 = vld [vmem:[#allocation10_spill] sm:$0xff] }
 0x23d   :  { %v3485_v57 = vmul.f32 1.442695, %v3052_v31  ;;  %v2289_v22 = vsub.f32 %v1777_v36, %v2033_v47  ;;  %v2032_v44 = vmul.f32 2.0, %v6365_v49  ;;  %v1778_v61 = vadd.f32 %v7055_v43, %v7175_v56  ;;  %v6660_v36 = vpop.f32.mrb[118].mxu1 }
 0x23e   :  { %v4411_v2 = vpop.eup %4410  ;;  %4420 = vpow2.f32 %v3487_v46  ;;  %v3054_v53 = vmul.f32 0.03125, %v2798_v13  ;;  %v2799_v45 = vsub.f32 0.0, %v2543_v10  ;;  %v2034_v51 = vmul.f32 2.0, %v6373_v28  ;;  %7180 = vst [vmem:[#allocation17_spill] sm:$0xff] %v6660_v36  ;;  %v7181_v13 = vld [vmem:[#allocation30_spill] sm:$0xff] }
 0x23f   :  { %3815 = vst [vmem:[#allocation2 + $0x560] sm:$0xff] %v4411_v2  ;;  %4422 = vpow2.f32 %v3485_v57  ;;  %v2545_v34 = vmax.f32 %v2289_v22, 0.0  ;;  %v2288_v5 = vsub.f32 %v1776_v19, %v2032_v44  ;;  %v1779_v26 = vadd.f32 %v7061_v62, %v7179_v17  ;;  %v6666_v44 = vpop.f32.mrb[119].mxu0 }
 0x240   :  { %v4413_v49 = vpop.eup %4412  ;;  %v3489_v59 = vmul.f32 1.442695, %v3054_v53  ;;  %v3055_v56 = vmul.f32 0.03125, %v2799_v45  ;;  %v2290_v31 = vsub.f32 %v1778_v61, %v2034_v51  ;;  %v2035_v20 = vmul.f32 2.0, %v6384_v35  ;;  %7182 = vst [vmem:[#allocation5_spill] sm:$0xff] %v6666_v44 }
 0x241   :  { %3817 = vst [vmem:[#allocation2 + $0x570] sm:$0xff] %v4413_v49  ;;  %v2801_v47 = vsub.f32 0.0, %v2545_v34  ;;  %v2544_v46 = vmax.f32 %v2288_v5, 0.0  ;;  %v1781_v28 = vadd.f32 %v7062_v39, %v7179_v17  ;;  %v2037_v10 = vmul.f32 2.0, %v7181_v13  ;;  %v7183_v5 = vld [vmem:[#allocation31_spill] sm:$0xff]  ;;  %v6671_v13 = vpop.f32.mrb[119].mxu1 }
 0x242   :  { %4424 = vpow2.f32 %v3489_v59  ;;  %v3491_v19 = vmul.f32 1.442695, %v3055_v56  ;;  %v2546_v57 = vmax.f32 %v2290_v31, 0.0  ;;  %v2291_v22 = vsub.f32 %v1779_v26, %v2035_v20  ;;  %7184 = vst [vmem:[#allocation20_spill] sm:$0xff] %v6671_v13  ;;  %v7187_v13 = vld [vmem:[#allocation9_spill] sm:$0xff] }
 0x243   :  { %v4415_v2 = vpop.eup %4414  ;;  %v3057_v53 = vmul.f32 0.03125, %v2801_v47  ;;  %v2800_v45 = vsub.f32 0.0, %v2544_v46  ;;  %v2293_v61 = vsub.f32 %v1781_v28, %v2037_v10  ;;  %v1780_v35 = vadd.f32 %v7064_v25, %v7179_v17  ;;  %v6675_v47 = vpop.f32.mrb[120].mxu0 }
 0x244   :  { %3816 = vst [vmem:[#allocation2 + $0x568] sm:$0xff] %v4415_v2  ;;  %4426 = vpow2.f32 %v3491_v19  ;;  %v2802_v51 = vsub.f32 0.0, %v2546_v57  ;;  %v2547_v34 = vmax.f32 %v2291_v22, 0.0  ;;  %v2036_v49 = vmul.f32 2.0, %v7183_v5  ;;  %7185 = vst [vmem:[#allocation21_spill] sm:$0xff] %v6675_v47  ;;  %v7186_v57 = vld [vmem:[#allocation32_spill] sm:$0xff] }
 0x245   :  { %v4417_v59 = vpop.eup %4416  ;;  %v3495_v56 = vmul.f32 1.442695, %v3057_v53  ;;  %v3056_v26 = vmul.f32 0.03125, %v2800_v45  ;;  %v2549_v31 = vmax.f32 %v2293_v61, 0.0  ;;  %v1782_v20 = vadd.f32 %v7055_v43, %v7179_v17  ;;  %v6680_v45 = vpop.f32.mrb[120].mxu1 }
 0x246   :  { %v4419_v46 = vpop.eup %4418  ;;  %3818 = vst [vmem:[#allocation2 + $0x578] sm:$0xff] %v4417_v59  ;;  %v3058_v28 = vmul.f32 0.03125, %v2802_v51  ;;  %v2803_v10 = vsub.f32 0.0, %v2547_v34  ;;  %v2292_v19 = vsub.f32 %v1780_v35, %v2036_v49  ;;  %v2038_v22 = vmul.f32 2.0, %v7186_v57  ;;  %v6682_v59 = vpop.f32.mrb[121].mxu0  ;;  %v7188_v34 = vld [vmem:[#allocation33_spill] sm:$0xff] }
 0x247   :  { %3819 = vst [vmem:[#allocation2 + $0x580] sm:$0xff] %v4419_v46  ;;  %4428 = vpow2.f32 %v3495_v56  ;;  %v3493_v2 = vmul.f32 1.442695, %v3056_v26  ;;  %v2805_v5 = vsub.f32 0.0, %v2549_v31  ;;  %v1783_v53 = vadd.f32 %v7061_v62, %v7187_v13 }
 0x248   :  { %v4421_v61 = vpop.eup %4420  ;;  %v3497_v17 = vmul.f32 1.442695, %v3058_v28  ;;  %v3059_v44 = vmul.f32 0.03125, %v2803_v10  ;;  %v2548_v47 = vmax.f32 %v2292_v19, 0.0  ;;  %v2294_v36 = vsub.f32 %v1782_v20, %v2038_v22  ;;  %v7189_v19 = vld [vmem:[#allocation34_spill] sm:$0xff]  ;;  %v6690_v22 = vpop.f32.mrb[121].mxu1 }
 0x249   :  { %v4423_v51 = vpop.eup %4422  ;;  %3821 = vst [vmem:[#allocation2 + $0x590] sm:$0xff] %v4421_v61  ;;  %4430 = vpow2.f32 %v3493_v2  ;;  %v3061_v35 = vmul.f32 0.03125, %v2805_v5  ;;  %v2039_v49 = vmul.f32 2.0, %v7188_v34  ;;  %v1785_v56 = vadd.f32 %v7062_v39, %v7187_v13 }
 0x24a   :  { %3820 = vst [vmem:[#allocation2 + $0x588] sm:$0xff] %v4423_v51  ;;  %4432 = vpow2.f32 %v3497_v17  ;;  %v3499_v26 = vmul.f32 1.442695, %v3059_v44  ;;  %v2804_v31 = vsub.f32 0.0, %v2548_v47  ;;  %v2550_v46 = vmax.f32 %v2294_v36, 0.0 }
 0x24b   :  { %v3503_v28 = vmul.f32 1.442695, %v3061_v35  ;;  %v2295_v10 = vsub.f32 %v1783_v53, %v2039_v49  ;;  %v2041_v20 = vmul.f32 2.0, %v7189_v19  ;;  %v1784_v57 = vadd.f32 %v7064_v25, %v7187_v13  ;;  %v6695_v53 = vpop.f32.mrb[122].mxu0 }
 0x24c   :  { %v4425_v2 = vpop.eup %4424  ;;  %4434 = vpow2.f32 %v3499_v26  ;;  %v3060_v5 = vmul.f32 0.03125, %v2804_v31  ;;  %v2806_v61 = vsub.f32 0.0, %v2550_v46  ;;  %v2040_v34 = vmul.f32 2.0, %v6426_v8  ;;  %7190 = vst [vmem:[#allocation22_spill] sm:$0xff] %v6695_v53  ;;  %v7191_v46 = vld [vmem:[#allocation12_spill] sm:$0xff] }
 0x24d   :  { %3822 = vst [vmem:[#allocation2 + $0x598] sm:$0xff] %v4425_v2  ;;  %4436 = vpow2.f32 %v3503_v28  ;;  %v2551_v44 = vmax.f32 %v2295_v10, 0.0  ;;  %v2297_v47 = vsub.f32 %v1785_v56, %v2041_v20  ;;  %v1786_v36 = vadd.f32 %v7055_v43, %v7187_v13  ;;  %v6701_v20 = vpop.f32.mrb[122].mxu1 }
 0x24e   :  { %v4427_v17 = vpop.eup %4426  ;;  %v3501_v51 = vmul.f32 1.442695, %v3060_v5  ;;  %v3062_v35 = vmul.f32 0.03125, %v2806_v61  ;;  %v2296_v49 = vsub.f32 %v1784_v57, %v2040_v34  ;;  %v2042_v19 = vmul.f32 2.0, %v6428_v18  ;;  %7192 = vst [vmem:[#allocation44_spill] sm:$0xff] %v6701_v20 }
 0x24f   :  { %3823 = vst [vmem:[#allocation2 + $0x5a0] sm:$0xff] %v4427_v17  ;;  %v2807_v26 = vsub.f32 0.0, %v2551_v44  ;;  %v2553_v31 = vmax.f32 %v2297_v47, 0.0  ;;  %v1787_v8 = vadd.f32 %v7061_v62, %v7191_v46  ;;  %v2043_v28 = vmul.f32 2.0, %v6432_v23  ;;  %v7193_v47 = vld [vmem:[#allocation35_spill] sm:$0xff]  ;;  %v6706_v23 = vpop.f32.mrb[123].mxu0 }
 0x250   :  { %4438 = vpow2.f32 %v3501_v51  ;;  %v3505_v56 = vmul.f32 1.442695, %v3062_v35  ;;  %v2552_v10 = vmax.f32 %v2296_v49, 0.0  ;;  %v2298_v13 = vsub.f32 %v1786_v36, %v2042_v19  ;;  %7194 = vst [vmem:[#allocation23_spill] sm:$0xff] %v6706_v23 }
 0x251   :  { %v4429_v2 = vpop.eup %4428  ;;  %v3063_v5 = vmul.f32 0.03125, %v2807_v26  ;;  %v2809_v61 = vsub.f32 0.0, %v2553_v31  ;;  %v2299_v57 = vsub.f32 %v1787_v8, %v2043_v28  ;;  %v1789_v18 = vadd.f32 %v7062_v39, %v7191_v46  ;;  %v6710_v26 = vpop.f32.mrb[123].mxu1 }
 0x252   :  { %3825 = vst [vmem:[#allocation2 + $0x5b0] sm:$0xff] %v4429_v2  ;;  %4440 = vpow2.f32 %v3505_v56  ;;  %v2808_v34 = vsub.f32 0.0, %v2552_v10  ;;  %v2554_v44 = vmax.f32 %v2298_v13, 0.0  ;;  %v2045_v17 = vmul.f32 2.0, %v7193_v47  ;;  %7195 = vst [vmem:[#allocation48_spill] sm:$0xff] %v6710_v26  ;;  %v7196_v10 = vld [vmem:[#allocation36_spill] sm:$0xff] }
 0x253   :  { %v4431_v51 = vpop.eup %4430  ;;  %v3507_v35 = vmul.f32 1.442695, %v3063_v5  ;;  %v3065_v36 = vmul.f32 0.03125, %v2809_v61  ;;  %v2555_v49 = vmax.f32 %v2299_v57, 0.0  ;;  %v1788_v19 = vadd.f32 %v7064_v25, %v7191_v46  ;;  %v6715_v61 = vpop.f32.mrb[124].mxu0 }
 0x254   :  { %v4433_v31 = vpop.eup %4432  ;;  %3824 = vst [vmem:[#allocation2 + $0x5a8] sm:$0xff] %v4431_v51  ;;  %v3064_v8 = vmul.f32 0.03125, %v2808_v34  ;;  %v2810_v28 = vsub.f32 0.0, %v2554_v44  ;;  %v2301_v56 = vsub.f32 %v1789_v18, %v2045_v17  ;;  %v2044_v13 = vmul.f32 2.0, %v7196_v10  ;;  %v6717_v51 = vpop.f32.mrb[124].mxu1  ;;  %v7198_v44 = vld [vmem:[#allocation37_spill] sm:$0xff] }
 0x255   :  { %3826 = vst [vmem:[#allocation2 + $0x5b8] sm:$0xff] %v4433_v31  ;;  %4442 = vpow2.f32 %v3507_v35  ;;  %v3511_v2 = vmul.f32 1.442695, %v3065_v36  ;;  %v2811_v47 = vsub.f32 0.0, %v2555_v49  ;;  %v1790_v5 = vadd.f32 %v7055_v43, %v7191_v46  ;;  %7197 = vst [vmem:[#allocation7_spill] sm:$0xff] %v6717_v51  ;;  %v7199_v35 = vld [vmem:[#allocation11_spill] sm:$0xff] }
 0x256   :  { %v4435_v57 = vpop.eup %4434  ;;  %v3509_v23 = vmul.f32 1.442695, %v3064_v8  ;;  %v3066_v20 = vmul.f32 0.03125, %v2810_v28  ;;  %v2557_v26 = vmax.f32 %v2301_v56, 0.0  ;;  %v2300_v53 = vsub.f32 %v1788_v19, %v2044_v13  ;;  %v6722_v49 = vpop.f32.mrb[125].mxu0  ;;  %v7201_v56 = vld [vmem:[#allocation38_spill] sm:$0xff] }
 0x257   :  { %v4437_v34 = vpop.eup %4436  ;;  %3827 = vst [vmem:[#allocation2 + $0x5c0] sm:$0xff] %v4435_v57  ;;  %4444 = vpow2.f32 %v3511_v2  ;;  %v3067_v18 = vmul.f32 0.03125, %v2811_v47  ;;  %v2046_v17 = vmul.f32 2.0, %v7198_v44  ;;  %v1791_v36 = vadd.f32 %v7061_v62, %v7199_v35  ;;  %7200 = vst [vmem:[#allocation50_spill] sm:$0xff] %v6722_v49  ;;  %v6727_v2 = vpop.f32.mrb[125].mxu1  ;;  %v7202_v51 = vld [vmem:[#allocation39_spill] sm:$0xff] }
 0x258   :  { %3829 = vst [vmem:[#allocation2 + $0x5d0] sm:$0xff] %v4437_v34  ;;  %4446 = vpow2.f32 %v3509_v23  ;;  %v3513_v46 = vmul.f32 1.442695, %v3066_v20  ;;  %v2813_v31 = vsub.f32 0.0, %v2557_v26  ;;  %v2556_v8 = vmax.f32 %v2300_v53, 0.0  ;;  %v6732_v26 = vpop.f32.mrb[126].mxu0 }
 0x259   :  { %v3515_v28 = vmul.f32 1.442695, %v3067_v18  ;;  %v2302_v19 = vsub.f32 %v1790_v5, %v2046_v17  ;;  %v2047_v10 = vmul.f32 2.0, %v7201_v56  ;;  %v1793_v13 = vadd.f32 %v7062_v39, %v7199_v35 }
 0x25a   :  { %v4439_v47 = vpop.eup %4438  ;;  %4448 = vpow2.f32 %v3513_v46  ;;  %v3069_v57 = vmul.f32 0.03125, %v2813_v31  ;;  %v2812_v44 = vsub.f32 0.0, %v2556_v8  ;;  %v2049_v49 = vmul.f32 2.0, %v7202_v51 }
 0x25b   :  { %3828 = vst [vmem:[#allocation2 + $0x5c8] sm:$0xff] %v4439_v47  ;;  %4450 = vpow2.f32 %v3515_v28  ;;  %v2558_v20 = vmax.f32 %v2302_v19, 0.0  ;;  %v2303_v23 = vsub.f32 %v1791_v36, %v2047_v10  ;;  %v1792_v53 = vadd.f32 %v7064_v25, %v7199_v35  ;;  %v6738_v10 = vpop.f32.mrb[126].mxu1 }
 0x25c   :  { %v4441_v5 = vpop.eup %4440  ;;  %v3519_v34 = vmul.f32 1.442695, %v3069_v57  ;;  %v3068_v18 = vmul.f32 0.03125, %v2812_v44  ;;  %v2305_v17 = vsub.f32 %v1793_v13, %v2049_v49  ;;  %v2048_v56 = vmul.f32 2.0, %v6465_v52  ;;  %v7203_v13 = vld [vmem:[#allocation15_spill] sm:$0xff] }
 0x25d   :  { %3830 = vst [vmem:[#allocation2 + $0x5d8] sm:$0xff] %v4441_v5  ;;  %v2814_v46 = vsub.f32 0.0, %v2558_v20  ;;  %v2559_v31 = vmax.f32 %v2303_v23, 0.0  ;;  %v1794_v51 = vadd.f32 %v7055_v43, %v7199_v35  ;;  %v2050_v8 = vmul.f32 2.0, %v6468_v7  ;;  %v6743_v7 = vpop.f32.mrb[127].mxu0 }
 0x25e   :  { %4452 = vpow2.f32 %v3519_v34  ;;  %v3517_v36 = vmul.f32 1.442695, %v3068_v18  ;;  %v2561_v28 = vmax.f32 %v2305_v17, 0.0  ;;  %v2304_v19 = vsub.f32 %v1792_v53, %v2048_v56  ;;  %7204 = vst [vmem:[#allocation27_spill] sm:$0xff] %v6743_v7  ;;  %v6747_v56 = vpop.f32.mrb[127].mxu1 }
 0x25f   :  { %v4443_v47 = vpop.eup %4442  ;;  %v3070_v57 = vmul.f32 0.03125, %v2814_v46  ;;  %v2815_v44 = vsub.f32 0.0, %v2559_v31  ;;  %v2306_v49 = vsub.f32 %v1794_v51, %v2050_v8  ;;  %v1795_v52 = vadd.f32 %v7061_v62, %v7203_v13  ;;  %7205 = vst [vmem:[#allocation6_spill] sm:$0xff] %v6747_v56 }
 0x260   :  { %3831 = vst [vmem:[#allocation2 + $0x5e0] sm:$0xff] %v4443_v47  ;;  %4454 = vpow2.f32 %v3517_v36  ;;  %v2817_v20 = vsub.f32 0.0, %v2561_v28  ;;  %v2560_v23 = vmax.f32 %v2304_v19, 0.0  ;;  %v2051_v35 = vmul.f32 2.0, %v6472_v38 }
 0x261   :  { %v4445_v5 = vpop.eup %4444  ;;  %v3521_v34 = vmul.f32 1.442695, %v3070_v57  ;;  %v3071_v53 = vmul.f32 0.03125, %v2815_v44  ;;  %v2562_v18 = vmax.f32 %v2306_v49, 0.0  ;;  %v1797_v17 = vadd.f32 %v7062_v39, %v7203_v13 }
 0x262   :  { %v4447_v46 = vpop.eup %4446  ;;  %3833 = vst [vmem:[#allocation2 + $0x5f0] sm:$0xff] %v4445_v5  ;;  %v3073_v31 = vmul.f32 0.03125, %v2817_v20  ;;  %v2816_v51 = vsub.f32 0.0, %v2560_v23  ;;  %v2307_v8 = vsub.f32 %v1795_v52, %v2051_v35  ;;  %v2053_v36 = vmul.f32 2.0, %v6478_v1 }
 0x263   :  { %3832 = vst [vmem:[#allocation2 + $0x5e8] sm:$0xff] %v4447_v46  ;;  %4456 = vpow2.f32 %v3521_v34  ;;  %v3523_v38 = vmul.f32 1.442695, %v3071_v53  ;;  %v2818_v28 = vsub.f32 0.0, %v2562_v18  ;;  %v1796_v19 = vadd.f32 %v7064_v25, %v7203_v13  ;;  %v7206_v46 = vld [vmem:[#allocation13_spill] sm:$0xff] }
 0x264   :  { %v4449_v47 = vpop.eup %4448  ;;  %v3527_v57 = vmul.f32 1.442695, %v3073_v31  ;;  %v3072_v44 = vmul.f32 0.03125, %v2816_v51  ;;  %v2563_v49 = vmax.f32 %v2307_v8, 0.0  ;;  %v2309_v7 = vsub.f32 %v1797_v17, %v2053_v36 }
 0x265   :  { %v4451_v56 = vpop.eup %4450  ;;  %3834 = vst [vmem:[#allocation2 + $0x5f8] sm:$0xff] %v4449_v47  ;;  %4458 = vpow2.f32 %v3523_v38  ;;  %v3074_v20 = vmul.f32 0.03125, %v2818_v28  ;;  %v2052_v52 = vmul.f32 2.0, %v6485_v40  ;;  %v1798_v1 = vadd.f32 %v7055_v43, %v7203_v13 }
 0x266   :  { %3835 = vst [vmem:[#allocation2 + $0x600] sm:$0xff] %v4451_v56  ;;  %4460 = vpow2.f32 %v3527_v57  ;;  %v3525_v23 = vmul.f32 1.442695, %v3072_v44  ;;  %v2819_v35 = vsub.f32 0.0, %v2563_v49  ;;  %v2565_v5 = vmax.f32 %v2309_v7, 0.0 }
 0x267   :  { %v3529_v34 = vmul.f32 1.442695, %v3074_v20  ;;  %v2308_v53 = vsub.f32 %v1796_v19, %v2052_v52  ;;  %v2054_v18 = vmul.f32 2.0, %v6491_v41  ;;  %v1799_v17 = vadd.f32 %v7061_v62, %v7206_v46 }
 0x268   :  { %v4453_v31 = vpop.eup %4452  ;;  %4462 = vpow2.f32 %v3525_v23  ;;  %v3075_v51 = vmul.f32 0.03125, %v2819_v35  ;;  %v2821_v8 = vsub.f32 0.0, %v2565_v5  ;;  %v2055_v40 = vmul.f32 2.0, %v6496_v48 }
 0x269   :  { %3837 = vst [vmem:[#allocation2 + $0x610] sm:$0xff] %v4453_v31  ;;  %4464 = vpow2.f32 %v3529_v34  ;;  %v2564_v13 = vmax.f32 %v2308_v53, 0.0  ;;  %v2310_v56 = vsub.f32 %v1798_v1, %v2054_v18  ;;  %v1801_v7 = vadd.f32 %v7062_v39, %v7206_v46 }
 0x26a   :  { %v4455_v36 = vpop.eup %4454  ;;  %v3531_v38 = vmul.f32 1.442695, %v3075_v51  ;;  %v3077_v28 = vmul.f32 0.03125, %v2821_v8  ;;  %v2311_v41 = vsub.f32 %v1799_v17, %v2055_v40  ;;  %v2057_v19 = vmul.f32 2.0, %v6500_v63  ;;  %v7207_v8 = vld [vmem:[#allocation18_spill] sm:$0xff] }
 0x26b   :  { %3836 = vst [vmem:[#allocation2 + $0x608] sm:$0xff] %v4455_v36  ;;  %v2820_v47 = vsub.f32 0.0, %v2564_v13  ;;  %v2566_v57 = vmax.f32 %v2310_v56, 0.0  ;;  %v1800_v44 = vadd.f32 %v7064_v25, %v7206_v46  ;;  %v2056_v48 = vmul.f32 2.0, %v6505_v54 }
 0x26c   :  { %4466 = vpow2.f32 %v3531_v38  ;;  %v3535_v49 = vmul.f32 1.442695, %v3077_v28  ;;  %v2567_v20 = vmax.f32 %v2311_v41, 0.0  ;;  %v2313_v52 = vsub.f32 %v1801_v7, %v2057_v19 }
 0x26d   :  { %v4457_v1 = vpop.eup %4456  ;;  %v3076_v23 = vmul.f32 0.03125, %v2820_v47  ;;  %v2822_v35 = vsub.f32 0.0, %v2566_v57  ;;  %v2312_v5 = vsub.f32 %v1800_v44, %v2056_v48  ;;  %v1802_v34 = vadd.f32 %v7055_v43, %v7206_v46 }
 0x26e   :  { %3838 = vst [vmem:[#allocation2 + $0x618] sm:$0xff] %v4457_v1  ;;  %4468 = vpow2.f32 %v3535_v49  ;;  %v2823_v63 = vsub.f32 0.0, %v2567_v20  ;;  %v2569_v53 = vmax.f32 %v2313_v52, 0.0  ;;  %v2058_v18 = vmul.f32 2.0, %v6507_v21 }
 0x26f   :  { %v4459_v17 = vpop.eup %4458  ;;  %v3533_v31 = vmul.f32 1.442695, %v3076_v23  ;;  %v3078_v54 = vmul.f32 0.03125, %v2822_v35  ;;  %v2568_v51 = vmax.f32 %v2312_v5, 0.0  ;;  %v1803_v40 = vadd.f32 %v7061_v62, %v7207_v8 }
 0x270   :  { %v4461_v13 = vpop.eup %4460  ;;  %3839 = vst [vmem:[#allocation2 + $0x620] sm:$0xff] %v4459_v17  ;;  %v3079_v56 = vmul.f32 0.03125, %v2823_v63  ;;  %v2825_v7 = vsub.f32 0.0, %v2569_v53  ;;  %v2314_v36 = vsub.f32 %v1802_v34, %v2058_v18  ;;  %v2059_v46 = vmul.f32 2.0, %v6515_v24 }
 0x271   :  { %3841 = vst [vmem:[#allocation2 + $0x630] sm:$0xff] %v4461_v13  ;;  %4470 = vpow2.f32 %v3533_v31  ;;  %v3537_v38 = vmul.f32 1.442695, %v3078_v54  ;;  %v2824_v28 = vsub.f32 0.0, %v2568_v51  ;;  %v1805_v21 = vadd.f32 %v7062_v39, %v7207_v8  ;;  %v7208_v51 = vld [vmem:[#allocation45_spill] sm:$0xff] }
 0x272   :  { %v4463_v41 = vpop.eup %4462  ;;  %v3539_v19 = vmul.f32 1.442695, %v3079_v56  ;;  %v3081_v47 = vmul.f32 0.03125, %v2825_v7  ;;  %v2570_v57 = vmax.f32 %v2314_v36, 0.0  ;;  %v2315_v44 = vsub.f32 %v1803_v40, %v2059_v46 }
 0x273   :  { %v4465_v48 = vpop.eup %4464  ;;  %3840 = vst [vmem:[#allocation2 + $0x628] sm:$0xff] %v4463_v41  ;;  %4472 = vpow2.f32 %v3537_v38  ;;  %v3080_v49 = vmul.f32 0.03125, %v2824_v28  ;;  %v2061_v20 = vmul.f32 2.0, %v6520_v33  ;;  %v1804_v24 = vadd.f32 %v7064_v25, %v7207_v8 }
 0x274   :  { %3842 = vst [vmem:[#allocation2 + $0x638] sm:$0xff] %v4465_v48  ;;  %4474 = vpow2.f32 %v3539_v19  ;;  %v3543_v52 = vmul.f32 1.442695, %v3081_v47  ;;  %v2826_v1 = vsub.f32 0.0, %v2570_v57  ;;  %v2571_v23 = vmax.f32 %v2315_v44, 0.0 }
 0x275   :  { %v3541_v35 = vmul.f32 1.442695, %v3080_v49  ;;  %v2317_v5 = vsub.f32 %v1805_v21, %v2061_v20  ;;  %v2060_v34 = vmul.f32 2.0, %v6526_v37  ;;  %v1806_v63 = vadd.f32 %v7055_v43, %v7207_v8 }
 0x276   :  { %v4467_v53 = vpop.eup %4466  ;;  %4476 = vpow2.f32 %v3543_v52  ;;  %v3082_v18 = vmul.f32 0.03125, %v2826_v1  ;;  %v2827_v17 = vsub.f32 0.0, %v2571_v23  ;;  %v2062_v33 = vmul.f32 2.0, %v6531_v9 }
 0x277   :  { %3843 = vst [vmem:[#allocation2 + $0x640] sm:$0xff] %v4467_v53  ;;  %4478 = vpow2.f32 %v3541_v35  ;;  %v2573_v31 = vmax.f32 %v2317_v5, 0.0  ;;  %v2316_v54 = vsub.f32 %v1804_v24, %v2060_v34  ;;  %v1807_v40 = vadd.f32 %v7061_v62, %v7208_v51 }
 0x278   :  { %v4469_v13 = vpop.eup %4468  ;;  %v3545_v56 = vmul.f32 1.442695, %v3082_v18  ;;  %v3083_v7 = vmul.f32 0.03125, %v2827_v17  ;;  %v2318_v37 = vsub.f32 %v1806_v63, %v2062_v33  ;;  %v2063_v36 = vmul.f32 2.0, %v6535_v50  ;;  %v7209_v33 = vld [vmem:[#allocation46_spill] sm:$0xff] }
 0x279   :  { %3845 = vst [vmem:[#allocation2 + $0x650] sm:$0xff] %v4469_v13  ;;  %v2829_v8 = vsub.f32 0.0, %v2573_v31  ;;  %v2572_v46 = vmax.f32 %v2316_v54, 0.0  ;;  %v1809_v38 = vadd.f32 %v7062_v39, %v7208_v51  ;;  %v2065_v9 = vmul.f32 2.0, %v6540_v14 }
 0x27a   :  { %4480 = vpow2.f32 %v3545_v56  ;;  %v3547_v28 = vmul.f32 1.442695, %v3083_v7  ;;  %v2574_v21 = vmax.f32 %v2318_v37, 0.0  ;;  %v2319_v41 = vsub.f32 %v1807_v40, %v2063_v36 }
 0x27b   :  { %v4471_v19 = vpop.eup %4470  ;;  %v3085_v47 = vmul.f32 0.03125, %v2829_v8  ;;  %v2828_v57 = vsub.f32 0.0, %v2572_v46  ;;  %v2321_v44 = vsub.f32 %v1809_v38, %v2065_v9  ;;  %v1808_v48 = vadd.f32 %v7064_v25, %v7208_v51 }
 0x27c   :  { %3844 = vst [vmem:[#allocation2 + $0x648] sm:$0xff] %v4471_v19  ;;  %4482 = vpow2.f32 %v3547_v28  ;;  %v2830_v50 = vsub.f32 0.0, %v2574_v21  ;;  %v2575_v49 = vmax.f32 %v2319_v41, 0.0  ;;  %v2064_v20 = vmul.f32 2.0, %v6542_v60 }
 0x27d   :  { %v4473_v24 = vpop.eup %4472  ;;  %v3551_v52 = vmul.f32 1.442695, %v3085_v47  ;;  %v3084_v14 = vmul.f32 0.03125, %v2828_v57  ;;  %v2577_v1 = vmax.f32 %v2321_v44, 0.0  ;;  %v1810_v23 = vadd.f32 %v7055_v43, %v7208_v51 }
 0x27e   :  { %v4475_v35 = vpop.eup %4474  ;;  %3846 = vst [vmem:[#allocation2 + $0x658] sm:$0xff] %v4473_v24  ;;  %v3086_v5 = vmul.f32 0.03125, %v2830_v50  ;;  %v2831_v34 = vsub.f32 0.0, %v2575_v49  ;;  %v2320_v63 = vsub.f32 %v1808_v48, %v2064_v20  ;;  %v2066_v53 = vmul.f32 2.0, %v6550_v15 }
 0x27f   :  { %3847 = vst [vmem:[#allocation2 + $0x660] sm:$0xff] %v4475_v35  ;;  %4484 = vpow2.f32 %v3551_v52  ;;  %v3549_v18 = vmul.f32 1.442695, %v3084_v14  ;;  %v2833_v17 = vsub.f32 0.0, %v2577_v1  ;;  %v1811_v60 = vadd.f32 %v7061_v62, %v7209_v33  ;;  %v7210_v1 = vld [vmem:[#allocation19_spill] sm:$0xff] }
 0x280   :  { %v4477_v31 = vpop.eup %4476  ;;  %v3553_v54 = vmul.f32 1.442695, %v3086_v5  ;;  %v3087_v40 = vmul.f32 0.03125, %v2831_v34  ;;  %v2576_v13 = vmax.f32 %v2320_v63, 0.0  ;;  %v2322_v56 = vsub.f32 %v1810_v23, %v2066_v53 }
 0x281   :  { %v4479_v51 = vpop.eup %4478  ;;  %3849 = vst [vmem:[#allocation2 + $0x670] sm:$0xff] %v4477_v31  ;;  %4486 = vpow2.f32 %v3549_v18  ;;  %v3089_v7 = vmul.f32 0.03125, %v2833_v17  ;;  %v2067_v37 = vmul.f32 2.0, %v6555_v58  ;;  %v1813_v15 = vadd.f32 %v7062_v39, %v7209_v33 }
 0x282   :  { %3848 = vst [vmem:[#allocation2 + $0x668] sm:$0xff] %v4479_v51  ;;  %4488 = vpow2.f32 %v3553_v54  ;;  %v3555_v36 = vmul.f32 1.442695, %v3087_v40  ;;  %v2832_v8 = vsub.f32 0.0, %v2576_v13  ;;  %v2578_v46 = vmax.f32 %v2322_v56, 0.0 }
 0x283   :  { %v3559_v38 = vmul.f32 1.442695, %v3089_v7  ;;  %v2323_v9 = vsub.f32 %v1811_v60, %v2067_v37  ;;  %v2069_v28 = vmul.f32 2.0, %v6561_v6  ;;  %v1812_v21 = vadd.f32 %v7064_v25, %v7209_v33 }
 0x284   :  { %v4481_v41 = vpop.eup %4480  ;;  %4490 = vpow2.f32 %v3555_v36  ;;  %v3088_v19 = vmul.f32 0.03125, %v2832_v8  ;;  %v2834_v47 = vsub.f32 0.0, %v2578_v46  ;;  %v2068_v58 = vmul.f32 2.0, %v6566_v30 }
 0x285   :  { %3850 = vst [vmem:[#allocation2 + $0x678] sm:$0xff] %v4481_v41  ;;  %4492 = vpow2.f32 %v3559_v38  ;;  %v2579_v57 = vmax.f32 %v2323_v9, 0.0  ;;  %v2325_v44 = vsub.f32 %v1813_v15, %v2069_v28  ;;  %v1814_v48 = vadd.f32 %v7055_v43, %v7209_v33 }
 0x286   :  { %v4483_v50 = vpop.eup %4482  ;;  %v3557_v49 = vmul.f32 1.442695, %v3088_v19  ;;  %v3090_v20 = vmul.f32 0.03125, %v2834_v47  ;;  %v2324_v6 = vsub.f32 %v1812_v21, %v2068_v58  ;;  %v2070_v24 = vmul.f32 2.0, %v6570_v12 }
 0x287   :  { %3851 = vst [vmem:[#allocation2 + $0x680] sm:$0xff] %v4483_v50  ;;  %v2835_v52 = vsub.f32 0.0, %v2579_v57  ;;  %v2581_v14 = vmax.f32 %v2325_v44, 0.0  ;;  %v1815_v23 = vadd.f32 %v7061_v62, %v7210_v1  ;;  %v2071_v30 = vmul.f32 2.0, %v6575_v4  ;;  %v7211_v57 = vld [vmem:[#allocation24_spill] sm:$0xff] }
 0x288   :  { %4494 = vpow2.f32 %v3557_v49  ;;  %v3561_v35 = vmul.f32 1.442695, %v3090_v20  ;;  %v2580_v5 = vmax.f32 %v2324_v6, 0.0  ;;  %v2326_v34 = vsub.f32 %v1814_v48, %v2070_v24  ;;  %v7212_v6 = vld [vmem:[#allocation41_spill] sm:$0xff] }
 0x289   :  { %v4485_v63 = vpop.eup %4484  ;;  %v3091_v53 = vmul.f32 0.03125, %v2835_v52  ;;  %v2837_v18 = vsub.f32 0.0, %v2581_v14  ;;  %v2327_v17 = vsub.f32 %v1815_v23, %v2071_v30  ;;  %v1817_v33 = vadd.f32 %v7062_v39, %v7210_v1 }
 0x28a   :  { %3853 = vst [vmem:[#allocation2 + $0x690] sm:$0xff] %v4485_v63  ;;  %4496 = vpow2.f32 %v3561_v35  ;;  %v2836_v12 = vsub.f32 0.0, %v2580_v5  ;;  %v2582_v60 = vmax.f32 %v2326_v34, 0.0  ;;  %v2073_v31 = vmul.f32 2.0, %v6577_v29 }
 0x28b   :  { %v4487_v54 = vpop.eup %4486  ;;  %v3563_v40 = vmul.f32 1.442695, %v3091_v53  ;;  %v3093_v4 = vmul.f32 0.03125, %v2837_v18  ;;  %v2583_v13 = vmax.f32 %v2327_v17, 0.0  ;;  %v1816_v56 = vadd.f32 %v7064_v25, %v7210_v1 }
 0x28c   :  { %v4489_v51 = vpop.eup %4488  ;;  %3852 = vst [vmem:[#allocation2 + $0x688] sm:$0xff] %v4487_v54  ;;  %v3092_v7 = vmul.f32 0.03125, %v2836_v12  ;;  %v2838_v37 = vsub.f32 0.0, %v2582_v60  ;;  %v2329_v15 = vsub.f32 %v1817_v33, %v2073_v31  ;;  %v2072_v36 = vmul.f32 2.0, %v6585_v32  ;;  %v7214_v33 = vld [vmem:[#allocation43_spill] sm:$0xff] }
 0x28d   :  { %3854 = vst [vmem:[#allocation2 + $0x698] sm:$0xff] %v4489_v51  ;;  %4498 = vpow2.f32 %v3563_v40  ;;  %v3567_v8 = vmul.f32 1.442695, %v3093_v4  ;;  %v2839_v46 = vsub.f32 0.0, %v2583_v13  ;;  %v1818_v29 = vadd.f32 %v7055_v43, %v7210_v1 }
 0x28e   :  { %v4491_v38 = vpop.eup %4490  ;;  %v3565_v9 = vmul.f32 1.442695, %v3092_v7  ;;  %v3094_v28 = vmul.f32 0.03125, %v2838_v37  ;;  %v2585_v21 = vmax.f32 %v2329_v15, 0.0  ;;  %v2328_v41 = vsub.f32 %v1816_v56, %v2072_v36  ;;  %v7215_v36 = vld [vmem:[#allocation47_spill] sm:$0xff] }
 0x28f   :  { %v4493_v19 = vpop.eup %4492  ;;  %3855 = vst [vmem:[#allocation2 + $0x6a0] sm:$0xff] %v4491_v38  ;;  %4500 = vpow2.f32 %v3567_v8  ;;  %v3095_v47 = vmul.f32 0.03125, %v2839_v46  ;;  %v2074_v58 = vmul.f32 2.0, %v6590_v0  ;;  %v1819_v32 = vadd.f32 %v7061_v62, %v7211_v57  ;;  %v7213_v0 = vld [vmem:[#allocation42_spill] sm:$0xff] }
 0x290   :  { %3857 = vst [vmem:[#allocation2 + $0x6b0] sm:$0xff] %v4493_v19  ;;  %4502 = vpow2.f32 %v3565_v9  ;;  %v3569_v44 = vmul.f32 1.442695, %v3094_v28  ;;  %v2841_v48 = vsub.f32 0.0, %v2585_v21  ;;  %v2584_v50 = vmax.f32 %v2328_v41, 0.0 }
 0x291   :  { %v3571_v49 = vmul.f32 1.442695, %v3095_v47  ;;  %v2330_v20 = vsub.f32 %v1818_v29, %v2074_v58  ;;  %v2075_v24 = vmul.f32 2.0, %v7212_v6  ;;  %v1821_v52 = vadd.f32 %v7062_v39, %v7211_v57 }
 0x292   :  { %v4495_v14 = vpop.eup %4494  ;;  %4504 = vpow2.f32 %v3569_v44  ;;  %v3097_v1 = vmul.f32 0.03125, %v2841_v48  ;;  %v2840_v23 = vsub.f32 0.0, %v2584_v50  ;;  %v2077_v30 = vmul.f32 2.0, %v7213_v0 }
 0x293   :  { %3856 = vst [vmem:[#allocation2 + $0x6a8] sm:$0xff] %v4495_v14  ;;  %4506 = vpow2.f32 %v3571_v49  ;;  %v2586_v35 = vmax.f32 %v2330_v20, 0.0  ;;  %v2331_v5 = vsub.f32 %v1819_v32, %v2075_v24  ;;  %v1820_v34 = vadd.f32 %v7064_v25, %v7211_v57 }
 0x294   :  { %v4497_v63 = vpop.eup %4496  ;;  %v3575_v53 = vmul.f32 1.442695, %v3097_v1  ;;  %v3096_v18 = vmul.f32 0.03125, %v2840_v23  ;;  %v2333_v17 = vsub.f32 %v1821_v52, %v2077_v30  ;;  %v2076_v12 = vmul.f32 2.0, %v7214_v33  ;;  %v7216_v1 = vld [vmem:[#allocation40_spill] sm:$0xff] }
 0x295   :  { %3858 = vst [vmem:[#allocation2 + $0x6b8] sm:$0xff] %v4497_v63  ;;  %v2842_v60 = vsub.f32 0.0, %v2586_v35  ;;  %v2587_v31 = vmax.f32 %v2331_v5, 0.0  ;;  %v1822_v54 = vadd.f32 %v7055_v43, %v7211_v57  ;;  %v2078_v40 = vmul.f32 2.0, %v6610_v42  ;;  %v7217_v63 = vld [vmem:[#allocation8_spill] sm:$0xff] }
 0x296   :  { %4508 = vpow2.f32 %v3575_v53  ;;  %v3573_v4 = vmul.f32 1.442695, %v3096_v18  ;;  %v2589_v13 = vmax.f32 %v2333_v17, 0.0  ;;  %v2332_v56 = vsub.f32 %v1820_v34, %v2076_v12  ;;  %v7218_v18 = vld [vmem:[#allocation25_spill] sm:$0xff] }
 0x297   :  { %v4499_v51 = vpop.eup %4498  ;;  %v3098_v7 = vmul.f32 0.03125, %v2842_v60  ;;  %v2843_v37 = vsub.f32 0.0, %v2587_v31  ;;  %v2334_v15 = vsub.f32 %v1822_v54, %v2078_v40  ;;  %v1823_v8 = vadd.f32 %v7061_v62, %v7215_v36  ;;  %v7219_v31 = vld [vmem:[#allocation14_spill] sm:$0xff] }
 0x298   :  { %3859 = vst [vmem:[#allocation2 + $0x6c0] sm:$0xff] %v4499_v51  ;;  %4510 = vpow2.f32 %v3573_v4  ;;  %v2845_v46 = vsub.f32 0.0, %v2589_v13  ;;  %v2588_v29 = vmax.f32 %v2332_v56, 0.0  ;;  %v2079_v38 = vmul.f32 2.0, %v6612_v27 }
 0x299   :  { %v4501_v9 = vpop.eup %4500  ;;  %v3577_v28 = vmul.f32 1.442695, %v3098_v7  ;;  %v3099_v42 = vmul.f32 0.03125, %v2843_v37  ;;  %v2590_v21 = vmax.f32 %v2334_v15, 0.0  ;;  %v1825_v41 = vadd.f32 %v7062_v39, %v7215_v36  ;;  %v7220_v15 = vld [vmem:[#allocation16_spill] sm:$0xff] }
 0x29a   :  { %v4503_v19 = vpop.eup %4502  ;;  %3861 = vst [vmem:[#allocation2 + $0x6d0] sm:$0xff] %v4501_v9  ;;  %v3101_v47 = vmul.f32 0.03125, %v2845_v46  ;;  %v2844_v58 = vsub.f32 0.0, %v2588_v29  ;;  %v2335_v57 = vsub.f32 %v1823_v8, %v2079_v38  ;;  %v2081_v32 = vmul.f32 2.0, %v6620_v55 }
 0x29b   :  { %3860 = vst [vmem:[#allocation2 + $0x6c8] sm:$0xff] %v4503_v19  ;;  %4512 = vpow2.f32 %v3577_v28  ;;  %v3579_v44 = vmul.f32 1.442695, %v3099_v42  ;;  %v2846_v48 = vsub.f32 0.0, %v2590_v21  ;;  %v1824_v27 = vadd.f32 %v7064_v25, %v7215_v36 }
 0x29c   :  { %v4505_v50 = vpop.eup %4504  ;;  %v3583_v49 = vmul.f32 1.442695, %v3101_v47  ;;  %v3100_v20 = vmul.f32 0.03125, %v2844_v58  ;;  %v2591_v6 = vmax.f32 %v2335_v57, 0.0  ;;  %v2337_v24 = vsub.f32 %v1825_v41, %v2081_v32 }
 0x29d   :  { %v4507_v52 = vpop.eup %4506  ;;  %3862 = vst [vmem:[#allocation2 + $0x6d8] sm:$0xff] %v4505_v50  ;;  %4514 = vpow2.f32 %v3579_v44  ;;  %v3102_v14 = vmul.f32 0.03125, %v2846_v48  ;;  %v2080_v23 = vmul.f32 2.0, %v7216_v1  ;;  %v1826_v55 = vadd.f32 %v7055_v43, %v7215_v36 }
 0x29e   :  { %3863 = vst [vmem:[#allocation2 + $0x6e0] sm:$0xff] %v4507_v52  ;;  %4516 = vpow2.f32 %v3583_v49  ;;  %v3581_v0 = vmul.f32 1.442695, %v3100_v20  ;;  %v2847_v30 = vsub.f32 0.0, %v2591_v6  ;;  %v2593_v35 = vmax.f32 %v2337_v24, 0.0  ;;  %v7221_v49 = vld [vmem:[#allocation49_spill] sm:$0xff] }
 0x29f   :  { %v3585_v5 = vmul.f32 1.442695, %v3102_v14  ;;  %v2336_v34 = vsub.f32 %v1824_v27, %v2080_v23  ;;  %v2082_v53 = vmul.f32 2.0, %v7217_v63  ;;  %v1827_v17 = vadd.f32 %v7061_v62, %v7218_v18 }
 0x2a0   :  { %v4509_v33 = vpop.eup %4508  ;;  %4518 = vpow2.f32 %v3581_v0  ;;  %v3103_v12 = vmul.f32 0.03125, %v2847_v30  ;;  %v2849_v60 = vsub.f32 0.0, %v2593_v35  ;;  %v2083_v54 = vmul.f32 2.0, %v7219_v31 }
 0x2a1   :  { %3865 = vst [vmem:[#allocation2 + $0x6f0] sm:$0xff] %v4509_v33  ;;  %4520 = vpow2.f32 %v3585_v5  ;;  %v2592_v40 = vmax.f32 %v2336_v34, 0.0  ;;  %v2338_v4 = vsub.f32 %v1826_v55, %v2082_v53  ;;  %v1829_v13 = vadd.f32 %v7062_v39, %v7218_v18 }
 0x2a2   :  { %v4511_v56 = vpop.eup %4510  ;;  %v3587_v51 = vmul.f32 1.442695, %v3103_v12  ;;  %v3105_v7 = vmul.f32 0.03125, %v2849_v60  ;;  %v2339_v37 = vsub.f32 %v1827_v17, %v2083_v54  ;;  %v2085_v36 = vmul.f32 2.0, %v7220_v15 }
 0x2a3   :  { %3864 = vst [vmem:[#allocation2 + $0x6e8] sm:$0xff] %v4511_v56  ;;  %v2848_v8 = vsub.f32 0.0, %v2592_v40  ;;  %v2594_v46 = vmax.f32 %v2338_v4, 0.0  ;;  %v1828_v29 = vadd.f32 %v7064_v25, %v7218_v18  ;;  %v2084_v38 = vmul.f32 2.0, %v6645_v3  ;;  %v7223_v40 = vld [vmem:[#allocation5_spill] sm:$0xff] }
 0x2a4   :  { %4522 = vpow2.f32 %v3587_v51  ;;  %v3591_v9 = vmul.f32 1.442695, %v3105_v7  ;;  %v2595_v28 = vmax.f32 %v2339_v37, 0.0  ;;  %v2341_v42 = vsub.f32 %v1829_v13, %v2085_v36  ;;  %v7224_v37 = vld [vmem:[#allocation20_spill] sm:$0xff] }
 0x2a5   :  { %v4513_v21 = vpop.eup %4512  ;;  %v3104_v41 = vmul.f32 0.03125, %v2848_v8  ;;  %v2850_v19 = vsub.f32 0.0, %v2594_v46  ;;  %v2340_v47 = vsub.f32 %v1828_v29, %v2084_v38  ;;  %v1830_v58 = vadd.f32 %v7055_v43, %v7218_v18  ;;  %v7222_v18 = vld [vmem:[#allocation17_spill] sm:$0xff]  ;;  %v7225_v46 = vld [vmem:[#allocation51_spill] sm:$0xff] }
 0x2a6   :  { %3866 = vst [vmem:[#allocation2 + $0x6f8] sm:$0xff] %v4513_v21  ;;  %4524 = vpow2.f32 %v3591_v9  ;;  %v2851_v57 = vsub.f32 0.0, %v2595_v28  ;;  %v2597_v32 = vmax.f32 %v2341_v42, 0.0  ;;  %v2086_v44 = vmul.f32 2.0, %v6647_v11  ;;  %v7226_v21 = vld [vmem:[#allocation21_spill] sm:$0xff] }
 0x2a7   :  { %v4515_v48 = vpop.eup %4514  ;;  %v3589_v27 = vmul.f32 1.442695, %v3104_v41  ;;  %v3106_v3 = vmul.f32 0.03125, %v2850_v19  ;;  %v2596_v50 = vmax.f32 %v2340_v47, 0.0  ;;  %v1831_v20 = vadd.f32 %v7061_v62, %v7221_v49 }
 0x2a8   :  { %v4517_v6 = vpop.eup %4516  ;;  %3867 = vst [vmem:[#allocation2 + $0x700] sm:$0xff] %v4515_v48  ;;  %v3107_v24 = vmul.f32 0.03125, %v2851_v57  ;;  %v2853_v52 = vsub.f32 0.0, %v2597_v32  ;;  %v2342_v14 = vsub.f32 %v1830_v58, %v2086_v44  ;;  %v2087_v1 = vmul.f32 2.0, %v6655_v16 }
 0x2a9   :  { %3869 = vst [vmem:[#allocation2 + $0x710] sm:$0xff] %v4517_v6  ;;  %4526 = vpow2.f32 %v3589_v27  ;;  %v3593_v23 = vmul.f32 1.442695, %v3106_v3  ;;  %v2852_v55 = vsub.f32 0.0, %v2596_v50  ;;  %v1833_v11 = vadd.f32 %v7062_v39, %v7221_v49 }
 0x2aa   :  { %v4519_v0 = vpop.eup %4518  ;;  %v3595_v30 = vmul.f32 1.442695, %v3107_v24  ;;  %v3109_v35 = vmul.f32 0.03125, %v2853_v52  ;;  %v2598_v5 = vmax.f32 %v2342_v14, 0.0  ;;  %v2343_v34 = vsub.f32 %v1831_v20, %v2087_v1 }
 0x2ab   :  { %v4521_v63 = vpop.eup %4520  ;;  %3868 = vst [vmem:[#allocation2 + $0x708] sm:$0xff] %v4519_v0  ;;  %4528 = vpow2.f32 %v3593_v23  ;;  %v3108_v53 = vmul.f32 0.03125, %v2852_v55  ;;  %v2089_v17 = vmul.f32 2.0, %v7222_v18  ;;  %v1832_v16 = vadd.f32 %v7064_v25, %v7221_v49 }
 0x2ac   :  { %3870 = vst [vmem:[#allocation2 + $0x718] sm:$0xff] %v4521_v63  ;;  %4530 = vpow2.f32 %v3595_v30  ;;  %v3599_v33 = vmul.f32 1.442695, %v3109_v35  ;;  %v2854_v12 = vsub.f32 0.0, %v2598_v5  ;;  %v2599_v60 = vmax.f32 %v2343_v34, 0.0 }
 0x2ad   :  { %v3597_v31 = vmul.f32 1.442695, %v3108_v53  ;;  %v2345_v54 = vsub.f32 %v1833_v11, %v2089_v17  ;;  %v2088_v4 = vmul.f32 2.0, %v7223_v40  ;;  %v1834_v13 = vadd.f32 %v7055_v43, %v7221_v49  ;;  %v7227_v53 = vld [vmem:[#allocation26_spill] sm:$0xff] }
 0x2ae   :  { %v4523_v56 = vpop.eup %4522  ;;  %4532 = vpow2.f32 %v3599_v33  ;;  %v3110_v51 = vmul.f32 0.03125, %v2854_v12  ;;  %v2855_v7 = vsub.f32 0.0, %v2599_v60  ;;  %v2090_v15 = vmul.f32 2.0, %v7224_v37 }
 0x2af   :  { %3871 = vst [vmem:[#allocation2 + $0x720] sm:$0xff] %v4523_v56  ;;  %4534 = vpow2.f32 %v3597_v31  ;;  %v2601_v36 = vmax.f32 %v2345_v54, 0.0  ;;  %v2344_v8 = vsub.f32 %v1832_v16, %v2088_v4  ;;  %v1835_v29 = vadd.f32 %v7061_v62, %v7225_v46  ;;  %v7228_v54 = vld [vmem:[#allocation22_spill] sm:$0xff] }
 0x2b0   :  { %v4525_v38 = vpop.eup %4524  ;;  %v3601_v9 = vmul.f32 1.442695, %v3110_v51  ;;  %v3111_v28 = vmul.f32 0.03125, %v2855_v7  ;;  %v2346_v42 = vsub.f32 %v1834_v13, %v2090_v15  ;;  %v2091_v41 = vmul.f32 2.0, %v7226_v21  ;;  %v7229_v7 = vld [vmem:[#allocation44_spill] sm:$0xff] }
 0x2b1   :  { %3873 = vst [vmem:[#allocation2 + $0x730] sm:$0xff] %v4525_v38  ;;  %v2857_v19 = vsub.f32 0.0, %v2601_v36  ;;  %v2600_v47 = vmax.f32 %v2344_v8, 0.0  ;;  %v1837_v58 = vadd.f32 %v7062_v39, %v7225_v46  ;;  %v2093_v57 = vmul.f32 2.0, %v6680_v45 }
 0x2b2   :  { %4536 = vpow2.f32 %v3601_v9  ;;  %v3603_v32 = vmul.f32 1.442695, %v3111_v28  ;;  %v2602_v44 = vmax.f32 %v2346_v42, 0.0  ;;  %v2347_v48 = vsub.f32 %v1835_v29, %v2091_v41  ;;  %v7230_v29 = vld [vmem:[#allocation23_spill] sm:$0xff] }
 0x2b3   :  { %v4527_v27 = vpop.eup %4526  ;;  %v3113_v3 = vmul.f32 0.03125, %v2857_v19  ;;  %v2856_v50 = vsub.f32 0.0, %v2600_v47  ;;  %v2349_v49 = vsub.f32 %v1837_v58, %v2093_v57  ;;  %v1836_v20 = vadd.f32 %v7064_v25, %v7225_v46  ;;  %v7231_v47 = vld [vmem:[#allocation48_spill] sm:$0xff] }
 0x2b4   :  { %3872 = vst [vmem:[#allocation2 + $0x728] sm:$0xff] %v4527_v27  ;;  %4538 = vpow2.f32 %v3603_v32  ;;  %v2858_v6 = vsub.f32 0.0, %v2602_v44  ;;  %v2603_v24 = vmax.f32 %v2347_v48, 0.0  ;;  %v2092_v52 = vmul.f32 2.0, %v6682_v59  ;;  %v7232_v44 = vld [vmem:[#allocation7_spill] sm:$0xff] }
 0x2b5   :  { %v4529_v14 = vpop.eup %4528  ;;  %v3607_v1 = vmul.f32 1.442695, %v3113_v3  ;;  %v3112_v45 = vmul.f32 0.03125, %v2856_v50  ;;  %v2605_v23 = vmax.f32 %v2349_v49, 0.0  ;;  %v1838_v55 = vadd.f32 %v7055_v43, %v7225_v46 }
 0x2b6   :  { %v4531_v11 = vpop.eup %4530  ;;  %3874 = vst [vmem:[#allocation2 + $0x738] sm:$0xff] %v4529_v14  ;;  %v3114_v0 = vmul.f32 0.03125, %v2858_v6  ;;  %v2859_v30 = vsub.f32 0.0, %v2603_v24  ;;  %v2348_v35 = vsub.f32 %v1836_v20, %v2092_v52  ;;  %v2094_v5 = vmul.f32 2.0, %v6690_v22  ;;  %v7233_v6 = vld [vmem:[#allocation56_spill] sm:$0xff]  ;;  %v7234_v52 = vld [vmem:[#allocation58_spill] sm:$0xff] }
 0x2b7   :  { %3875 = vst [vmem:[#allocation2 + $0x740] sm:$0xff] %v4531_v11  ;;  %4540 = vpow2.f32 %v3607_v1  ;;  %v3605_v34 = vmul.f32 1.442695, %v3112_v45  ;;  %v2861_v63 = vsub.f32 0.0, %v2605_v23  ;;  %v1839_v59 = vadd.f32 %v7061_v62, %v7227_v53  ;;  %v7235_v23 = vld [vmem:[#allocation50_spill] sm:$0xff] }
 0x2b8   :  { %v4533_v18 = vpop.eup %4532  ;;  %v3609_v17 = vmul.f32 1.442695, %v3114_v0  ;;  %v3115_v16 = vmul.f32 0.03125, %v2859_v30  ;;  %v2604_v33 = vmax.f32 %v2348_v35, 0.0  ;;  %v2350_v12 = vsub.f32 %v1838_v55, %v2094_v5 }
 0x2b9   :  { %v4535_v60 = vpop.eup %4534  ;;  %3877 = vst [vmem:[#allocation2 + $0x750] sm:$0xff] %v4533_v18  ;;  %4542 = vpow2.f32 %v3605_v34  ;;  %v3117_v31 = vmul.f32 0.03125, %v2861_v63  ;;  %v2095_v40 = vmul.f32 2.0, %v7228_v54  ;;  %v1841_v22 = vadd.f32 %v7062_v39, %v7227_v53 }
 0x2ba   :  { %3876 = vst [vmem:[#allocation2 + $0x748] sm:$0xff] %v4535_v60  ;;  %4544 = vpow2.f32 %v3609_v17  ;;  %v3611_v4 = vmul.f32 1.442695, %v3115_v16  ;;  %v2860_v13 = vsub.f32 0.0, %v2604_v33  ;;  %v2606_v56 = vmax.f32 %v2350_v12, 0.0 }
 0x2bb   :  { %v3615_v62 = vmul.f32 1.442695, %v3117_v31  ;;  %v2351_v51 = vsub.f32 %v1839_v59, %v2095_v40  ;;  %v2097_v37 = vmul.f32 2.0, %v7229_v7  ;;  %v1840_v15 = vadd.f32 %v7064_v25, %v7227_v53  ;;  %v7237_v40 = vld [vmem:[#allocation59_spill] sm:$0xff] }
 0x2bc   :  { %v4537_v36 = vpop.eup %4536  ;;  %4546 = vpow2.f32 %v3611_v4  ;;  %v3116_v8 = vmul.f32 0.03125, %v2860_v13  ;;  %v2862_v46 = vsub.f32 0.0, %v2606_v56  ;;  %v2096_v38 = vmul.f32 2.0, %v7230_v29 }
 0x2bd   :  { %3878 = vst [vmem:[#allocation2 + $0x758] sm:$0xff] %v4537_v36  ;;  %4548 = vpow2.f32 %v3615_v62  ;;  %v2607_v39 = vmax.f32 %v2351_v51, 0.0  ;;  %v2353_v9 = vsub.f32 %v1841_v22, %v2097_v37  ;;  %v1842_v28 = vadd.f32 %v7055_v43, %v7227_v53  ;;  %v7236_v53 = vld [vmem:[#allocation57_spill] sm:$0xff] }
 0x2be   :  { %v4539_v42 = vpop.eup %4538  ;;  %v3613_v21 = vmul.f32 1.442695, %v3116_v8  ;;  %v3118_v41 = vmul.f32 0.03125, %v2862_v46  ;;  %v2352_v19 = vsub.f32 %v1840_v15, %v2096_v38  ;;  %v2098_v58 = vmul.f32 2.0, %v7231_v47  ;;  %v7238_v36 = vld [vmem:[#allocation29_spill] sm:$0xff] }
 0x2bf   :  { %3879 = vst [vmem:[#allocation2 + $0x760] sm:$0xff] %v4539_v42  ;;  %v2863_v25 = vsub.f32 0.0, %v2607_v39  ;;  %v2609_v57 = vmax.f32 %v2353_v9, 0.0  ;;  %v2099_v32 = vmul.f32 2.0, %v6715_v61  ;;  %v2101_v48 = vmul.f32 2.0, %v7232_v44  ;;  %v7239_v9 = vld [vmem:[#allocation27_spill] sm:$0xff] }
 0x2c0   :  { %4550 = vpow2.f32 %v3613_v21  ;;  %v3617_v27 = vmul.f32 1.442695, %v3118_v41  ;;  %v2608_v3 = vmax.f32 %v2352_v19, 0.0  ;;  %v2354_v50 = vsub.f32 %v1842_v28, %v2098_v58  ;;  %v7240_v42 = vld [vmem:[#allocation54_spill] sm:$0xff] }
 0x2c1   :  { %v4541_v49 = vpop.eup %4540  ;;  %v3119_v20 = vmul.f32 0.03125, %v2863_v25  ;;  %v2865_v43 = vsub.f32 0.0, %v2609_v57  ;;  %v2355_v24 = vsub.f32 %v7233_v6, %v2099_v32  ;;  %v2357_v14 = vsub.f32 %v7234_v52, %v2101_v48  ;;  %v7241_v41 = vld [vmem:[#allocation6_spill] sm:$0xff]  ;;  %v7242_v57 = vld [vmem:[#allocation53_spill] sm:$0xff]  ;;  %v7243_v48 = vld [vmem:[#allocation55_spill] sm:$0xff] }
 0x2c2   :  { %3881 = vst [vmem:[#allocation2 + $0x770] sm:$0xff] %v4541_v49  ;;  %4552 = vpow2.f32 %v3617_v27  ;;  %v2864_v1 = vsub.f32 0.0, %v2608_v3  ;;  %v2610_v45 = vmax.f32 %v2354_v50, 0.0  ;;  %v2100_v55 = vmul.f32 2.0, %v7235_v23 }
 0x2c3   :  { %v4543_v61 = vpop.eup %4542  ;;  %v3619_v11 = vmul.f32 1.442695, %v3119_v20  ;;  %v3121_v0 = vmul.f32 0.03125, %v2865_v43  ;;  %v2611_v30 = vmax.f32 %v2355_v24, 0.0  ;;  %v2613_v35 = vmax.f32 %v2357_v14, 0.0 }
 0x2c4   :  { %v4545_v5 = vpop.eup %4544  ;;  %3880 = vst [vmem:[#allocation2 + $0x768] sm:$0xff] %v4543_v61  ;;  %v3120_v34 = vmul.f32 0.03125, %v2864_v1  ;;  %v2866_v63 = vsub.f32 0.0, %v2610_v45  ;;  %v2356_v59 = vsub.f32 %v7236_v53, %v2100_v55  ;;  %v2102_v18 = vmul.f32 2.0, %v6727_v2 }
 0x2c5   :  { %3882 = vst [vmem:[#allocation2 + $0x778] sm:$0xff] %v4545_v5  ;;  %4554 = vpow2.f32 %v3619_v11  ;;  %v3623_v17 = vmul.f32 1.442695, %v3121_v0  ;;  %v2867_v16 = vsub.f32 0.0, %v2611_v30  ;;  %v2869_v33 = vsub.f32 0.0, %v2613_v35 }
 0x2c6   :  { %v4547_v12 = vpop.eup %4546  ;;  %v3621_v60 = vmul.f32 1.442695, %v3120_v34  ;;  %v3122_v31 = vmul.f32 0.03125, %v2866_v63  ;;  %v2612_v54 = vmax.f32 %v2356_v59, 0.0  ;;  %v2358_v22 = vsub.f32 %v7237_v40, %v2102_v18 }
 0x2c7   :  { %v4549_v4 = vpop.eup %4548  ;;  %3883 = vst [vmem:[#allocation2 + $0x780] sm:$0xff] %v4547_v12  ;;  %4556 = vpow2.f32 %v3623_v17  ;;  %v3123_v13 = vmul.f32 0.03125, %v2867_v16  ;;  %v3125_v56 = vmul.f32 0.03125, %v2869_v33  ;;  %v2103_v62 = vmul.f32 2.0, %v6732_v26 }
 0x2c8   :  { %3885 = vst [vmem:[#allocation2 + $0x790] sm:$0xff] %v4549_v4  ;;  %4558 = vpow2.f32 %v3621_v60  ;;  %v3625_v2 = vmul.f32 1.442695, %v3122_v31  ;;  %v2868_v51 = vsub.f32 0.0, %v2612_v54  ;;  %v2614_v7 = vmax.f32 %v2358_v22, 0.0 }
 0x2c9   :  { %v3627_v37 = vmul.f32 1.442695, %v3123_v13  ;;  %v3631_v15 = vmul.f32 1.442695, %v3125_v56  ;;  %v2359_v8 = vsub.f32 %v7238_v36, %v2103_v62  ;;  %v2105_v46 = vmul.f32 2.0, %v6738_v10 }
 0x2ca   :  { %v4551_v29 = vpop.eup %4550  ;;  %4560 = vpow2.f32 %v3625_v2  ;;  %v3124_v38 = vmul.f32 0.03125, %v2868_v51  ;;  %v2870_v39 = vsub.f32 0.0, %v2614_v7  ;;  %v2104_v28 = vmul.f32 2.0, %v7239_v9 }
 0x2cb   :  { %3884 = vst [vmem:[#allocation2 + $0x788] sm:$0xff] %v4551_v29  ;;  %4562 = vpow2.f32 %v3627_v37  ;;  %v2615_v26 = vmax.f32 %v2359_v8, 0.0  ;;  %v2361_v21 = vsub.f32 %v7240_v42, %v2105_v46  ;;  %v2106_v19 = vmul.f32 2.0, %v7241_v41 }
 0x2cc   :  { %v4553_v47 = vpop.eup %4552  ;;  %4564 = vpow2.f32 %v3631_v15  ;;  %v3629_v58 = vmul.f32 1.442695, %v3124_v38  ;;  %v3126_v25 = vmul.f32 0.03125, %v2870_v39  ;;  %v2360_v32 = vsub.f32 %v7242_v57, %v2104_v28 }
 0x2cd   :  { %3886 = vst [vmem:[#allocation2 + $0x798] sm:$0xff] %v4553_v47  ;;  %v2871_v10 = vsub.f32 0.0, %v2615_v26  ;;  %v2617_v44 = vmax.f32 %v2361_v21, 0.0  ;;  %v2362_v27 = vsub.f32 %v7243_v48, %v2106_v19 }
 0x2ce   :  { %4566 = vpow2.f32 %v3629_v58  ;;  %v3633_v3 = vmul.f32 1.442695, %v3126_v25  ;;  %v2616_v50 = vmax.f32 %v2360_v32, 0.0 }
 0x2cf   :  { %v4555_v49 = vpop.eup %4554  ;;  %v3127_v20 = vmul.f32 0.03125, %v2871_v10  ;;  %v2873_v43 = vsub.f32 0.0, %v2617_v44  ;;  %v2618_v6 = vmax.f32 %v2362_v27, 0.0 }
 0x2d0   :  { %3887 = vst [vmem:[#allocation2 + $0x7a0] sm:$0xff] %v4555_v49  ;;  %4568 = vpow2.f32 %v3633_v3  ;;  %v2872_v24 = vsub.f32 0.0, %v2616_v50 }
 0x2d1   :  { %v4557_v52 = vpop.eup %4556  ;;  %v3635_v14 = vmul.f32 1.442695, %v3127_v20  ;;  %v3129_v1 = vmul.f32 0.03125, %v2873_v43  ;;  %v2874_v45 = vsub.f32 0.0, %v2618_v6 }
 0x2d2   :  { %v4559_v23 = vpop.eup %4558  ;;  %3889 = vst [vmem:[#allocation2 + $0x7b0] sm:$0xff] %v4557_v52  ;;  %v3128_v55 = vmul.f32 0.03125, %v2872_v24 }
 0x2d3   :  { %3888 = vst [vmem:[#allocation2 + $0x7a8] sm:$0xff] %v4559_v23  ;;  %4570 = vpow2.f32 %v3635_v14  ;;  %v3639_v61 = vmul.f32 1.442695, %v3129_v1  ;;  %v3130_v11 = vmul.f32 0.03125, %v2874_v45 }
 0x2d4   :  { %v4561_v0 = vpop.eup %4560  ;;  %v3637_v30 = vmul.f32 1.442695, %v3128_v55 }
 0x2d5   :  { %v4563_v35 = vpop.eup %4562  ;;  %3890 = vst [vmem:[#allocation2 + $0x7b8] sm:$0xff] %v4561_v0  ;;  %4572 = vpow2.f32 %v3639_v61  ;;  %v3641_v5 = vmul.f32 1.442695, %v3130_v11 }
 0x2d6   :  { %v4565_v34 = vpop.eup %4564  ;;  %3891 = vst [vmem:[#allocation2 + $0x7c0] sm:$0xff] %v4563_v35  ;;  %4574 = vpow2.f32 %v3637_v30 }
 0x2d7   :  { %3893 = vst [vmem:[#allocation2 + $0x7d0] sm:$0xff] %v4565_v34  ;;  %4576 = vpow2.f32 %v3641_v5 }
 0x2d8   :  { %v4567_v63 = vpop.eup %4566 }
 0x2d9   :  { %3892 = vst [vmem:[#allocation2 + $0x7c8] sm:$0xff] %v4567_v63 }
 0x2da   :  { %v4569_v53 = vpop.eup %4568 }
 0x2db   :  { %3894 = vst [vmem:[#allocation2 + $0x7d8] sm:$0xff] %v4569_v53 }
 0x2dd   :  { %v4571_v59 = vpop.eup %4570 }
 0x2de   :  { %3895 = vst [vmem:[#allocation2 + $0x7e0] sm:$0xff] %v4571_v59 }
 0x2df   :  { %v4573_v18 = vpop.eup %4572 }
 0x2e0   :  { %v4575_v17 = vpop.eup %4574  ;;  %3897 = vst [vmem:[#allocation2 + $0x7f0] sm:$0xff] %v4573_v18 }
 0x2e1   :  { %v4577_v16 = vpop.eup %4576  ;;  %3896 = vst [vmem:[#allocation2 + $0x7e8] sm:$0xff] %v4575_v17 }
 0x2e2   :  { %3898 = vst [vmem:[#allocation2 + $0x7f8] sm:$0xff] %v4577_v16 }
 0x2e3   :  { %4589 = shalt.err (!%p4586_p4)
}
 0x2e4   :  { %s4590_s8 = scalar_lea.hbm %s6920_s4, 32768 }
 0x2e5   :  { %p4591_p5 = scmp.ne.s32.totalorder %s6920_s4, %s4590_s8  ;;  %p4594_p6 = scmp.lt.u32.totalorder %s4590_s8, %s6920_s4 }
 0x2e7   :  { %p4596_p7 = pnand %p4594_p6, %p4591_p5 }
 0x2e9   :  { %4599 = shalt.err (!%p4596_p7)
}
 0x2ea   :  { %s4605_s13 = smov 512   ;;  %s4606_s14 = smov 32  }
 0x2eb   :  { %3910 = dma.vmem_to_hbm [thread:$0]  %s3905_s30, 32768, %s6920_s4, [#allocation3], %s4605_s13, %s4605_s13, %s4606_s14  }
 0x2ec   :  { %4600 = dma.done.wait [#allocation3], 32768  }
 0x2ed   :  { %4601 = vsyncadd [#allocation3], 4294934528 }
 0x2ee   :  { %3914 = vsyncpa [#allocation3], 1 }

</bundles_post_ra>
